<compile_context>
chip_gen: v6e
topology: v6e:2x2x1
jax: 0.10.0
libtpu: 0.0.40
codegen_flags: <defaults>
</compile_context>

<pallas_src>
import functools

import numpy as np
import jax
import jax.numpy as jnp
from jax.experimental import pallas as pl
from jax.experimental.pallas import tpu as pltpu

KERNEL_SIZE = 5
MAX_ORIENT = 8
MAX_LEVEL = 4
D = (KERNEL_SIZE - 1) // 2  # = 2


# ----------------------------------------------------------------------------
# fused kernel
# ----------------------------------------------------------------------------
def _transform_kernel(x_ref, wf_ref, wi_ref, pe_ref, po_ref, sc_ref, o_ref, *,
                      num_levels):
    """Fused multi-level forward + inverse 1-D wavelet transform.

    x_ref  : (nb, L)            VMEM  batch tile of the input signal
    wf_ref : (8, 5)             SMEM  forward (analysis) filters
    wi_ref : (8, 5)             SMEM  inverse (synthesis) filters
    pe_ref : (L, L/2 + 2)       VMEM  0/1 even-phase extraction matrix (pad folded in)
    po_ref : (L, L/2 + 2)       VMEM  0/1 odd-phase  extraction matrix
    sc_ref : (5 * L/2, L)       VMEM  0/1 stride-2 scatter matrices, one per tap (rows)
    o_ref  : (nb, L)            VMEM  reconstructed signal (single lane-dense store)

    Coarser levels use the top-left corner of the same permutation matrices.
    """
    # hoist all 80 scalar filter reads out of the per-level / per-tap loops
    wf = [[wf_ref[f, k] for k in range(KERNEL_SIZE)] for f in range(MAX_ORIENT)]
    wi = [[wi_ref[f, k] for k in range(KERNEL_SIZE)] for f in range(MAX_ORIENT)]

    l_half_max = sc_ref.shape[0] // KERNEL_SIZE   # = L // 2 (static)

    # ---------------- analysis: conv1d(pad=2, stride=2), 8 filters per level ----
    vimg = x_ref[...]                              # (nb, L) f32
    details = []                                   # per level: 7 detail channels
    for _ in range(num_levels):
        l = vimg.shape[-1]
        m = l // 2
        # even / odd phases of the zero-padded signal:
        #   pe[o] = x_pad[2o]   = x[2o-2],   po[o] = x_pad[2o+1] = x[2o-1]
        # exact gathers as 0/1-matrix matmuls on the MXU.
        pe = jnp.dot(vimg, pe_ref[0:l, 0:m + 2],
                     preferred_element_type=jnp.float32)        # (nb, m+2)
        po = jnp.dot(vimg, po_ref[0:l, 0:m + 2],
                     preferred_element_type=jnp.float32)        # (nb, m+2)
        # 5 tap arrays (static lane slices), shared by all 8 filters
        taps = (pe[:, 0:m], po[:, 0:m],
                pe[:, 1:m + 1], po[:, 1:m + 1], pe[:, 2:m + 2])
        chans = []
        for f in range(MAX_ORIENT):
            acc = taps[0] * wf[f][0]               # init with k=0 term
            for k in range(1, KERNEL_SIZE):
                acc = acc + taps[k] * wf[f][k]
            chans.append(acc)                      # (nb, m)
        details.append(chans[1:])
        vimg = chans[0]                            # low-pass feeds next level

    # ---------------- synthesis: conv_transpose1d(stride=2, pad=2, out_pad=1) ---
    # rec[t] = sum_{c,i,k} coeff[c][i] * w_inv[c,k] * [t == 2i + k - 2]
    rec = vimg                                     # coarsest low-pass
    for det in reversed(details):                  # coarse -> fine
        chans_in = [rec] + det
        lc = rec.shape[-1]
        rec_new = None
        for k in range(KERNEL_SIZE):
            # weighted channel-sum for tap k (VPU)
            s_k = chans_in[0] * wi[0][k]
            for c in range(1, MAX_ORIENT):
                s_k = s_k + chans_in[c] * wi[c][k]
            # exact stride-2 scatter of tap k via 0/1 matmul (MXU)
            row0 = k * l_half_max
            contrib = jnp.dot(s_k, sc_ref[row0:row0 + lc, 0:2 * lc],
                              preferred_element_type=jnp.float32)   # (nb, 2*lc)
            rec_new = contrib if rec_new is None else rec_new + contrib
        rec = rec_new
    o_ref[...] = rec


# ----------------------------------------------------------------------------
# wrapper helpers
# ----------------------------------------------------------------------------
def padding_for_transpose_conv(x):
    input_padding = 0
    output_padding = 0
    if x > 0:
        output_padding = x
    if x < 0:
        if abs(x) % 2 == 0:
            input_padding = abs(x) // 2
        else:
            output_padding = 1
            input_padding = (abs(x) + 1) // 2
    return int(input_padding), int(output_padding)


def _num_levels(length):
    """Static mirror of the torch while-loop; also checks the supported domain."""
    level, h, n_levels = MAX_LEVEL, length, 0
    while level > 0 and h > 1:
        # Only lengths that halve exactly at every level are supported; this also
        # guarantees the transpose-conv paddings are (input=2, output=1) everywhere.
        # TODO(synk): general transpose-conv (input_padding, output_padding) cases.
        assert h % 2 == 0, "length must halve exactly at every level"
        h = (h + 2 * D - KERNEL_SIZE) // 2 + 1
        level -= 1
        n_levels += 1
        assert h > 1                    # same domain restriction as the torch module
    assert n_levels == MAX_LEVEL        # inverse loop indexes all MAX_LEVEL levels
    return n_levels


def _permutation_matrices(length):
    """Host-precomputed exact 0/1 permutation matrices (built once per shape)."""
    m = length // 2
    r = np.arange(length)[:, None]
    o = np.arange(m + 2)[None, :]
    pe = (r == 2 * o - 2).astype(np.float32)        # pe[o] = x[2o-2]  (zero outside)
    po = (r == 2 * o - 1).astype(np.float32)        # po[o] = x[2o-1]
    i = np.arange(m)[:, None]
    t = np.arange(length)[None, :]
    scat = np.concatenate(
        [(t == 2 * i + (k - 2)).astype(np.float32) for k in range(KERNEL_SIZE)],
        axis=0)                                     # (5*m, L): rec[t] += s_k[i]
    return jnp.asarray(pe), jnp.asarray(po), jnp.asarray(scat)


def _pick_batch_tile(n, length):
    """Batch tile: multiple of 8, <=256, VMEM-budgeted, and <= N/2 so the
    'parallel' grid has >=2 steps (both v7x TensorCores get work)."""
    if n <= 8:
        return n
    budget_rows = max(8, (8 * 1024 * 1024) // (length * 4 * 16))
    cap = min(256, budget_rows)
    if n >= 16:
        cap = min(cap, n // 2)
    cap = max(cap, 8)
    for nb in range(min(cap, n), 7, -1):
        if nb % 8 == 0 and n % nb == 0:
            return nb
    return n        # TODO(synk): ragged batch tail; fall back to one whole-batch tile


def _vmem_limit_bytes(nb, length):
    m = length // 2
    consts = (2 * length * (m + 2) + KERNEL_SIZE * m * length) * 4
    io = 2 * 2 * nb * length * 4            # double-buffered input + output tiles
    live = 16 * nb * length * 4             # coefficient pyramid + matmul temporaries
    est = 2 * consts + io + live + (8 << 20)
    return int(min(max(est, 32 << 20), 128 << 20))


@jax.jit
def transform_network_1d_forward(x, w_fwd, w_inv):
    # TODO(synk): the original torch code F.pad's the (N,C,L) tensor with a 4-tuple
    # (which would also zero-pad the channel dim and break conv1d); we implement the
    # intended symmetric length-only padding.
    n, c, length = x.shape
    assert c == 1
    num_levels = _num_levels(length)

    x2 = x[:, 0, :].astype(jnp.float32)          # (N, L): L on the lane axis
    nb = _pick_batch_tile(n, length)
    assert n % nb == 0

    pe_mat, po_mat, scat_mat = _permutation_matrices(length)

    kernel = functools.partial(_transform_kernel, num_levels=num_levels)
    out = pl.pallas_call(
        kernel,
        out_shape=jax.ShapeDtypeStruct((n, length), jnp.float32),
        grid=(n // nb,),
        in_specs=[
            pl.BlockSpec((nb, length), lambda b: (b, 0)),
            pl.BlockSpec((MAX_ORIENT, KERNEL_SIZE), lambda b: (0, 0),
                         memory_space=pltpu.MemorySpace.SMEM),
            pl.BlockSpec((MAX_ORIENT, KERNEL_SIZE), lambda b: (0, 0),
                         memory_space=pltpu.MemorySpace.SMEM),
            # constant permutation matrices: full-array blocks, constant index_map
            # -> fetched once, reused by every grid step.
            pl.BlockSpec((length, length // 2 + 2), lambda b: (0, 0)),
            pl.BlockSpec((length, length // 2 + 2), lambda b: (0, 0)),
            pl.BlockSpec((KERNEL_SIZE * (length // 2), length), lambda b: (0, 0)),
        ],
        out_specs=pl.BlockSpec((nb, length), lambda b: (b, 0)),
        compiler_params=pltpu.CompilerParams(
            dimension_semantics=("parallel",),            # batch tiles -> both v7x TCs
            vmem_limit_bytes=_vmem_limit_bytes(nb, length)),
    )(x2, w_fwd, w_inv, pe_mat, po_mat, scat_mat)
    return out[:, None, :]


# ----------------------------------------------------------------------------
# pure numpy reference (exact PyTorch conv1d / conv_transpose1d semantics)
# ----------------------------------------------------------------------------
def reference_forward(x, w_fwd, w_inv):
    x = np.asarray(x, np.float64)
    wf = np.asarray(w_fwd, np.float64)
    wi = np.asarray(w_inv, np.float64)
    n = x.shape[0]
    result = [None] * (MAX_LEVEL + 1)
    vimg = x
    level = MAX_LEVEL
    h = vimg.shape[2]
    res = None
    while level > 0 and h > 1:
        padded = np.pad(vimg, ((0, 0), (0, 0), (D, D)))
        l_out = (padded.shape[2] - KERNEL_SIZE) // 2 + 1
        res = np.zeros((n, MAX_ORIENT, l_out))
        for f in range(MAX_ORIENT):
            for o in range(l_out):
                res[:, f, o] = np.sum(
                    padded[:, 0, 2 * o:2 * o + KERNEL_SIZE] * wf[f], axis=-1)
        result[level] = res
        vimg = res[:, :1]
        level -= 1
        h = vimg.shape[2]
    result[0] = res[:, :1, :]

    rec = result[0]
    inp_dim = x.shape[2]
    for level in range(1, MAX_LEVEL + 1):
        l_cur = result[level].shape[-1]
        nxt = inp_dim if level == MAX_LEVEL else result[level + 1].shape[-1]
        pad_calc = nxt - 2 * (l_cur - 1) - KERNEL_SIZE
        ip, op = padding_for_transpose_conv(pad_calc)
        full = np.concatenate([rec, result[level][:, 1:]], axis=1)
        l_out = (l_cur - 1) * 2 - 2 * ip + KERNEL_SIZE + op
        y = np.zeros((n, 1, l_out))
        for i in range(l_cur):
            for k in range(KERNEL_SIZE):
                t = 2 * i + k - ip
                if 0 <= t < l_out:
                    y[:, 0, t] += np.sum(full[:, :, i] * wi[:, k], axis=1)
        rec = y
    return rec.astype(np.float32)


# ----------------------------------------------------------------------------
if __name__ == "__main__":
    key = jax.random.PRNGKey(0)
    k1, k2, k3 = jax.random.split(key, 3)

    # parameters: torch.randn((max_orient, 1, K)); forward_filters[0,0] = ones
    w_fwd = jax.random.normal(k1, (MAX_ORIENT, KERNEL_SIZE), jnp.float32)
    w_fwd = w_fwd.at[0].set(jnp.ones((KERNEL_SIZE,), jnp.float32))
    w_inv = jax.random.normal(k2, (MAX_ORIENT, KERNEL_SIZE), jnp.float32)

    # input: (N, C=1, L); L=128 is lane-dense and halves exactly through 4 levels,
    # N=16 with batch tile 8 gives a 2-step "parallel" grid (both v7x TCs busy).
    N, L = 16, 128
    x = jax.random.normal(k3, (N, 1, L), jnp.float32)

    out = transform_network_1d_forward(x, w_fwd, w_inv)
    out = jax.block_until_ready(out)

    ref = reference_forward(x, w_fwd, w_inv)
    assert out.shape == ref.shape, (out.shape, ref.shape)
    err = float(np.max(np.abs(np.asarray(out) - ref)))
    scale = float(np.max(np.abs(ref))) + 1e-6
    assert err / scale < 2e-3, (err, scale)

    print("KERNEL_OK")
</pallas_src>

<mosaic_0001>
module attributes {stable_mosaic.version = 11 : i64} {
  func.func @_transform_kernel(%arg0: i32, %arg1: memref<8x128xf32, #tpu.memory_space<vmem>>, %arg2: memref<8x5xf32, #tpu.memory_space<smem>>, %arg3: memref<8x5xf32, #tpu.memory_space<smem>>, %arg4: memref<128x66xf32, #tpu.memory_space<vmem>>, %arg5: memref<128x66xf32, #tpu.memory_space<vmem>>, %arg6: memref<320x128xf32, #tpu.memory_space<vmem>>, %arg7: memref<8x128xf32, #tpu.memory_space<vmem>>) attributes {dimension_semantics = [#tpu.dimension_semantics<parallel>], iteration_bounds = array<i64: 2>, scalar_prefetch = 0 : i64, scratch_operands = 0 : i64, tpu.core_type = #tpu.core_type<tc>, window_params = [{transform_indices = @transform_0, window_bounds = array<i64: 8, 128>}, {transform_indices = @transform_1, window_bounds = array<i64: 8, 5>}, {transform_indices = @transform_2, window_bounds = array<i64: 8, 5>}, {pipeline_mode = #tpu.pipeline_mode<synchronous>, transform_indices = @transform_3, window_bounds = array<i64: 128, 66>}, {pipeline_mode = #tpu.pipeline_mode<synchronous>, transform_indices = @transform_4, window_bounds = array<i64: 128, 66>}, {pipeline_mode = #tpu.pipeline_mode<synchronous>, transform_indices = @transform_5, window_bounds = array<i64: 320, 128>}, {transform_indices = @transform_6, window_bounds = array<i64: 8, 128>}]} {
    %c0 = arith.constant 0 : index
    %c0_0 = arith.constant 0 : index
    %0 = memref.load %arg2[%c0, %c0_0] : memref<8x5xf32, #tpu.memory_space<smem>>
    %c0_1 = arith.constant 0 : index
    %c1 = arith.constant 1 : index
    %1 = memref.load %arg2[%c0_1, %c1] : memref<8x5xf32, #tpu.memory_space<smem>>
    %c0_2 = arith.constant 0 : index
    %c2 = arith.constant 2 : index
    %2 = memref.load %arg2[%c0_2, %c2] : memref<8x5xf32, #tpu.memory_space<smem>>
    %c0_3 = arith.constant 0 : index
    %c3 = arith.constant 3 : index
    %3 = memref.load %arg2[%c0_3, %c3] : memref<8x5xf32, #tpu.memory_space<smem>>
    %c0_4 = arith.constant 0 : index
    %c4 = arith.constant 4 : index
    %4 = memref.load %arg2[%c0_4, %c4] : memref<8x5xf32, #tpu.memory_space<smem>>
    %c1_5 = arith.constant 1 : index
    %c0_6 = arith.constant 0 : index
    %5 = memref.load %arg2[%c1_5, %c0_6] : memref<8x5xf32, #tpu.memory_space<smem>>
    %c1_7 = arith.constant 1 : index
    %c1_8 = arith.constant 1 : index
    %6 = memref.load %arg2[%c1_7, %c1_8] : memref<8x5xf32, #tpu.memory_space<smem>>
    %c1_9 = arith.constant 1 : index
    %c2_10 = arith.constant 2 : index
    %7 = memref.load %arg2[%c1_9, %c2_10] : memref<8x5xf32, #tpu.memory_space<smem>>
    %c1_11 = arith.constant 1 : index
    %c3_12 = arith.constant 3 : index
    %8 = memref.load %arg2[%c1_11, %c3_12] : memref<8x5xf32, #tpu.memory_space<smem>>
    %c1_13 = arith.constant 1 : index
    %c4_14 = arith.constant 4 : index
    %9 = memref.load %arg2[%c1_13, %c4_14] : memref<8x5xf32, #tpu.memory_space<smem>>
    %c2_15 = arith.constant 2 : index
    %c0_16 = arith.constant 0 : index
    %10 = memref.load %arg2[%c2_15, %c0_16] : memref<8x5xf32, #tpu.memory_space<smem>>
    %c2_17 = arith.constant 2 : index
    %c1_18 = arith.constant 1 : index
    %11 = memref.load %arg2[%c2_17, %c1_18] : memref<8x5xf32, #tpu.memory_space<smem>>
    %c2_19 = arith.constant 2 : index
    %c2_20 = arith.constant 2 : index
    %12 = memref.load %arg2[%c2_19, %c2_20] : memref<8x5xf32, #tpu.memory_space<smem>>
    %c2_21 = arith.constant 2 : index
    %c3_22 = arith.constant 3 : index
    %13 = memref.load %arg2[%c2_21, %c3_22] : memref<8x5xf32, #tpu.memory_space<smem>>
    %c2_23 = arith.constant 2 : index
    %c4_24 = arith.constant 4 : index
    %14 = memref.load %arg2[%c2_23, %c4_24] : memref<8x5xf32, #tpu.memory_space<smem>>
    %c3_25 = arith.constant 3 : index
    %c0_26 = arith.constant 0 : index
    %15 = memref.load %arg2[%c3_25, %c0_26] : memref<8x5xf32, #tpu.memory_space<smem>>
    %c3_27 = arith.constant 3 : index
    %c1_28 = arith.constant 1 : index
    %16 = memref.load %arg2[%c3_27, %c1_28] : memref<8x5xf32, #tpu.memory_space<smem>>
    %c3_29 = arith.constant 3 : index
    %c2_30 = arith.constant 2 : index
    %17 = memref.load %arg2[%c3_29, %c2_30] : memref<8x5xf32, #tpu.memory_space<smem>>
    %c3_31 = arith.constant 3 : index
    %c3_32 = arith.constant 3 : index
    %18 = memref.load %arg2[%c3_31, %c3_32] : memref<8x5xf32, #tpu.memory_space<smem>>
    %c3_33 = arith.constant 3 : index
    %c4_34 = arith.constant 4 : index
    %19 = memref.load %arg2[%c3_33, %c4_34] : memref<8x5xf32, #tpu.memory_space<smem>>
    %c4_35 = arith.constant 4 : index
    %c0_36 = arith.constant 0 : index
    %20 = memref.load %arg2[%c4_35, %c0_36] : memref<8x5xf32, #tpu.memory_space<smem>>
    %c4_37 = arith.constant 4 : index
    %c1_38 = arith.constant 1 : index
    %21 = memref.load %arg2[%c4_37, %c1_38] : memref<8x5xf32, #tpu.memory_space<smem>>
    %c4_39 = arith.constant 4 : index
    %c2_40 = arith.constant 2 : index
    %22 = memref.load %arg2[%c4_39, %c2_40] : memref<8x5xf32, #tpu.memory_space<smem>>
    %c4_41 = arith.constant 4 : index
    %c3_42 = arith.constant 3 : index
    %23 = memref.load %arg2[%c4_41, %c3_42] : memref<8x5xf32, #tpu.memory_space<smem>>
    %c4_43 = arith.constant 4 : index
    %c4_44 = arith.constant 4 : index
    %24 = memref.load %arg2[%c4_43, %c4_44] : memref<8x5xf32, #tpu.memory_space<smem>>
    %c5 = arith.constant 5 : index
    %c0_45 = arith.constant 0 : index
    %25 = memref.load %arg2[%c5, %c0_45] : memref<8x5xf32, #tpu.memory_space<smem>>
    %c5_46 = arith.constant 5 : index
    %c1_47 = arith.constant 1 : index
    %26 = memref.load %arg2[%c5_46, %c1_47] : memref<8x5xf32, #tpu.memory_space<smem>>
    %c5_48 = arith.constant 5 : index
    %c2_49 = arith.constant 2 : index
    %27 = memref.load %arg2[%c5_48, %c2_49] : memref<8x5xf32, #tpu.memory_space<smem>>
    %c5_50 = arith.constant 5 : index
    %c3_51 = arith.constant 3 : index
    %28 = memref.load %arg2[%c5_50, %c3_51] : memref<8x5xf32, #tpu.memory_space<smem>>
    %c5_52 = arith.constant 5 : index
    %c4_53 = arith.constant 4 : index
    %29 = memref.load %arg2[%c5_52, %c4_53] : memref<8x5xf32, #tpu.memory_space<smem>>
    %c6 = arith.constant 6 : index
    %c0_54 = arith.constant 0 : index
    %30 = memref.load %arg2[%c6, %c0_54] : memref<8x5xf32, #tpu.memory_space<smem>>
    %c6_55 = arith.constant 6 : index
    %c1_56 = arith.constant 1 : index
    %31 = memref.load %arg2[%c6_55, %c1_56] : memref<8x5xf32, #tpu.memory_space<smem>>
    %c6_57 = arith.constant 6 : index
    %c2_58 = arith.constant 2 : index
    %32 = memref.load %arg2[%c6_57, %c2_58] : memref<8x5xf32, #tpu.memory_space<smem>>
    %c6_59 = arith.constant 6 : index
    %c3_60 = arith.constant 3 : index
    %33 = memref.load %arg2[%c6_59, %c3_60] : memref<8x5xf32, #tpu.memory_space<smem>>
    %c6_61 = arith.constant 6 : index
    %c4_62 = arith.constant 4 : index
    %34 = memref.load %arg2[%c6_61, %c4_62] : memref<8x5xf32, #tpu.memory_space<smem>>
    %c7 = arith.constant 7 : index
    %c0_63 = arith.constant 0 : index
    %35 = memref.load %arg2[%c7, %c0_63] : memref<8x5xf32, #tpu.memory_space<smem>>
    %c7_64 = arith.constant 7 : index
    %c1_65 = arith.constant 1 : index
    %36 = memref.load %arg2[%c7_64, %c1_65] : memref<8x5xf32, #tpu.memory_space<smem>>
    %c7_66 = arith.constant 7 : index
    %c2_67 = arith.constant 2 : index
    %37 = memref.load %arg2[%c7_66, %c2_67] : memref<8x5xf32, #tpu.memory_space<smem>>
    %c7_68 = arith.constant 7 : index
    %c3_69 = arith.constant 3 : index
    %38 = memref.load %arg2[%c7_68, %c3_69] : memref<8x5xf32, #tpu.memory_space<smem>>
    %c7_70 = arith.constant 7 : index
    %c4_71 = arith.constant 4 : index
    %39 = memref.load %arg2[%c7_70, %c4_71] : memref<8x5xf32, #tpu.memory_space<smem>>
    %c0_72 = arith.constant 0 : index
    %c0_73 = arith.constant 0 : index
    %40 = memref.load %arg3[%c0_72, %c0_73] : memref<8x5xf32, #tpu.memory_space<smem>>
    %c0_74 = arith.constant 0 : index
    %c1_75 = arith.constant 1 : index
    %41 = memref.load %arg3[%c0_74, %c1_75] : memref<8x5xf32, #tpu.memory_space<smem>>
    %c0_76 = arith.constant 0 : index
    %c2_77 = arith.constant 2 : index
    %42 = memref.load %arg3[%c0_76, %c2_77] : memref<8x5xf32, #tpu.memory_space<smem>>
    %c0_78 = arith.constant 0 : index
    %c3_79 = arith.constant 3 : index
    %43 = memref.load %arg3[%c0_78, %c3_79] : memref<8x5xf32, #tpu.memory_space<smem>>
    %c0_80 = arith.constant 0 : index
    %c4_81 = arith.constant 4 : index
    %44 = memref.load %arg3[%c0_80, %c4_81] : memref<8x5xf32, #tpu.memory_space<smem>>
    %c1_82 = arith.constant 1 : index
    %c0_83 = arith.constant 0 : index
    %45 = memref.load %arg3[%c1_82, %c0_83] : memref<8x5xf32, #tpu.memory_space<smem>>
    %c1_84 = arith.constant 1 : index
    %c1_85 = arith.constant 1 : index
    %46 = memref.load %arg3[%c1_84, %c1_85] : memref<8x5xf32, #tpu.memory_space<smem>>
    %c1_86 = arith.constant 1 : index
    %c2_87 = arith.constant 2 : index
    %47 = memref.load %arg3[%c1_86, %c2_87] : memref<8x5xf32, #tpu.memory_space<smem>>
    %c1_88 = arith.constant 1 : index
    %c3_89 = arith.constant 3 : index
    %48 = memref.load %arg3[%c1_88, %c3_89] : memref<8x5xf32, #tpu.memory_space<smem>>
    %c1_90 = arith.constant 1 : index
    %c4_91 = arith.constant 4 : index
    %49 = memref.load %arg3[%c1_90, %c4_91] : memref<8x5xf32, #tpu.memory_space<smem>>
    %c2_92 = arith.constant 2 : index
    %c0_93 = arith.constant 0 : index
    %50 = memref.load %arg3[%c2_92, %c0_93] : memref<8x5xf32, #tpu.memory_space<smem>>
    %c2_94 = arith.constant 2 : index
    %c1_95 = arith.constant 1 : index
    %51 = memref.load %arg3[%c2_94, %c1_95] : memref<8x5xf32, #tpu.memory_space<smem>>
    %c2_96 = arith.constant 2 : index
    %c2_97 = arith.constant 2 : index
    %52 = memref.load %arg3[%c2_96, %c2_97] : memref<8x5xf32, #tpu.memory_space<smem>>
    %c2_98 = arith.constant 2 : index
    %c3_99 = arith.constant 3 : index
    %53 = memref.load %arg3[%c2_98, %c3_99] : memref<8x5xf32, #tpu.memory_space<smem>>
    %c2_100 = arith.constant 2 : index
    %c4_101 = arith.constant 4 : index
    %54 = memref.load %arg3[%c2_100, %c4_101] : memref<8x5xf32, #tpu.memory_space<smem>>
    %c3_102 = arith.constant 3 : index
    %c0_103 = arith.constant 0 : index
    %55 = memref.load %arg3[%c3_102, %c0_103] : memref<8x5xf32, #tpu.memory_space<smem>>
    %c3_104 = arith.constant 3 : index
    %c1_105 = arith.constant 1 : index
    %56 = memref.load %arg3[%c3_104, %c1_105] : memref<8x5xf32, #tpu.memory_space<smem>>
    %c3_106 = arith.constant 3 : index
    %c2_107 = arith.constant 2 : index
    %57 = memref.load %arg3[%c3_106, %c2_107] : memref<8x5xf32, #tpu.memory_space<smem>>
    %c3_108 = arith.constant 3 : index
    %c3_109 = arith.constant 3 : index
    %58 = memref.load %arg3[%c3_108, %c3_109] : memref<8x5xf32, #tpu.memory_space<smem>>
    %c3_110 = arith.constant 3 : index
    %c4_111 = arith.constant 4 : index
    %59 = memref.load %arg3[%c3_110, %c4_111] : memref<8x5xf32, #tpu.memory_space<smem>>
    %c4_112 = arith.constant 4 : index
    %c0_113 = arith.constant 0 : index
    %60 = memref.load %arg3[%c4_112, %c0_113] : memref<8x5xf32, #tpu.memory_space<smem>>
    %c4_114 = arith.constant 4 : index
    %c1_115 = arith.constant 1 : index
    %61 = memref.load %arg3[%c4_114, %c1_115] : memref<8x5xf32, #tpu.memory_space<smem>>
    %c4_116 = arith.constant 4 : index
    %c2_117 = arith.constant 2 : index
    %62 = memref.load %arg3[%c4_116, %c2_117] : memref<8x5xf32, #tpu.memory_space<smem>>
    %c4_118 = arith.constant 4 : index
    %c3_119 = arith.constant 3 : index
    %63 = memref.load %arg3[%c4_118, %c3_119] : memref<8x5xf32, #tpu.memory_space<smem>>
    %c4_120 = arith.constant 4 : index
    %c4_121 = arith.constant 4 : index
    %64 = memref.load %arg3[%c4_120, %c4_121] : memref<8x5xf32, #tpu.memory_space<smem>>
    %c5_122 = arith.constant 5 : index
    %c0_123 = arith.constant 0 : index
    %65 = memref.load %arg3[%c5_122, %c0_123] : memref<8x5xf32, #tpu.memory_space<smem>>
    %c5_124 = arith.constant 5 : index
    %c1_125 = arith.constant 1 : index
    %66 = memref.load %arg3[%c5_124, %c1_125] : memref<8x5xf32, #tpu.memory_space<smem>>
    %c5_126 = arith.constant 5 : index
    %c2_127 = arith.constant 2 : index
    %67 = memref.load %arg3[%c5_126, %c2_127] : memref<8x5xf32, #tpu.memory_space<smem>>
    %c5_128 = arith.constant 5 : index
    %c3_129 = arith.constant 3 : index
    %68 = memref.load %arg3[%c5_128, %c3_129] : memref<8x5xf32, #tpu.memory_space<smem>>
    %c5_130 = arith.constant 5 : index
    %c4_131 = arith.constant 4 : index
    %69 = memref.load %arg3[%c5_130, %c4_131] : memref<8x5xf32, #tpu.memory_space<smem>>
    %c6_132 = arith.constant 6 : index
    %c0_133 = arith.constant 0 : index
    %70 = memref.load %arg3[%c6_132, %c0_133] : memref<8x5xf32, #tpu.memory_space<smem>>
    %c6_134 = arith.constant 6 : index
    %c1_135 = arith.constant 1 : index
    %71 = memref.load %arg3[%c6_134, %c1_135] : memref<8x5xf32, #tpu.memory_space<smem>>
    %c6_136 = arith.constant 6 : index
    %c2_137 = arith.constant 2 : index
    %72 = memref.load %arg3[%c6_136, %c2_137] : memref<8x5xf32, #tpu.memory_space<smem>>
    %c6_138 = arith.constant 6 : index
    %c3_139 = arith.constant 3 : index
    %73 = memref.load %arg3[%c6_138, %c3_139] : memref<8x5xf32, #tpu.memory_space<smem>>
    %c6_140 = arith.constant 6 : index
    %c4_141 = arith.constant 4 : index
    %74 = memref.load %arg3[%c6_140, %c4_141] : memref<8x5xf32, #tpu.memory_space<smem>>
    %c7_142 = arith.constant 7 : index
    %c0_143 = arith.constant 0 : index
    %75 = memref.load %arg3[%c7_142, %c0_143] : memref<8x5xf32, #tpu.memory_space<smem>>
    %c7_144 = arith.constant 7 : index
    %c1_145 = arith.constant 1 : index
    %76 = memref.load %arg3[%c7_144, %c1_145] : memref<8x5xf32, #tpu.memory_space<smem>>
    %c7_146 = arith.constant 7 : index
    %c2_147 = arith.constant 2 : index
    %77 = memref.load %arg3[%c7_146, %c2_147] : memref<8x5xf32, #tpu.memory_space<smem>>
    %c7_148 = arith.constant 7 : index
    %c3_149 = arith.constant 3 : index
    %78 = memref.load %arg3[%c7_148, %c3_149] : memref<8x5xf32, #tpu.memory_space<smem>>
    %c7_150 = arith.constant 7 : index
    %c4_151 = arith.constant 4 : index
    %79 = memref.load %arg3[%c7_150, %c4_151] : memref<8x5xf32, #tpu.memory_space<smem>>
    %c0_152 = arith.constant 0 : index
    %c0_153 = arith.constant 0 : index
    %80 = vector.load %arg1[%c0_152, %c0_153] : memref<8x128xf32, #tpu.memory_space<vmem>>, vector<8x128xf32>
    %c0_154 = arith.constant 0 : index
    %c0_155 = arith.constant 0 : index
    %81 = vector.load %arg4[%c0_154, %c0_155] : memref<128x66xf32, #tpu.memory_space<vmem>>, vector<128x66xf32>
    %cst = arith.constant dense<0.000000e+00> : vector<8x66xf32>
    %82 = tpu.matmul %80, %81, %cst {dimension_numbers = #tpu.dot_dimension_numbers<[1], [0], [0], [1], [0, 0, 1, 1], [], []>} : vector<8x128xf32>, vector<128x66xf32>, vector<8x66xf32> -> vector<8x66xf32>
    %c0_156 = arith.constant 0 : index
    %c0_157 = arith.constant 0 : index
    %83 = vector.load %arg5[%c0_156, %c0_157] : memref<128x66xf32, #tpu.memory_space<vmem>>, vector<128x66xf32>
    %cst_158 = arith.constant dense<0.000000e+00> : vector<8x66xf32>
    %84 = tpu.matmul %80, %83, %cst_158 {dimension_numbers = #tpu.dot_dimension_numbers<[1], [0], [0], [1], [0, 0, 1, 1], [], []>} : vector<8x128xf32>, vector<128x66xf32>, vector<8x66xf32> -> vector<8x66xf32>
    %85 = vector.extract_strided_slice %82 {offsets = [0, 0], sizes = [8, 64], strides = [1, 1]} : vector<8x66xf32> to vector<8x64xf32>
    %86 = vector.extract_strided_slice %84 {offsets = [0, 0], sizes = [8, 64], strides = [1, 1]} : vector<8x66xf32> to vector<8x64xf32>
    %87 = vector.extract_strided_slice %82 {offsets = [0, 1], sizes = [8, 64], strides = [1, 1]} : vector<8x66xf32> to vector<8x64xf32>
    %88 = vector.extract_strided_slice %84 {offsets = [0, 1], sizes = [8, 64], strides = [1, 1]} : vector<8x66xf32> to vector<8x64xf32>
    %89 = vector.extract_strided_slice %82 {offsets = [0, 2], sizes = [8, 64], strides = [1, 1]} : vector<8x66xf32> to vector<8x64xf32>
    %90 = vector.broadcast %0 : f32 to vector<8x64xf32>
    %91 = arith.mulf %85, %90 : vector<8x64xf32>
    %92 = vector.broadcast %1 : f32 to vector<8x64xf32>
    %93 = arith.mulf %86, %92 : vector<8x64xf32>
    %94 = arith.addf %91, %93 : vector<8x64xf32>
    %95 = vector.broadcast %2 : f32 to vector<8x64xf32>
    %96 = arith.mulf %87, %95 : vector<8x64xf32>
    %97 = arith.addf %94, %96 : vector<8x64xf32>
    %98 = vector.broadcast %3 : f32 to vector<8x64xf32>
    %99 = arith.mulf %88, %98 : vector<8x64xf32>
    %100 = arith.addf %97, %99 : vector<8x64xf32>
    %101 = vector.broadcast %4 : f32 to vector<8x64xf32>
    %102 = arith.mulf %89, %101 : vector<8x64xf32>
    %103 = arith.addf %100, %102 : vector<8x64xf32>
    %104 = vector.broadcast %5 : f32 to vector<8x64xf32>
    %105 = arith.mulf %85, %104 : vector<8x64xf32>
    %106 = vector.broadcast %6 : f32 to vector<8x64xf32>
    %107 = arith.mulf %86, %106 : vector<8x64xf32>
    %108 = arith.addf %105, %107 : vector<8x64xf32>
    %109 = vector.broadcast %7 : f32 to vector<8x64xf32>
    %110 = arith.mulf %87, %109 : vector<8x64xf32>
    %111 = arith.addf %108, %110 : vector<8x64xf32>
    %112 = vector.broadcast %8 : f32 to vector<8x64xf32>
    %113 = arith.mulf %88, %112 : vector<8x64xf32>
    %114 = arith.addf %111, %113 : vector<8x64xf32>
    %115 = vector.broadcast %9 : f32 to vector<8x64xf32>
    %116 = arith.mulf %89, %115 : vector<8x64xf32>
    %117 = arith.addf %114, %116 : vector<8x64xf32>
    %118 = vector.broadcast %10 : f32 to vector<8x64xf32>
    %119 = arith.mulf %85, %118 : vector<8x64xf32>
    %120 = vector.broadcast %11 : f32 to vector<8x64xf32>
    %121 = arith.mulf %86, %120 : vector<8x64xf32>
    %122 = arith.addf %119, %121 : vector<8x64xf32>
    %123 = vector.broadcast %12 : f32 to vector<8x64xf32>
    %124 = arith.mulf %87, %123 : vector<8x64xf32>
    %125 = arith.addf %122, %124 : vector<8x64xf32>
    %126 = vector.broadcast %13 : f32 to vector<8x64xf32>
    %127 = arith.mulf %88, %126 : vector<8x64xf32>
    %128 = arith.addf %125, %127 : vector<8x64xf32>
    %129 = vector.broadcast %14 : f32 to vector<8x64xf32>
    %130 = arith.mulf %89, %129 : vector<8x64xf32>
    %131 = arith.addf %128, %130 : vector<8x64xf32>
    %132 = vector.broadcast %15 : f32 to vector<8x64xf32>
    %133 = arith.mulf %85, %132 : vector<8x64xf32>
    %134 = vector.broadcast %16 : f32 to vector<8x64xf32>
    %135 = arith.mulf %86, %134 : vector<8x64xf32>
    %136 = arith.addf %133, %135 : vector<8x64xf32>
    %137 = vector.broadcast %17 : f32 to vector<8x64xf32>
    %138 = arith.mulf %87, %137 : vector<8x64xf32>
    %139 = arith.addf %136, %138 : vector<8x64xf32>
    %140 = vector.broadcast %18 : f32 to vector<8x64xf32>
    %141 = arith.mulf %88, %140 : vector<8x64xf32>
    %142 = arith.addf %139, %141 : vector<8x64xf32>
    %143 = vector.broadcast %19 : f32 to vector<8x64xf32>
    %144 = arith.mulf %89, %143 : vector<8x64xf32>
    %145 = arith.addf %142, %144 : vector<8x64xf32>
    %146 = vector.broadcast %20 : f32 to vector<8x64xf32>
    %147 = arith.mulf %85, %146 : vector<8x64xf32>
    %148 = vector.broadcast %21 : f32 to vector<8x64xf32>
    %149 = arith.mulf %86, %148 : vector<8x64xf32>
    %150 = arith.addf %147, %149 : vector<8x64xf32>
    %151 = vector.broadcast %22 : f32 to vector<8x64xf32>
    %152 = arith.mulf %87, %151 : vector<8x64xf32>
    %153 = arith.addf %150, %152 : vector<8x64xf32>
    %154 = vector.broadcast %23 : f32 to vector<8x64xf32>
    %155 = arith.mulf %88, %154 : vector<8x64xf32>
    %156 = arith.addf %153, %155 : vector<8x64xf32>
    %157 = vector.broadcast %24 : f32 to vector<8x64xf32>
    %158 = arith.mulf %89, %157 : vector<8x64xf32>
    %159 = arith.addf %156, %158 : vector<8x64xf32>
    %160 = vector.broadcast %25 : f32 to vector<8x64xf32>
    %161 = arith.mulf %85, %160 : vector<8x64xf32>
    %162 = vector.broadcast %26 : f32 to vector<8x64xf32>
    %163 = arith.mulf %86, %162 : vector<8x64xf32>
    %164 = arith.addf %161, %163 : vector<8x64xf32>
    %165 = vector.broadcast %27 : f32 to vector<8x64xf32>
    %166 = arith.mulf %87, %165 : vector<8x64xf32>
    %167 = arith.addf %164, %166 : vector<8x64xf32>
    %168 = vector.broadcast %28 : f32 to vector<8x64xf32>
    %169 = arith.mulf %88, %168 : vector<8x64xf32>
    %170 = arith.addf %167, %169 : vector<8x64xf32>
    %171 = vector.broadcast %29 : f32 to vector<8x64xf32>
    %172 = arith.mulf %89, %171 : vector<8x64xf32>
    %173 = arith.addf %170, %172 : vector<8x64xf32>
    %174 = vector.broadcast %30 : f32 to vector<8x64xf32>
    %175 = arith.mulf %85, %174 : vector<8x64xf32>
    %176 = vector.broadcast %31 : f32 to vector<8x64xf32>
    %177 = arith.mulf %86, %176 : vector<8x64xf32>
    %178 = arith.addf %175, %177 : vector<8x64xf32>
    %179 = vector.broadcast %32 : f32 to vector<8x64xf32>
    %180 = arith.mulf %87, %179 : vector<8x64xf32>
    %181 = arith.addf %178, %180 : vector<8x64xf32>
    %182 = vector.broadcast %33 : f32 to vector<8x64xf32>
    %183 = arith.mulf %88, %182 : vector<8x64xf32>
    %184 = arith.addf %181, %183 : vector<8x64xf32>
    %185 = vector.broadcast %34 : f32 to vector<8x64xf32>
    %186 = arith.mulf %89, %185 : vector<8x64xf32>
    %187 = arith.addf %184, %186 : vector<8x64xf32>
    %188 = vector.broadcast %35 : f32 to vector<8x64xf32>
    %189 = arith.mulf %85, %188 : vector<8x64xf32>
    %190 = vector.broadcast %36 : f32 to vector<8x64xf32>
    %191 = arith.mulf %86, %190 : vector<8x64xf32>
    %192 = arith.addf %189, %191 : vector<8x64xf32>
    %193 = vector.broadcast %37 : f32 to vector<8x64xf32>
    %194 = arith.mulf %87, %193 : vector<8x64xf32>
    %195 = arith.addf %192, %194 : vector<8x64xf32>
    %196 = vector.broadcast %38 : f32 to vector<8x64xf32>
    %197 = arith.mulf %88, %196 : vector<8x64xf32>
    %198 = arith.addf %195, %197 : vector<8x64xf32>
    %199 = vector.broadcast %39 : f32 to vector<8x64xf32>
    %200 = arith.mulf %89, %199 : vector<8x64xf32>
    %201 = arith.addf %198, %200 : vector<8x64xf32>
    %c0_159 = arith.constant 0 : index
    %c0_160 = arith.constant 0 : index
    %202 = vector.load %arg4[%c0_159, %c0_160] : memref<128x66xf32, #tpu.memory_space<vmem>>, vector<64x34xf32>
    %cst_161 = arith.constant dense<0.000000e+00> : vector<8x34xf32>
    %203 = tpu.matmul %103, %202, %cst_161 {dimension_numbers = #tpu.dot_dimension_numbers<[1], [0], [0], [1], [0, 0, 1, 1], [], []>} : vector<8x64xf32>, vector<64x34xf32>, vector<8x34xf32> -> vector<8x34xf32>
    %c0_162 = arith.constant 0 : index
    %c0_163 = arith.constant 0 : index
    %204 = vector.load %arg5[%c0_162, %c0_163] : memref<128x66xf32, #tpu.memory_space<vmem>>, vector<64x34xf32>
    %cst_164 = arith.constant dense<0.000000e+00> : vector<8x34xf32>
    %205 = tpu.matmul %103, %204, %cst_164 {dimension_numbers = #tpu.dot_dimension_numbers<[1], [0], [0], [1], [0, 0, 1, 1], [], []>} : vector<8x64xf32>, vector<64x34xf32>, vector<8x34xf32> -> vector<8x34xf32>
    %206 = vector.extract_strided_slice %203 {offsets = [0, 0], sizes = [8, 32], strides = [1, 1]} : vector<8x34xf32> to vector<8x32xf32>
    %207 = vector.extract_strided_slice %205 {offsets = [0, 0], sizes = [8, 32], strides = [1, 1]} : vector<8x34xf32> to vector<8x32xf32>
    %208 = vector.extract_strided_slice %203 {offsets = [0, 1], sizes = [8, 32], strides = [1, 1]} : vector<8x34xf32> to vector<8x32xf32>
    %209 = vector.extract_strided_slice %205 {offsets = [0, 1], sizes = [8, 32], strides = [1, 1]} : vector<8x34xf32> to vector<8x32xf32>
    %210 = vector.extract_strided_slice %203 {offsets = [0, 2], sizes = [8, 32], strides = [1, 1]} : vector<8x34xf32> to vector<8x32xf32>
    %211 = vector.broadcast %0 : f32 to vector<8x32xf32>
    %212 = arith.mulf %206, %211 : vector<8x32xf32>
    %213 = vector.broadcast %1 : f32 to vector<8x32xf32>
    %214 = arith.mulf %207, %213 : vector<8x32xf32>
    %215 = arith.addf %212, %214 : vector<8x32xf32>
    %216 = vector.broadcast %2 : f32 to vector<8x32xf32>
    %217 = arith.mulf %208, %216 : vector<8x32xf32>
    %218 = arith.addf %215, %217 : vector<8x32xf32>
    %219 = vector.broadcast %3 : f32 to vector<8x32xf32>
    %220 = arith.mulf %209, %219 : vector<8x32xf32>
    %221 = arith.addf %218, %220 : vector<8x32xf32>
    %222 = vector.broadcast %4 : f32 to vector<8x32xf32>
    %223 = arith.mulf %210, %222 : vector<8x32xf32>
    %224 = arith.addf %221, %223 : vector<8x32xf32>
    %225 = vector.broadcast %5 : f32 to vector<8x32xf32>
    %226 = arith.mulf %206, %225 : vector<8x32xf32>
    %227 = vector.broadcast %6 : f32 to vector<8x32xf32>
    %228 = arith.mulf %207, %227 : vector<8x32xf32>
    %229 = arith.addf %226, %228 : vector<8x32xf32>
    %230 = vector.broadcast %7 : f32 to vector<8x32xf32>
    %231 = arith.mulf %208, %230 : vector<8x32xf32>
    %232 = arith.addf %229, %231 : vector<8x32xf32>
    %233 = vector.broadcast %8 : f32 to vector<8x32xf32>
    %234 = arith.mulf %209, %233 : vector<8x32xf32>
    %235 = arith.addf %232, %234 : vector<8x32xf32>
    %236 = vector.broadcast %9 : f32 to vector<8x32xf32>
    %237 = arith.mulf %210, %236 : vector<8x32xf32>
    %238 = arith.addf %235, %237 : vector<8x32xf32>
    %239 = vector.broadcast %10 : f32 to vector<8x32xf32>
    %240 = arith.mulf %206, %239 : vector<8x32xf32>
    %241 = vector.broadcast %11 : f32 to vector<8x32xf32>
    %242 = arith.mulf %207, %241 : vector<8x32xf32>
    %243 = arith.addf %240, %242 : vector<8x32xf32>
    %244 = vector.broadcast %12 : f32 to vector<8x32xf32>
    %245 = arith.mulf %208, %244 : vector<8x32xf32>
    %246 = arith.addf %243, %245 : vector<8x32xf32>
    %247 = vector.broadcast %13 : f32 to vector<8x32xf32>
    %248 = arith.mulf %209, %247 : vector<8x32xf32>
    %249 = arith.addf %246, %248 : vector<8x32xf32>
    %250 = vector.broadcast %14 : f32 to vector<8x32xf32>
    %251 = arith.mulf %210, %250 : vector<8x32xf32>
    %252 = arith.addf %249, %251 : vector<8x32xf32>
    %253 = vector.broadcast %15 : f32 to vector<8x32xf32>
    %254 = arith.mulf %206, %253 : vector<8x32xf32>
    %255 = vector.broadcast %16 : f32 to vector<8x32xf32>
    %256 = arith.mulf %207, %255 : vector<8x32xf32>
    %257 = arith.addf %254, %256 : vector<8x32xf32>
    %258 = vector.broadcast %17 : f32 to vector<8x32xf32>
    %259 = arith.mulf %208, %258 : vector<8x32xf32>
    %260 = arith.addf %257, %259 : vector<8x32xf32>
    %261 = vector.broadcast %18 : f32 to vector<8x32xf32>
    %262 = arith.mulf %209, %261 : vector<8x32xf32>
    %263 = arith.addf %260, %262 : vector<8x32xf32>
    %264 = vector.broadcast %19 : f32 to vector<8x32xf32>
    %265 = arith.mulf %210, %264 : vector<8x32xf32>
    %266 = arith.addf %263, %265 : vector<8x32xf32>
    %267 = vector.broadcast %20 : f32 to vector<8x32xf32>
    %268 = arith.mulf %206, %267 : vector<8x32xf32>
    %269 = vector.broadcast %21 : f32 to vector<8x32xf32>
    %270 = arith.mulf %207, %269 : vector<8x32xf32>
    %271 = arith.addf %268, %270 : vector<8x32xf32>
    %272 = vector.broadcast %22 : f32 to vector<8x32xf32>
    %273 = arith.mulf %208, %272 : vector<8x32xf32>
    %274 = arith.addf %271, %273 : vector<8x32xf32>
    %275 = vector.broadcast %23 : f32 to vector<8x32xf32>
    %276 = arith.mulf %209, %275 : vector<8x32xf32>
    %277 = arith.addf %274, %276 : vector<8x32xf32>
    %278 = vector.broadcast %24 : f32 to vector<8x32xf32>
    %279 = arith.mulf %210, %278 : vector<8x32xf32>
    %280 = arith.addf %277, %279 : vector<8x32xf32>
    %281 = vector.broadcast %25 : f32 to vector<8x32xf32>
    %282 = arith.mulf %206, %281 : vector<8x32xf32>
    %283 = vector.broadcast %26 : f32 to vector<8x32xf32>
    %284 = arith.mulf %207, %283 : vector<8x32xf32>
    %285 = arith.addf %282, %284 : vector<8x32xf32>
    %286 = vector.broadcast %27 : f32 to vector<8x32xf32>
    %287 = arith.mulf %208, %286 : vector<8x32xf32>
    %288 = arith.addf %285, %287 : vector<8x32xf32>
    %289 = vector.broadcast %28 : f32 to vector<8x32xf32>
    %290 = arith.mulf %209, %289 : vector<8x32xf32>
    %291 = arith.addf %288, %290 : vector<8x32xf32>
    %292 = vector.broadcast %29 : f32 to vector<8x32xf32>
    %293 = arith.mulf %210, %292 : vector<8x32xf32>
    %294 = arith.addf %291, %293 : vector<8x32xf32>
    %295 = vector.broadcast %30 : f32 to vector<8x32xf32>
    %296 = arith.mulf %206, %295 : vector<8x32xf32>
    %297 = vector.broadcast %31 : f32 to vector<8x32xf32>
    %298 = arith.mulf %207, %297 : vector<8x32xf32>
    %299 = arith.addf %296, %298 : vector<8x32xf32>
    %300 = vector.broadcast %32 : f32 to vector<8x32xf32>
    %301 = arith.mulf %208, %300 : vector<8x32xf32>
    %302 = arith.addf %299, %301 : vector<8x32xf32>
    %303 = vector.broadcast %33 : f32 to vector<8x32xf32>
    %304 = arith.mulf %209, %303 : vector<8x32xf32>
    %305 = arith.addf %302, %304 : vector<8x32xf32>
    %306 = vector.broadcast %34 : f32 to vector<8x32xf32>
    %307 = arith.mulf %210, %306 : vector<8x32xf32>
    %308 = arith.addf %305, %307 : vector<8x32xf32>
    %309 = vector.broadcast %35 : f32 to vector<8x32xf32>
    %310 = arith.mulf %206, %309 : vector<8x32xf32>
    %311 = vector.broadcast %36 : f32 to vector<8x32xf32>
    %312 = arith.mulf %207, %311 : vector<8x32xf32>
    %313 = arith.addf %310, %312 : vector<8x32xf32>
    %314 = vector.broadcast %37 : f32 to vector<8x32xf32>
    %315 = arith.mulf %208, %314 : vector<8x32xf32>
    %316 = arith.addf %313, %315 : vector<8x32xf32>
    %317 = vector.broadcast %38 : f32 to vector<8x32xf32>
    %318 = arith.mulf %209, %317 : vector<8x32xf32>
    %319 = arith.addf %316, %318 : vector<8x32xf32>
    %320 = vector.broadcast %39 : f32 to vector<8x32xf32>
    %321 = arith.mulf %210, %320 : vector<8x32xf32>
    %322 = arith.addf %319, %321 : vector<8x32xf32>
    %c0_165 = arith.constant 0 : index
    %c0_166 = arith.constant 0 : index
    %323 = vector.load %arg4[%c0_165, %c0_166] : memref<128x66xf32, #tpu.memory_space<vmem>>, vector<32x18xf32>
    %cst_167 = arith.constant dense<0.000000e+00> : vector<8x18xf32>
    %324 = tpu.matmul %224, %323, %cst_167 {dimension_numbers = #tpu.dot_dimension_numbers<[1], [0], [0], [1], [0, 0, 1, 1], [], []>} : vector<8x32xf32>, vector<32x18xf32>, vector<8x18xf32> -> vector<8x18xf32>
    %c0_168 = arith.constant 0 : index
    %c0_169 = arith.constant 0 : index
    %325 = vector.load %arg5[%c0_168, %c0_169] : memref<128x66xf32, #tpu.memory_space<vmem>>, vector<32x18xf32>
    %cst_170 = arith.constant dense<0.000000e+00> : vector<8x18xf32>
    %326 = tpu.matmul %224, %325, %cst_170 {dimension_numbers = #tpu.dot_dimension_numbers<[1], [0], [0], [1], [0, 0, 1, 1], [], []>} : vector<8x32xf32>, vector<32x18xf32>, vector<8x18xf32> -> vector<8x18xf32>
    %327 = vector.extract_strided_slice %324 {offsets = [0, 0], sizes = [8, 16], strides = [1, 1]} : vector<8x18xf32> to vector<8x16xf32>
    %328 = vector.extract_strided_slice %326 {offsets = [0, 0], sizes = [8, 16], strides = [1, 1]} : vector<8x18xf32> to vector<8x16xf32>
    %329 = vector.extract_strided_slice %324 {offsets = [0, 1], sizes = [8, 16], strides = [1, 1]} : vector<8x18xf32> to vector<8x16xf32>
    %330 = vector.extract_strided_slice %326 {offsets = [0, 1], sizes = [8, 16], strides = [1, 1]} : vector<8x18xf32> to vector<8x16xf32>
    %331 = vector.extract_strided_slice %324 {offsets = [0, 2], sizes = [8, 16], strides = [1, 1]} : vector<8x18xf32> to vector<8x16xf32>
    %332 = vector.broadcast %0 : f32 to vector<8x16xf32>
    %333 = arith.mulf %327, %332 : vector<8x16xf32>
    %334 = vector.broadcast %1 : f32 to vector<8x16xf32>
    %335 = arith.mulf %328, %334 : vector<8x16xf32>
    %336 = arith.addf %333, %335 : vector<8x16xf32>
    %337 = vector.broadcast %2 : f32 to vector<8x16xf32>
    %338 = arith.mulf %329, %337 : vector<8x16xf32>
    %339 = arith.addf %336, %338 : vector<8x16xf32>
    %340 = vector.broadcast %3 : f32 to vector<8x16xf32>
    %341 = arith.mulf %330, %340 : vector<8x16xf32>
    %342 = arith.addf %339, %341 : vector<8x16xf32>
    %343 = vector.broadcast %4 : f32 to vector<8x16xf32>
    %344 = arith.mulf %331, %343 : vector<8x16xf32>
    %345 = arith.addf %342, %344 : vector<8x16xf32>
    %346 = vector.broadcast %5 : f32 to vector<8x16xf32>
    %347 = arith.mulf %327, %346 : vector<8x16xf32>
    %348 = vector.broadcast %6 : f32 to vector<8x16xf32>
    %349 = arith.mulf %328, %348 : vector<8x16xf32>
    %350 = arith.addf %347, %349 : vector<8x16xf32>
    %351 = vector.broadcast %7 : f32 to vector<8x16xf32>
    %352 = arith.mulf %329, %351 : vector<8x16xf32>
    %353 = arith.addf %350, %352 : vector<8x16xf32>
    %354 = vector.broadcast %8 : f32 to vector<8x16xf32>
    %355 = arith.mulf %330, %354 : vector<8x16xf32>
    %356 = arith.addf %353, %355 : vector<8x16xf32>
    %357 = vector.broadcast %9 : f32 to vector<8x16xf32>
    %358 = arith.mulf %331, %357 : vector<8x16xf32>
    %359 = arith.addf %356, %358 : vector<8x16xf32>
    %360 = vector.broadcast %10 : f32 to vector<8x16xf32>
    %361 = arith.mulf %327, %360 : vector<8x16xf32>
    %362 = vector.broadcast %11 : f32 to vector<8x16xf32>
    %363 = arith.mulf %328, %362 : vector<8x16xf32>
    %364 = arith.addf %361, %363 : vector<8x16xf32>
    %365 = vector.broadcast %12 : f32 to vector<8x16xf32>
    %366 = arith.mulf %329, %365 : vector<8x16xf32>
    %367 = arith.addf %364, %366 : vector<8x16xf32>
    %368 = vector.broadcast %13 : f32 to vector<8x16xf32>
    %369 = arith.mulf %330, %368 : vector<8x16xf32>
    %370 = arith.addf %367, %369 : vector<8x16xf32>
    %371 = vector.broadcast %14 : f32 to vector<8x16xf32>
    %372 = arith.mulf %331, %371 : vector<8x16xf32>
    %373 = arith.addf %370, %372 : vector<8x16xf32>
    %374 = vector.broadcast %15 : f32 to vector<8x16xf32>
    %375 = arith.mulf %327, %374 : vector<8x16xf32>
    %376 = vector.broadcast %16 : f32 to vector<8x16xf32>
    %377 = arith.mulf %328, %376 : vector<8x16xf32>
    %378 = arith.addf %375, %377 : vector<8x16xf32>
    %379 = vector.broadcast %17 : f32 to vector<8x16xf32>
    %380 = arith.mulf %329, %379 : vector<8x16xf32>
    %381 = arith.addf %378, %380 : vector<8x16xf32>
    %382 = vector.broadcast %18 : f32 to vector<8x16xf32>
    %383 = arith.mulf %330, %382 : vector<8x16xf32>
    %384 = arith.addf %381, %383 : vector<8x16xf32>
    %385 = vector.broadcast %19 : f32 to vector<8x16xf32>
    %386 = arith.mulf %331, %385 : vector<8x16xf32>
    %387 = arith.addf %384, %386 : vector<8x16xf32>
    %388 = vector.broadcast %20 : f32 to vector<8x16xf32>
    %389 = arith.mulf %327, %388 : vector<8x16xf32>
    %390 = vector.broadcast %21 : f32 to vector<8x16xf32>
    %391 = arith.mulf %328, %390 : vector<8x16xf32>
    %392 = arith.addf %389, %391 : vector<8x16xf32>
    %393 = vector.broadcast %22 : f32 to vector<8x16xf32>
    %394 = arith.mulf %329, %393 : vector<8x16xf32>
    %395 = arith.addf %392, %394 : vector<8x16xf32>
    %396 = vector.broadcast %23 : f32 to vector<8x16xf32>
    %397 = arith.mulf %330, %396 : vector<8x16xf32>
    %398 = arith.addf %395, %397 : vector<8x16xf32>
    %399 = vector.broadcast %24 : f32 to vector<8x16xf32>
    %400 = arith.mulf %331, %399 : vector<8x16xf32>
    %401 = arith.addf %398, %400 : vector<8x16xf32>
    %402 = vector.broadcast %25 : f32 to vector<8x16xf32>
    %403 = arith.mulf %327, %402 : vector<8x16xf32>
    %404 = vector.broadcast %26 : f32 to vector<8x16xf32>
    %405 = arith.mulf %328, %404 : vector<8x16xf32>
    %406 = arith.addf %403, %405 : vector<8x16xf32>
    %407 = vector.broadcast %27 : f32 to vector<8x16xf32>
    %408 = arith.mulf %329, %407 : vector<8x16xf32>
    %409 = arith.addf %406, %408 : vector<8x16xf32>
    %410 = vector.broadcast %28 : f32 to vector<8x16xf32>
    %411 = arith.mulf %330, %410 : vector<8x16xf32>
    %412 = arith.addf %409, %411 : vector<8x16xf32>
    %413 = vector.broadcast %29 : f32 to vector<8x16xf32>
    %414 = arith.mulf %331, %413 : vector<8x16xf32>
    %415 = arith.addf %412, %414 : vector<8x16xf32>
    %416 = vector.broadcast %30 : f32 to vector<8x16xf32>
    %417 = arith.mulf %327, %416 : vector<8x16xf32>
    %418 = vector.broadcast %31 : f32 to vector<8x16xf32>
    %419 = arith.mulf %328, %418 : vector<8x16xf32>
    %420 = arith.addf %417, %419 : vector<8x16xf32>
    %421 = vector.broadcast %32 : f32 to vector<8x16xf32>
    %422 = arith.mulf %329, %421 : vector<8x16xf32>
    %423 = arith.addf %420, %422 : vector<8x16xf32>
    %424 = vector.broadcast %33 : f32 to vector<8x16xf32>
    %425 = arith.mulf %330, %424 : vector<8x16xf32>
    %426 = arith.addf %423, %425 : vector<8x16xf32>
    %427 = vector.broadcast %34 : f32 to vector<8x16xf32>
    %428 = arith.mulf %331, %427 : vector<8x16xf32>
    %429 = arith.addf %426, %428 : vector<8x16xf32>
    %430 = vector.broadcast %35 : f32 to vector<8x16xf32>
    %431 = arith.mulf %327, %430 : vector<8x16xf32>
    %432 = vector.broadcast %36 : f32 to vector<8x16xf32>
    %433 = arith.mulf %328, %432 : vector<8x16xf32>
    %434 = arith.addf %431, %433 : vector<8x16xf32>
    %435 = vector.broadcast %37 : f32 to vector<8x16xf32>
    %436 = arith.mulf %329, %435 : vector<8x16xf32>
    %437 = arith.addf %434, %436 : vector<8x16xf32>
    %438 = vector.broadcast %38 : f32 to vector<8x16xf32>
    %439 = arith.mulf %330, %438 : vector<8x16xf32>
    %440 = arith.addf %437, %439 : vector<8x16xf32>
    %441 = vector.broadcast %39 : f32 to vector<8x16xf32>
    %442 = arith.mulf %331, %441 : vector<8x16xf32>
    %443 = arith.addf %440, %442 : vector<8x16xf32>
    %c0_171 = arith.constant 0 : index
    %c0_172 = arith.constant 0 : index
    %444 = vector.load %arg4[%c0_171, %c0_172] : memref<128x66xf32, #tpu.memory_space<vmem>>, vector<16x10xf32>
    %cst_173 = arith.constant dense<0.000000e+00> : vector<8x10xf32>
    %445 = tpu.matmul %345, %444, %cst_173 {dimension_numbers = #tpu.dot_dimension_numbers<[1], [0], [0], [1], [0, 0, 1, 1], [], []>} : vector<8x16xf32>, vector<16x10xf32>, vector<8x10xf32> -> vector<8x10xf32>
    %c0_174 = arith.constant 0 : index
    %c0_175 = arith.constant 0 : index
    %446 = vector.load %arg5[%c0_174, %c0_175] : memref<128x66xf32, #tpu.memory_space<vmem>>, vector<16x10xf32>
    %cst_176 = arith.constant dense<0.000000e+00> : vector<8x10xf32>
    %447 = tpu.matmul %345, %446, %cst_176 {dimension_numbers = #tpu.dot_dimension_numbers<[1], [0], [0], [1], [0, 0, 1, 1], [], []>} : vector<8x16xf32>, vector<16x10xf32>, vector<8x10xf32> -> vector<8x10xf32>
    %448 = vector.extract_strided_slice %445 {offsets = [0, 0], sizes = [8, 8], strides = [1, 1]} : vector<8x10xf32> to vector<8x8xf32>
    %449 = vector.extract_strided_slice %447 {offsets = [0, 0], sizes = [8, 8], strides = [1, 1]} : vector<8x10xf32> to vector<8x8xf32>
    %450 = vector.extract_strided_slice %445 {offsets = [0, 1], sizes = [8, 8], strides = [1, 1]} : vector<8x10xf32> to vector<8x8xf32>
    %451 = vector.extract_strided_slice %447 {offsets = [0, 1], sizes = [8, 8], strides = [1, 1]} : vector<8x10xf32> to vector<8x8xf32>
    %452 = vector.extract_strided_slice %445 {offsets = [0, 2], sizes = [8, 8], strides = [1, 1]} : vector<8x10xf32> to vector<8x8xf32>
    %453 = vector.broadcast %0 : f32 to vector<8x8xf32>
    %454 = arith.mulf %448, %453 : vector<8x8xf32>
    %455 = vector.broadcast %1 : f32 to vector<8x8xf32>
    %456 = arith.mulf %449, %455 : vector<8x8xf32>
    %457 = arith.addf %454, %456 : vector<8x8xf32>
    %458 = vector.broadcast %2 : f32 to vector<8x8xf32>
    %459 = arith.mulf %450, %458 : vector<8x8xf32>
    %460 = arith.addf %457, %459 : vector<8x8xf32>
    %461 = vector.broadcast %3 : f32 to vector<8x8xf32>
    %462 = arith.mulf %451, %461 : vector<8x8xf32>
    %463 = arith.addf %460, %462 : vector<8x8xf32>
    %464 = vector.broadcast %4 : f32 to vector<8x8xf32>
    %465 = arith.mulf %452, %464 : vector<8x8xf32>
    %466 = arith.addf %463, %465 : vector<8x8xf32>
    %467 = vector.broadcast %5 : f32 to vector<8x8xf32>
    %468 = arith.mulf %448, %467 : vector<8x8xf32>
    %469 = vector.broadcast %6 : f32 to vector<8x8xf32>
    %470 = arith.mulf %449, %469 : vector<8x8xf32>
    %471 = arith.addf %468, %470 : vector<8x8xf32>
    %472 = vector.broadcast %7 : f32 to vector<8x8xf32>
    %473 = arith.mulf %450, %472 : vector<8x8xf32>
    %474 = arith.addf %471, %473 : vector<8x8xf32>
    %475 = vector.broadcast %8 : f32 to vector<8x8xf32>
    %476 = arith.mulf %451, %475 : vector<8x8xf32>
    %477 = arith.addf %474, %476 : vector<8x8xf32>
    %478 = vector.broadcast %9 : f32 to vector<8x8xf32>
    %479 = arith.mulf %452, %478 : vector<8x8xf32>
    %480 = arith.addf %477, %479 : vector<8x8xf32>
    %481 = vector.broadcast %10 : f32 to vector<8x8xf32>
    %482 = arith.mulf %448, %481 : vector<8x8xf32>
    %483 = vector.broadcast %11 : f32 to vector<8x8xf32>
    %484 = arith.mulf %449, %483 : vector<8x8xf32>
    %485 = arith.addf %482, %484 : vector<8x8xf32>
    %486 = vector.broadcast %12 : f32 to vector<8x8xf32>
    %487 = arith.mulf %450, %486 : vector<8x8xf32>
    %488 = arith.addf %485, %487 : vector<8x8xf32>
    %489 = vector.broadcast %13 : f32 to vector<8x8xf32>
    %490 = arith.mulf %451, %489 : vector<8x8xf32>
    %491 = arith.addf %488, %490 : vector<8x8xf32>
    %492 = vector.broadcast %14 : f32 to vector<8x8xf32>
    %493 = arith.mulf %452, %492 : vector<8x8xf32>
    %494 = arith.addf %491, %493 : vector<8x8xf32>
    %495 = vector.broadcast %15 : f32 to vector<8x8xf32>
    %496 = arith.mulf %448, %495 : vector<8x8xf32>
    %497 = vector.broadcast %16 : f32 to vector<8x8xf32>
    %498 = arith.mulf %449, %497 : vector<8x8xf32>
    %499 = arith.addf %496, %498 : vector<8x8xf32>
    %500 = vector.broadcast %17 : f32 to vector<8x8xf32>
    %501 = arith.mulf %450, %500 : vector<8x8xf32>
    %502 = arith.addf %499, %501 : vector<8x8xf32>
    %503 = vector.broadcast %18 : f32 to vector<8x8xf32>
    %504 = arith.mulf %451, %503 : vector<8x8xf32>
    %505 = arith.addf %502, %504 : vector<8x8xf32>
    %506 = vector.broadcast %19 : f32 to vector<8x8xf32>
    %507 = arith.mulf %452, %506 : vector<8x8xf32>
    %508 = arith.addf %505, %507 : vector<8x8xf32>
    %509 = vector.broadcast %20 : f32 to vector<8x8xf32>
    %510 = arith.mulf %448, %509 : vector<8x8xf32>
    %511 = vector.broadcast %21 : f32 to vector<8x8xf32>
    %512 = arith.mulf %449, %511 : vector<8x8xf32>
    %513 = arith.addf %510, %512 : vector<8x8xf32>
    %514 = vector.broadcast %22 : f32 to vector<8x8xf32>
    %515 = arith.mulf %450, %514 : vector<8x8xf32>
    %516 = arith.addf %513, %515 : vector<8x8xf32>
    %517 = vector.broadcast %23 : f32 to vector<8x8xf32>
    %518 = arith.mulf %451, %517 : vector<8x8xf32>
    %519 = arith.addf %516, %518 : vector<8x8xf32>
    %520 = vector.broadcast %24 : f32 to vector<8x8xf32>
    %521 = arith.mulf %452, %520 : vector<8x8xf32>
    %522 = arith.addf %519, %521 : vector<8x8xf32>
    %523 = vector.broadcast %25 : f32 to vector<8x8xf32>
    %524 = arith.mulf %448, %523 : vector<8x8xf32>
    %525 = vector.broadcast %26 : f32 to vector<8x8xf32>
    %526 = arith.mulf %449, %525 : vector<8x8xf32>
    %527 = arith.addf %524, %526 : vector<8x8xf32>
    %528 = vector.broadcast %27 : f32 to vector<8x8xf32>
    %529 = arith.mulf %450, %528 : vector<8x8xf32>
    %530 = arith.addf %527, %529 : vector<8x8xf32>
    %531 = vector.broadcast %28 : f32 to vector<8x8xf32>
    %532 = arith.mulf %451, %531 : vector<8x8xf32>
    %533 = arith.addf %530, %532 : vector<8x8xf32>
    %534 = vector.broadcast %29 : f32 to vector<8x8xf32>
    %535 = arith.mulf %452, %534 : vector<8x8xf32>
    %536 = arith.addf %533, %535 : vector<8x8xf32>
    %537 = vector.broadcast %30 : f32 to vector<8x8xf32>
    %538 = arith.mulf %448, %537 : vector<8x8xf32>
    %539 = vector.broadcast %31 : f32 to vector<8x8xf32>
    %540 = arith.mulf %449, %539 : vector<8x8xf32>
    %541 = arith.addf %538, %540 : vector<8x8xf32>
    %542 = vector.broadcast %32 : f32 to vector<8x8xf32>
    %543 = arith.mulf %450, %542 : vector<8x8xf32>
    %544 = arith.addf %541, %543 : vector<8x8xf32>
    %545 = vector.broadcast %33 : f32 to vector<8x8xf32>
    %546 = arith.mulf %451, %545 : vector<8x8xf32>
    %547 = arith.addf %544, %546 : vector<8x8xf32>
    %548 = vector.broadcast %34 : f32 to vector<8x8xf32>
    %549 = arith.mulf %452, %548 : vector<8x8xf32>
    %550 = arith.addf %547, %549 : vector<8x8xf32>
    %551 = vector.broadcast %35 : f32 to vector<8x8xf32>
    %552 = arith.mulf %448, %551 : vector<8x8xf32>
    %553 = vector.broadcast %36 : f32 to vector<8x8xf32>
    %554 = arith.mulf %449, %553 : vector<8x8xf32>
    %555 = arith.addf %552, %554 : vector<8x8xf32>
    %556 = vector.broadcast %37 : f32 to vector<8x8xf32>
    %557 = arith.mulf %450, %556 : vector<8x8xf32>
    %558 = arith.addf %555, %557 : vector<8x8xf32>
    %559 = vector.broadcast %38 : f32 to vector<8x8xf32>
    %560 = arith.mulf %451, %559 : vector<8x8xf32>
    %561 = arith.addf %558, %560 : vector<8x8xf32>
    %562 = vector.broadcast %39 : f32 to vector<8x8xf32>
    %563 = arith.mulf %452, %562 : vector<8x8xf32>
    %564 = arith.addf %561, %563 : vector<8x8xf32>
    %565 = vector.broadcast %40 : f32 to vector<8x8xf32>
    %566 = arith.mulf %466, %565 : vector<8x8xf32>
    %567 = vector.broadcast %45 : f32 to vector<8x8xf32>
    %568 = arith.mulf %480, %567 : vector<8x8xf32>
    %569 = arith.addf %566, %568 : vector<8x8xf32>
    %570 = vector.broadcast %50 : f32 to vector<8x8xf32>
    %571 = arith.mulf %494, %570 : vector<8x8xf32>
    %572 = arith.addf %569, %571 : vector<8x8xf32>
    %573 = vector.broadcast %55 : f32 to vector<8x8xf32>
    %574 = arith.mulf %508, %573 : vector<8x8xf32>
    %575 = arith.addf %572, %574 : vector<8x8xf32>
    %576 = vector.broadcast %60 : f32 to vector<8x8xf32>
    %577 = arith.mulf %522, %576 : vector<8x8xf32>
    %578 = arith.addf %575, %577 : vector<8x8xf32>
    %579 = vector.broadcast %65 : f32 to vector<8x8xf32>
    %580 = arith.mulf %536, %579 : vector<8x8xf32>
    %581 = arith.addf %578, %580 : vector<8x8xf32>
    %582 = vector.broadcast %70 : f32 to vector<8x8xf32>
    %583 = arith.mulf %550, %582 : vector<8x8xf32>
    %584 = arith.addf %581, %583 : vector<8x8xf32>
    %585 = vector.broadcast %75 : f32 to vector<8x8xf32>
    %586 = arith.mulf %564, %585 : vector<8x8xf32>
    %587 = arith.addf %584, %586 : vector<8x8xf32>
    %c0_177 = arith.constant 0 : index
    %c0_178 = arith.constant 0 : index
    %588 = vector.load %arg6[%c0_177, %c0_178] : memref<320x128xf32, #tpu.memory_space<vmem>>, vector<8x16xf32>
    %cst_179 = arith.constant dense<0.000000e+00> : vector<8x16xf32>
    %589 = tpu.matmul %587, %588, %cst_179 {dimension_numbers = #tpu.dot_dimension_numbers<[1], [0], [0], [1], [0, 0, 1, 1], [], []>} : vector<8x8xf32>, vector<8x16xf32>, vector<8x16xf32> -> vector<8x16xf32>
    %590 = vector.broadcast %41 : f32 to vector<8x8xf32>
    %591 = arith.mulf %466, %590 : vector<8x8xf32>
    %592 = vector.broadcast %46 : f32 to vector<8x8xf32>
    %593 = arith.mulf %480, %592 : vector<8x8xf32>
    %594 = arith.addf %591, %593 : vector<8x8xf32>
    %595 = vector.broadcast %51 : f32 to vector<8x8xf32>
    %596 = arith.mulf %494, %595 : vector<8x8xf32>
    %597 = arith.addf %594, %596 : vector<8x8xf32>
    %598 = vector.broadcast %56 : f32 to vector<8x8xf32>
    %599 = arith.mulf %508, %598 : vector<8x8xf32>
    %600 = arith.addf %597, %599 : vector<8x8xf32>
    %601 = vector.broadcast %61 : f32 to vector<8x8xf32>
    %602 = arith.mulf %522, %601 : vector<8x8xf32>
    %603 = arith.addf %600, %602 : vector<8x8xf32>
    %604 = vector.broadcast %66 : f32 to vector<8x8xf32>
    %605 = arith.mulf %536, %604 : vector<8x8xf32>
    %606 = arith.addf %603, %605 : vector<8x8xf32>
    %607 = vector.broadcast %71 : f32 to vector<8x8xf32>
    %608 = arith.mulf %550, %607 : vector<8x8xf32>
    %609 = arith.addf %606, %608 : vector<8x8xf32>
    %610 = vector.broadcast %76 : f32 to vector<8x8xf32>
    %611 = arith.mulf %564, %610 : vector<8x8xf32>
    %612 = arith.addf %609, %611 : vector<8x8xf32>
    %c64 = arith.constant 64 : index
    %c0_180 = arith.constant 0 : index
    %613 = vector.load %arg6[%c64, %c0_180] : memref<320x128xf32, #tpu.memory_space<vmem>>, vector<8x16xf32>
    %cst_181 = arith.constant dense<0.000000e+00> : vector<8x16xf32>
    %614 = tpu.matmul %612, %613, %cst_181 {dimension_numbers = #tpu.dot_dimension_numbers<[1], [0], [0], [1], [0, 0, 1, 1], [], []>} : vector<8x8xf32>, vector<8x16xf32>, vector<8x16xf32> -> vector<8x16xf32>
    %615 = arith.addf %589, %614 : vector<8x16xf32>
    %616 = vector.broadcast %42 : f32 to vector<8x8xf32>
    %617 = arith.mulf %466, %616 : vector<8x8xf32>
    %618 = vector.broadcast %47 : f32 to vector<8x8xf32>
    %619 = arith.mulf %480, %618 : vector<8x8xf32>
    %620 = arith.addf %617, %619 : vector<8x8xf32>
    %621 = vector.broadcast %52 : f32 to vector<8x8xf32>
    %622 = arith.mulf %494, %621 : vector<8x8xf32>
    %623 = arith.addf %620, %622 : vector<8x8xf32>
    %624 = vector.broadcast %57 : f32 to vector<8x8xf32>
    %625 = arith.mulf %508, %624 : vector<8x8xf32>
    %626 = arith.addf %623, %625 : vector<8x8xf32>
    %627 = vector.broadcast %62 : f32 to vector<8x8xf32>
    %628 = arith.mulf %522, %627 : vector<8x8xf32>
    %629 = arith.addf %626, %628 : vector<8x8xf32>
    %630 = vector.broadcast %67 : f32 to vector<8x8xf32>
    %631 = arith.mulf %536, %630 : vector<8x8xf32>
    %632 = arith.addf %629, %631 : vector<8x8xf32>
    %633 = vector.broadcast %72 : f32 to vector<8x8xf32>
    %634 = arith.mulf %550, %633 : vector<8x8xf32>
    %635 = arith.addf %632, %634 : vector<8x8xf32>
    %636 = vector.broadcast %77 : f32 to vector<8x8xf32>
    %637 = arith.mulf %564, %636 : vector<8x8xf32>
    %638 = arith.addf %635, %637 : vector<8x8xf32>
    %c128 = arith.constant 128 : index
    %c0_182 = arith.constant 0 : index
    %639 = vector.load %arg6[%c128, %c0_182] : memref<320x128xf32, #tpu.memory_space<vmem>>, vector<8x16xf32>
    %cst_183 = arith.constant dense<0.000000e+00> : vector<8x16xf32>
    %640 = tpu.matmul %638, %639, %cst_183 {dimension_numbers = #tpu.dot_dimension_numbers<[1], [0], [0], [1], [0, 0, 1, 1], [], []>} : vector<8x8xf32>, vector<8x16xf32>, vector<8x16xf32> -> vector<8x16xf32>
    %641 = arith.addf %615, %640 : vector<8x16xf32>
    %642 = vector.broadcast %43 : f32 to vector<8x8xf32>
    %643 = arith.mulf %466, %642 : vector<8x8xf32>
    %644 = vector.broadcast %48 : f32 to vector<8x8xf32>
    %645 = arith.mulf %480, %644 : vector<8x8xf32>
    %646 = arith.addf %643, %645 : vector<8x8xf32>
    %647 = vector.broadcast %53 : f32 to vector<8x8xf32>
    %648 = arith.mulf %494, %647 : vector<8x8xf32>
    %649 = arith.addf %646, %648 : vector<8x8xf32>
    %650 = vector.broadcast %58 : f32 to vector<8x8xf32>
    %651 = arith.mulf %508, %650 : vector<8x8xf32>
    %652 = arith.addf %649, %651 : vector<8x8xf32>
    %653 = vector.broadcast %63 : f32 to vector<8x8xf32>
    %654 = arith.mulf %522, %653 : vector<8x8xf32>
    %655 = arith.addf %652, %654 : vector<8x8xf32>
    %656 = vector.broadcast %68 : f32 to vector<8x8xf32>
    %657 = arith.mulf %536, %656 : vector<8x8xf32>
    %658 = arith.addf %655, %657 : vector<8x8xf32>
    %659 = vector.broadcast %73 : f32 to vector<8x8xf32>
    %660 = arith.mulf %550, %659 : vector<8x8xf32>
    %661 = arith.addf %658, %660 : vector<8x8xf32>
    %662 = vector.broadcast %78 : f32 to vector<8x8xf32>
    %663 = arith.mulf %564, %662 : vector<8x8xf32>
    %664 = arith.addf %661, %663 : vector<8x8xf32>
    %c192 = arith.constant 192 : index
    %c0_184 = arith.constant 0 : index
    %665 = vector.load %arg6[%c192, %c0_184] : memref<320x128xf32, #tpu.memory_space<vmem>>, vector<8x16xf32>
    %cst_185 = arith.constant dense<0.000000e+00> : vector<8x16xf32>
    %666 = tpu.matmul %664, %665, %cst_185 {dimension_numbers = #tpu.dot_dimension_numbers<[1], [0], [0], [1], [0, 0, 1, 1], [], []>} : vector<8x8xf32>, vector<8x16xf32>, vector<8x16xf32> -> vector<8x16xf32>
    %667 = arith.addf %641, %666 : vector<8x16xf32>
    %668 = vector.broadcast %44 : f32 to vector<8x8xf32>
    %669 = arith.mulf %466, %668 : vector<8x8xf32>
    %670 = vector.broadcast %49 : f32 to vector<8x8xf32>
    %671 = arith.mulf %480, %670 : vector<8x8xf32>
    %672 = arith.addf %669, %671 : vector<8x8xf32>
    %673 = vector.broadcast %54 : f32 to vector<8x8xf32>
    %674 = arith.mulf %494, %673 : vector<8x8xf32>
    %675 = arith.addf %672, %674 : vector<8x8xf32>
    %676 = vector.broadcast %59 : f32 to vector<8x8xf32>
    %677 = arith.mulf %508, %676 : vector<8x8xf32>
    %678 = arith.addf %675, %677 : vector<8x8xf32>
    %679 = vector.broadcast %64 : f32 to vector<8x8xf32>
    %680 = arith.mulf %522, %679 : vector<8x8xf32>
    %681 = arith.addf %678, %680 : vector<8x8xf32>
    %682 = vector.broadcast %69 : f32 to vector<8x8xf32>
    %683 = arith.mulf %536, %682 : vector<8x8xf32>
    %684 = arith.addf %681, %683 : vector<8x8xf32>
    %685 = vector.broadcast %74 : f32 to vector<8x8xf32>
    %686 = arith.mulf %550, %685 : vector<8x8xf32>
    %687 = arith.addf %684, %686 : vector<8x8xf32>
    %688 = vector.broadcast %79 : f32 to vector<8x8xf32>
    %689 = arith.mulf %564, %688 : vector<8x8xf32>
    %690 = arith.addf %687, %689 : vector<8x8xf32>
    %c256 = arith.constant 256 : index
    %c0_186 = arith.constant 0 : index
    %691 = vector.load %arg6[%c256, %c0_186] : memref<320x128xf32, #tpu.memory_space<vmem>>, vector<8x16xf32>
    %cst_187 = arith.constant dense<0.000000e+00> : vector<8x16xf32>
    %692 = tpu.matmul %690, %691, %cst_187 {dimension_numbers = #tpu.dot_dimension_numbers<[1], [0], [0], [1], [0, 0, 1, 1], [], []>} : vector<8x8xf32>, vector<8x16xf32>, vector<8x16xf32> -> vector<8x16xf32>
    %693 = arith.addf %667, %692 : vector<8x16xf32>
    %694 = vector.broadcast %40 : f32 to vector<8x16xf32>
    %695 = arith.mulf %693, %694 : vector<8x16xf32>
    %696 = vector.broadcast %45 : f32 to vector<8x16xf32>
    %697 = arith.mulf %359, %696 : vector<8x16xf32>
    %698 = arith.addf %695, %697 : vector<8x16xf32>
    %699 = vector.broadcast %50 : f32 to vector<8x16xf32>
    %700 = arith.mulf %373, %699 : vector<8x16xf32>
    %701 = arith.addf %698, %700 : vector<8x16xf32>
    %702 = vector.broadcast %55 : f32 to vector<8x16xf32>
    %703 = arith.mulf %387, %702 : vector<8x16xf32>
    %704 = arith.addf %701, %703 : vector<8x16xf32>
    %705 = vector.broadcast %60 : f32 to vector<8x16xf32>
    %706 = arith.mulf %401, %705 : vector<8x16xf32>
    %707 = arith.addf %704, %706 : vector<8x16xf32>
    %708 = vector.broadcast %65 : f32 to vector<8x16xf32>
    %709 = arith.mulf %415, %708 : vector<8x16xf32>
    %710 = arith.addf %707, %709 : vector<8x16xf32>
    %711 = vector.broadcast %70 : f32 to vector<8x16xf32>
    %712 = arith.mulf %429, %711 : vector<8x16xf32>
    %713 = arith.addf %710, %712 : vector<8x16xf32>
    %714 = vector.broadcast %75 : f32 to vector<8x16xf32>
    %715 = arith.mulf %443, %714 : vector<8x16xf32>
    %716 = arith.addf %713, %715 : vector<8x16xf32>
    %c0_188 = arith.constant 0 : index
    %c0_189 = arith.constant 0 : index
    %717 = vector.load %arg6[%c0_188, %c0_189] : memref<320x128xf32, #tpu.memory_space<vmem>>, vector<16x32xf32>
    %cst_190 = arith.constant dense<0.000000e+00> : vector<8x32xf32>
    %718 = tpu.matmul %716, %717, %cst_190 {dimension_numbers = #tpu.dot_dimension_numbers<[1], [0], [0], [1], [0, 0, 1, 1], [], []>} : vector<8x16xf32>, vector<16x32xf32>, vector<8x32xf32> -> vector<8x32xf32>
    %719 = vector.broadcast %41 : f32 to vector<8x16xf32>
    %720 = arith.mulf %693, %719 : vector<8x16xf32>
    %721 = vector.broadcast %46 : f32 to vector<8x16xf32>
    %722 = arith.mulf %359, %721 : vector<8x16xf32>
    %723 = arith.addf %720, %722 : vector<8x16xf32>
    %724 = vector.broadcast %51 : f32 to vector<8x16xf32>
    %725 = arith.mulf %373, %724 : vector<8x16xf32>
    %726 = arith.addf %723, %725 : vector<8x16xf32>
    %727 = vector.broadcast %56 : f32 to vector<8x16xf32>
    %728 = arith.mulf %387, %727 : vector<8x16xf32>
    %729 = arith.addf %726, %728 : vector<8x16xf32>
    %730 = vector.broadcast %61 : f32 to vector<8x16xf32>
    %731 = arith.mulf %401, %730 : vector<8x16xf32>
    %732 = arith.addf %729, %731 : vector<8x16xf32>
    %733 = vector.broadcast %66 : f32 to vector<8x16xf32>
    %734 = arith.mulf %415, %733 : vector<8x16xf32>
    %735 = arith.addf %732, %734 : vector<8x16xf32>
    %736 = vector.broadcast %71 : f32 to vector<8x16xf32>
    %737 = arith.mulf %429, %736 : vector<8x16xf32>
    %738 = arith.addf %735, %737 : vector<8x16xf32>
    %739 = vector.broadcast %76 : f32 to vector<8x16xf32>
    %740 = arith.mulf %443, %739 : vector<8x16xf32>
    %741 = arith.addf %738, %740 : vector<8x16xf32>
    %c64_191 = arith.constant 64 : index
    %c0_192 = arith.constant 0 : index
    %742 = vector.load %arg6[%c64_191, %c0_192] : memref<320x128xf32, #tpu.memory_space<vmem>>, vector<16x32xf32>
    %cst_193 = arith.constant dense<0.000000e+00> : vector<8x32xf32>
    %743 = tpu.matmul %741, %742, %cst_193 {dimension_numbers = #tpu.dot_dimension_numbers<[1], [0], [0], [1], [0, 0, 1, 1], [], []>} : vector<8x16xf32>, vector<16x32xf32>, vector<8x32xf32> -> vector<8x32xf32>
    %744 = arith.addf %718, %743 : vector<8x32xf32>
    %745 = vector.broadcast %42 : f32 to vector<8x16xf32>
    %746 = arith.mulf %693, %745 : vector<8x16xf32>
    %747 = vector.broadcast %47 : f32 to vector<8x16xf32>
    %748 = arith.mulf %359, %747 : vector<8x16xf32>
    %749 = arith.addf %746, %748 : vector<8x16xf32>
    %750 = vector.broadcast %52 : f32 to vector<8x16xf32>
    %751 = arith.mulf %373, %750 : vector<8x16xf32>
    %752 = arith.addf %749, %751 : vector<8x16xf32>
    %753 = vector.broadcast %57 : f32 to vector<8x16xf32>
    %754 = arith.mulf %387, %753 : vector<8x16xf32>
    %755 = arith.addf %752, %754 : vector<8x16xf32>
    %756 = vector.broadcast %62 : f32 to vector<8x16xf32>
    %757 = arith.mulf %401, %756 : vector<8x16xf32>
    %758 = arith.addf %755, %757 : vector<8x16xf32>
    %759 = vector.broadcast %67 : f32 to vector<8x16xf32>
    %760 = arith.mulf %415, %759 : vector<8x16xf32>
    %761 = arith.addf %758, %760 : vector<8x16xf32>
    %762 = vector.broadcast %72 : f32 to vector<8x16xf32>
    %763 = arith.mulf %429, %762 : vector<8x16xf32>
    %764 = arith.addf %761, %763 : vector<8x16xf32>
    %765 = vector.broadcast %77 : f32 to vector<8x16xf32>
    %766 = arith.mulf %443, %765 : vector<8x16xf32>
    %767 = arith.addf %764, %766 : vector<8x16xf32>
    %c128_194 = arith.constant 128 : index
    %c0_195 = arith.constant 0 : index
    %768 = vector.load %arg6[%c128_194, %c0_195] : memref<320x128xf32, #tpu.memory_space<vmem>>, vector<16x32xf32>
    %cst_196 = arith.constant dense<0.000000e+00> : vector<8x32xf32>
    %769 = tpu.matmul %767, %768, %cst_196 {dimension_numbers = #tpu.dot_dimension_numbers<[1], [0], [0], [1], [0, 0, 1, 1], [], []>} : vector<8x16xf32>, vector<16x32xf32>, vector<8x32xf32> -> vector<8x32xf32>
    %770 = arith.addf %744, %769 : vector<8x32xf32>
    %771 = vector.broadcast %43 : f32 to vector<8x16xf32>
    %772 = arith.mulf %693, %771 : vector<8x16xf32>
    %773 = vector.broadcast %48 : f32 to vector<8x16xf32>
    %774 = arith.mulf %359, %773 : vector<8x16xf32>
    %775 = arith.addf %772, %774 : vector<8x16xf32>
    %776 = vector.broadcast %53 : f32 to vector<8x16xf32>
    %777 = arith.mulf %373, %776 : vector<8x16xf32>
    %778 = arith.addf %775, %777 : vector<8x16xf32>
    %779 = vector.broadcast %58 : f32 to vector<8x16xf32>
    %780 = arith.mulf %387, %779 : vector<8x16xf32>
    %781 = arith.addf %778, %780 : vector<8x16xf32>
    %782 = vector.broadcast %63 : f32 to vector<8x16xf32>
    %783 = arith.mulf %401, %782 : vector<8x16xf32>
    %784 = arith.addf %781, %783 : vector<8x16xf32>
    %785 = vector.broadcast %68 : f32 to vector<8x16xf32>
    %786 = arith.mulf %415, %785 : vector<8x16xf32>
    %787 = arith.addf %784, %786 : vector<8x16xf32>
    %788 = vector.broadcast %73 : f32 to vector<8x16xf32>
    %789 = arith.mulf %429, %788 : vector<8x16xf32>
    %790 = arith.addf %787, %789 : vector<8x16xf32>
    %791 = vector.broadcast %78 : f32 to vector<8x16xf32>
    %792 = arith.mulf %443, %791 : vector<8x16xf32>
    %793 = arith.addf %790, %792 : vector<8x16xf32>
    %c192_197 = arith.constant 192 : index
    %c0_198 = arith.constant 0 : index
    %794 = vector.load %arg6[%c192_197, %c0_198] : memref<320x128xf32, #tpu.memory_space<vmem>>, vector<16x32xf32>
    %cst_199 = arith.constant dense<0.000000e+00> : vector<8x32xf32>
    %795 = tpu.matmul %793, %794, %cst_199 {dimension_numbers = #tpu.dot_dimension_numbers<[1], [0], [0], [1], [0, 0, 1, 1], [], []>} : vector<8x16xf32>, vector<16x32xf32>, vector<8x32xf32> -> vector<8x32xf32>
    %796 = arith.addf %770, %795 : vector<8x32xf32>
    %797 = vector.broadcast %44 : f32 to vector<8x16xf32>
    %798 = arith.mulf %693, %797 : vector<8x16xf32>
    %799 = vector.broadcast %49 : f32 to vector<8x16xf32>
    %800 = arith.mulf %359, %799 : vector<8x16xf32>
    %801 = arith.addf %798, %800 : vector<8x16xf32>
    %802 = vector.broadcast %54 : f32 to vector<8x16xf32>
    %803 = arith.mulf %373, %802 : vector<8x16xf32>
    %804 = arith.addf %801, %803 : vector<8x16xf32>
    %805 = vector.broadcast %59 : f32 to vector<8x16xf32>
    %806 = arith.mulf %387, %805 : vector<8x16xf32>
    %807 = arith.addf %804, %806 : vector<8x16xf32>
    %808 = vector.broadcast %64 : f32 to vector<8x16xf32>
    %809 = arith.mulf %401, %808 : vector<8x16xf32>
    %810 = arith.addf %807, %809 : vector<8x16xf32>
    %811 = vector.broadcast %69 : f32 to vector<8x16xf32>
    %812 = arith.mulf %415, %811 : vector<8x16xf32>
    %813 = arith.addf %810, %812 : vector<8x16xf32>
    %814 = vector.broadcast %74 : f32 to vector<8x16xf32>
    %815 = arith.mulf %429, %814 : vector<8x16xf32>
    %816 = arith.addf %813, %815 : vector<8x16xf32>
    %817 = vector.broadcast %79 : f32 to vector<8x16xf32>
    %818 = arith.mulf %443, %817 : vector<8x16xf32>
    %819 = arith.addf %816, %818 : vector<8x16xf32>
    %c256_200 = arith.constant 256 : index
    %c0_201 = arith.constant 0 : index
    %820 = vector.load %arg6[%c256_200, %c0_201] : memref<320x128xf32, #tpu.memory_space<vmem>>, vector<16x32xf32>
    %cst_202 = arith.constant dense<0.000000e+00> : vector<8x32xf32>
    %821 = tpu.matmul %819, %820, %cst_202 {dimension_numbers = #tpu.dot_dimension_numbers<[1], [0], [0], [1], [0, 0, 1, 1], [], []>} : vector<8x16xf32>, vector<16x32xf32>, vector<8x32xf32> -> vector<8x32xf32>
    %822 = arith.addf %796, %821 : vector<8x32xf32>
    %823 = vector.broadcast %40 : f32 to vector<8x32xf32>
    %824 = arith.mulf %822, %823 : vector<8x32xf32>
    %825 = vector.broadcast %45 : f32 to vector<8x32xf32>
    %826 = arith.mulf %238, %825 : vector<8x32xf32>
    %827 = arith.addf %824, %826 : vector<8x32xf32>
    %828 = vector.broadcast %50 : f32 to vector<8x32xf32>
    %829 = arith.mulf %252, %828 : vector<8x32xf32>
    %830 = arith.addf %827, %829 : vector<8x32xf32>
    %831 = vector.broadcast %55 : f32 to vector<8x32xf32>
    %832 = arith.mulf %266, %831 : vector<8x32xf32>
    %833 = arith.addf %830, %832 : vector<8x32xf32>
    %834 = vector.broadcast %60 : f32 to vector<8x32xf32>
    %835 = arith.mulf %280, %834 : vector<8x32xf32>
    %836 = arith.addf %833, %835 : vector<8x32xf32>
    %837 = vector.broadcast %65 : f32 to vector<8x32xf32>
    %838 = arith.mulf %294, %837 : vector<8x32xf32>
    %839 = arith.addf %836, %838 : vector<8x32xf32>
    %840 = vector.broadcast %70 : f32 to vector<8x32xf32>
    %841 = arith.mulf %308, %840 : vector<8x32xf32>
    %842 = arith.addf %839, %841 : vector<8x32xf32>
    %843 = vector.broadcast %75 : f32 to vector<8x32xf32>
    %844 = arith.mulf %322, %843 : vector<8x32xf32>
    %845 = arith.addf %842, %844 : vector<8x32xf32>
    %c0_203 = arith.constant 0 : index
    %c0_204 = arith.constant 0 : index
    %846 = vector.load %arg6[%c0_203, %c0_204] : memref<320x128xf32, #tpu.memory_space<vmem>>, vector<32x64xf32>
    %cst_205 = arith.constant dense<0.000000e+00> : vector<8x64xf32>
    %847 = tpu.matmul %845, %846, %cst_205 {dimension_numbers = #tpu.dot_dimension_numbers<[1], [0], [0], [1], [0, 0, 1, 1], [], []>} : vector<8x32xf32>, vector<32x64xf32>, vector<8x64xf32> -> vector<8x64xf32>
    %848 = vector.broadcast %41 : f32 to vector<8x32xf32>
    %849 = arith.mulf %822, %848 : vector<8x32xf32>
    %850 = vector.broadcast %46 : f32 to vector<8x32xf32>
    %851 = arith.mulf %238, %850 : vector<8x32xf32>
    %852 = arith.addf %849, %851 : vector<8x32xf32>
    %853 = vector.broadcast %51 : f32 to vector<8x32xf32>
    %854 = arith.mulf %252, %853 : vector<8x32xf32>
    %855 = arith.addf %852, %854 : vector<8x32xf32>
    %856 = vector.broadcast %56 : f32 to vector<8x32xf32>
    %857 = arith.mulf %266, %856 : vector<8x32xf32>
    %858 = arith.addf %855, %857 : vector<8x32xf32>
    %859 = vector.broadcast %61 : f32 to vector<8x32xf32>
    %860 = arith.mulf %280, %859 : vector<8x32xf32>
    %861 = arith.addf %858, %860 : vector<8x32xf32>
    %862 = vector.broadcast %66 : f32 to vector<8x32xf32>
    %863 = arith.mulf %294, %862 : vector<8x32xf32>
    %864 = arith.addf %861, %863 : vector<8x32xf32>
    %865 = vector.broadcast %71 : f32 to vector<8x32xf32>
    %866 = arith.mulf %308, %865 : vector<8x32xf32>
    %867 = arith.addf %864, %866 : vector<8x32xf32>
    %868 = vector.broadcast %76 : f32 to vector<8x32xf32>
    %869 = arith.mulf %322, %868 : vector<8x32xf32>
    %870 = arith.addf %867, %869 : vector<8x32xf32>
    %c64_206 = arith.constant 64 : index
    %c0_207 = arith.constant 0 : index
    %871 = vector.load %arg6[%c64_206, %c0_207] : memref<320x128xf32, #tpu.memory_space<vmem>>, vector<32x64xf32>
    %cst_208 = arith.constant dense<0.000000e+00> : vector<8x64xf32>
    %872 = tpu.matmul %870, %871, %cst_208 {dimension_numbers = #tpu.dot_dimension_numbers<[1], [0], [0], [1], [0, 0, 1, 1], [], []>} : vector<8x32xf32>, vector<32x64xf32>, vector<8x64xf32> -> vector<8x64xf32>
    %873 = arith.addf %847, %872 : vector<8x64xf32>
    %874 = vector.broadcast %42 : f32 to vector<8x32xf32>
    %875 = arith.mulf %822, %874 : vector<8x32xf32>
    %876 = vector.broadcast %47 : f32 to vector<8x32xf32>
    %877 = arith.mulf %238, %876 : vector<8x32xf32>
    %878 = arith.addf %875, %877 : vector<8x32xf32>
    %879 = vector.broadcast %52 : f32 to vector<8x32xf32>
    %880 = arith.mulf %252, %879 : vector<8x32xf32>
    %881 = arith.addf %878, %880 : vector<8x32xf32>
    %882 = vector.broadcast %57 : f32 to vector<8x32xf32>
    %883 = arith.mulf %266, %882 : vector<8x32xf32>
    %884 = arith.addf %881, %883 : vector<8x32xf32>
    %885 = vector.broadcast %62 : f32 to vector<8x32xf32>
    %886 = arith.mulf %280, %885 : vector<8x32xf32>
    %887 = arith.addf %884, %886 : vector<8x32xf32>
    %888 = vector.broadcast %67 : f32 to vector<8x32xf32>
    %889 = arith.mulf %294, %888 : vector<8x32xf32>
    %890 = arith.addf %887, %889 : vector<8x32xf32>
    %891 = vector.broadcast %72 : f32 to vector<8x32xf32>
    %892 = arith.mulf %308, %891 : vector<8x32xf32>
    %893 = arith.addf %890, %892 : vector<8x32xf32>
    %894 = vector.broadcast %77 : f32 to vector<8x32xf32>
    %895 = arith.mulf %322, %894 : vector<8x32xf32>
    %896 = arith.addf %893, %895 : vector<8x32xf32>
    %c128_209 = arith.constant 128 : index
    %c0_210 = arith.constant 0 : index
    %897 = vector.load %arg6[%c128_209, %c0_210] : memref<320x128xf32, #tpu.memory_space<vmem>>, vector<32x64xf32>
    %cst_211 = arith.constant dense<0.000000e+00> : vector<8x64xf32>
    %898 = tpu.matmul %896, %897, %cst_211 {dimension_numbers = #tpu.dot_dimension_numbers<[1], [0], [0], [1], [0, 0, 1, 1], [], []>} : vector<8x32xf32>, vector<32x64xf32>, vector<8x64xf32> -> vector<8x64xf32>
    %899 = arith.addf %873, %898 : vector<8x64xf32>
    %900 = vector.broadcast %43 : f32 to vector<8x32xf32>
    %901 = arith.mulf %822, %900 : vector<8x32xf32>
    %902 = vector.broadcast %48 : f32 to vector<8x32xf32>
    %903 = arith.mulf %238, %902 : vector<8x32xf32>
    %904 = arith.addf %901, %903 : vector<8x32xf32>
    %905 = vector.broadcast %53 : f32 to vector<8x32xf32>
    %906 = arith.mulf %252, %905 : vector<8x32xf32>
    %907 = arith.addf %904, %906 : vector<8x32xf32>
    %908 = vector.broadcast %58 : f32 to vector<8x32xf32>
    %909 = arith.mulf %266, %908 : vector<8x32xf32>
    %910 = arith.addf %907, %909 : vector<8x32xf32>
    %911 = vector.broadcast %63 : f32 to vector<8x32xf32>
    %912 = arith.mulf %280, %911 : vector<8x32xf32>
    %913 = arith.addf %910, %912 : vector<8x32xf32>
    %914 = vector.broadcast %68 : f32 to vector<8x32xf32>
    %915 = arith.mulf %294, %914 : vector<8x32xf32>
    %916 = arith.addf %913, %915 : vector<8x32xf32>
    %917 = vector.broadcast %73 : f32 to vector<8x32xf32>
    %918 = arith.mulf %308, %917 : vector<8x32xf32>
    %919 = arith.addf %916, %918 : vector<8x32xf32>
    %920 = vector.broadcast %78 : f32 to vector<8x32xf32>
    %921 = arith.mulf %322, %920 : vector<8x32xf32>
    %922 = arith.addf %919, %921 : vector<8x32xf32>
    %c192_212 = arith.constant 192 : index
    %c0_213 = arith.constant 0 : index
    %923 = vector.load %arg6[%c192_212, %c0_213] : memref<320x128xf32, #tpu.memory_space<vmem>>, vector<32x64xf32>
    %cst_214 = arith.constant dense<0.000000e+00> : vector<8x64xf32>
    %924 = tpu.matmul %922, %923, %cst_214 {dimension_numbers = #tpu.dot_dimension_numbers<[1], [0], [0], [1], [0, 0, 1, 1], [], []>} : vector<8x32xf32>, vector<32x64xf32>, vector<8x64xf32> -> vector<8x64xf32>
    %925 = arith.addf %899, %924 : vector<8x64xf32>
    %926 = vector.broadcast %44 : f32 to vector<8x32xf32>
    %927 = arith.mulf %822, %926 : vector<8x32xf32>
    %928 = vector.broadcast %49 : f32 to vector<8x32xf32>
    %929 = arith.mulf %238, %928 : vector<8x32xf32>
    %930 = arith.addf %927, %929 : vector<8x32xf32>
    %931 = vector.broadcast %54 : f32 to vector<8x32xf32>
    %932 = arith.mulf %252, %931 : vector<8x32xf32>
    %933 = arith.addf %930, %932 : vector<8x32xf32>
    %934 = vector.broadcast %59 : f32 to vector<8x32xf32>
    %935 = arith.mulf %266, %934 : vector<8x32xf32>
    %936 = arith.addf %933, %935 : vector<8x32xf32>
    %937 = vector.broadcast %64 : f32 to vector<8x32xf32>
    %938 = arith.mulf %280, %937 : vector<8x32xf32>
    %939 = arith.addf %936, %938 : vector<8x32xf32>
    %940 = vector.broadcast %69 : f32 to vector<8x32xf32>
    %941 = arith.mulf %294, %940 : vector<8x32xf32>
    %942 = arith.addf %939, %941 : vector<8x32xf32>
    %943 = vector.broadcast %74 : f32 to vector<8x32xf32>
    %944 = arith.mulf %308, %943 : vector<8x32xf32>
    %945 = arith.addf %942, %944 : vector<8x32xf32>
    %946 = vector.broadcast %79 : f32 to vector<8x32xf32>
    %947 = arith.mulf %322, %946 : vector<8x32xf32>
    %948 = arith.addf %945, %947 : vector<8x32xf32>
    %c256_215 = arith.constant 256 : index
    %c0_216 = arith.constant 0 : index
    %949 = vector.load %arg6[%c256_215, %c0_216] : memref<320x128xf32, #tpu.memory_space<vmem>>, vector<32x64xf32>
    %cst_217 = arith.constant dense<0.000000e+00> : vector<8x64xf32>
    %950 = tpu.matmul %948, %949, %cst_217 {dimension_numbers = #tpu.dot_dimension_numbers<[1], [0], [0], [1], [0, 0, 1, 1], [], []>} : vector<8x32xf32>, vector<32x64xf32>, vector<8x64xf32> -> vector<8x64xf32>
    %951 = arith.addf %925, %950 : vector<8x64xf32>
    %952 = vector.broadcast %40 : f32 to vector<8x64xf32>
    %953 = arith.mulf %951, %952 : vector<8x64xf32>
    %954 = vector.broadcast %45 : f32 to vector<8x64xf32>
    %955 = arith.mulf %117, %954 : vector<8x64xf32>
    %956 = arith.addf %953, %955 : vector<8x64xf32>
    %957 = vector.broadcast %50 : f32 to vector<8x64xf32>
    %958 = arith.mulf %131, %957 : vector<8x64xf32>
    %959 = arith.addf %956, %958 : vector<8x64xf32>
    %960 = vector.broadcast %55 : f32 to vector<8x64xf32>
    %961 = arith.mulf %145, %960 : vector<8x64xf32>
    %962 = arith.addf %959, %961 : vector<8x64xf32>
    %963 = vector.broadcast %60 : f32 to vector<8x64xf32>
    %964 = arith.mulf %159, %963 : vector<8x64xf32>
    %965 = arith.addf %962, %964 : vector<8x64xf32>
    %966 = vector.broadcast %65 : f32 to vector<8x64xf32>
    %967 = arith.mulf %173, %966 : vector<8x64xf32>
    %968 = arith.addf %965, %967 : vector<8x64xf32>
    %969 = vector.broadcast %70 : f32 to vector<8x64xf32>
    %970 = arith.mulf %187, %969 : vector<8x64xf32>
    %971 = arith.addf %968, %970 : vector<8x64xf32>
    %972 = vector.broadcast %75 : f32 to vector<8x64xf32>
    %973 = arith.mulf %201, %972 : vector<8x64xf32>
    %974 = arith.addf %971, %973 : vector<8x64xf32>
    %c0_218 = arith.constant 0 : index
    %c0_219 = arith.constant 0 : index
    %975 = vector.load %arg6[%c0_218, %c0_219] : memref<320x128xf32, #tpu.memory_space<vmem>>, vector<64x128xf32>
    %cst_220 = arith.constant dense<0.000000e+00> : vector<8x128xf32>
    %976 = tpu.matmul %974, %975, %cst_220 {dimension_numbers = #tpu.dot_dimension_numbers<[1], [0], [0], [1], [0, 0, 1, 1], [], []>} : vector<8x64xf32>, vector<64x128xf32>, vector<8x128xf32> -> vector<8x128xf32>
    %977 = vector.broadcast %41 : f32 to vector<8x64xf32>
    %978 = arith.mulf %951, %977 : vector<8x64xf32>
    %979 = vector.broadcast %46 : f32 to vector<8x64xf32>
    %980 = arith.mulf %117, %979 : vector<8x64xf32>
    %981 = arith.addf %978, %980 : vector<8x64xf32>
    %982 = vector.broadcast %51 : f32 to vector<8x64xf32>
    %983 = arith.mulf %131, %982 : vector<8x64xf32>
    %984 = arith.addf %981, %983 : vector<8x64xf32>
    %985 = vector.broadcast %56 : f32 to vector<8x64xf32>
    %986 = arith.mulf %145, %985 : vector<8x64xf32>
    %987 = arith.addf %984, %986 : vector<8x64xf32>
    %988 = vector.broadcast %61 : f32 to vector<8x64xf32>
    %989 = arith.mulf %159, %988 : vector<8x64xf32>
    %990 = arith.addf %987, %989 : vector<8x64xf32>
    %991 = vector.broadcast %66 : f32 to vector<8x64xf32>
    %992 = arith.mulf %173, %991 : vector<8x64xf32>
    %993 = arith.addf %990, %992 : vector<8x64xf32>
    %994 = vector.broadcast %71 : f32 to vector<8x64xf32>
    %995 = arith.mulf %187, %994 : vector<8x64xf32>
    %996 = arith.addf %993, %995 : vector<8x64xf32>
    %997 = vector.broadcast %76 : f32 to vector<8x64xf32>
    %998 = arith.mulf %201, %997 : vector<8x64xf32>
    %999 = arith.addf %996, %998 : vector<8x64xf32>
    %c64_221 = arith.constant 64 : index
    %c0_222 = arith.constant 0 : index
    %1000 = vector.load %arg6[%c64_221, %c0_222] : memref<320x128xf32, #tpu.memory_space<vmem>>, vector<64x128xf32>
    %cst_223 = arith.constant dense<0.000000e+00> : vector<8x128xf32>
    %1001 = tpu.matmul %999, %1000, %cst_223 {dimension_numbers = #tpu.dot_dimension_numbers<[1], [0], [0], [1], [0, 0, 1, 1], [], []>} : vector<8x64xf32>, vector<64x128xf32>, vector<8x128xf32> -> vector<8x128xf32>
    %1002 = arith.addf %976, %1001 : vector<8x128xf32>
    %1003 = vector.broadcast %42 : f32 to vector<8x64xf32>
    %1004 = arith.mulf %951, %1003 : vector<8x64xf32>
    %1005 = vector.broadcast %47 : f32 to vector<8x64xf32>
    %1006 = arith.mulf %117, %1005 : vector<8x64xf32>
    %1007 = arith.addf %1004, %1006 : vector<8x64xf32>
    %1008 = vector.broadcast %52 : f32 to vector<8x64xf32>
    %1009 = arith.mulf %131, %1008 : vector<8x64xf32>
    %1010 = arith.addf %1007, %1009 : vector<8x64xf32>
    %1011 = vector.broadcast %57 : f32 to vector<8x64xf32>
    %1012 = arith.mulf %145, %1011 : vector<8x64xf32>
    %1013 = arith.addf %1010, %1012 : vector<8x64xf32>
    %1014 = vector.broadcast %62 : f32 to vector<8x64xf32>
    %1015 = arith.mulf %159, %1014 : vector<8x64xf32>
    %1016 = arith.addf %1013, %1015 : vector<8x64xf32>
    %1017 = vector.broadcast %67 : f32 to vector<8x64xf32>
    %1018 = arith.mulf %173, %1017 : vector<8x64xf32>
    %1019 = arith.addf %1016, %1018 : vector<8x64xf32>
    %1020 = vector.broadcast %72 : f32 to vector<8x64xf32>
    %1021 = arith.mulf %187, %1020 : vector<8x64xf32>
    %1022 = arith.addf %1019, %1021 : vector<8x64xf32>
    %1023 = vector.broadcast %77 : f32 to vector<8x64xf32>
    %1024 = arith.mulf %201, %1023 : vector<8x64xf32>
    %1025 = arith.addf %1022, %1024 : vector<8x64xf32>
    %c128_224 = arith.constant 128 : index
    %c0_225 = arith.constant 0 : index
    %1026 = vector.load %arg6[%c128_224, %c0_225] : memref<320x128xf32, #tpu.memory_space<vmem>>, vector<64x128xf32>
    %cst_226 = arith.constant dense<0.000000e+00> : vector<8x128xf32>
    %1027 = tpu.matmul %1025, %1026, %cst_226 {dimension_numbers = #tpu.dot_dimension_numbers<[1], [0], [0], [1], [0, 0, 1, 1], [], []>} : vector<8x64xf32>, vector<64x128xf32>, vector<8x128xf32> -> vector<8x128xf32>
    %1028 = arith.addf %1002, %1027 : vector<8x128xf32>
    %1029 = vector.broadcast %43 : f32 to vector<8x64xf32>
    %1030 = arith.mulf %951, %1029 : vector<8x64xf32>
    %1031 = vector.broadcast %48 : f32 to vector<8x64xf32>
    %1032 = arith.mulf %117, %1031 : vector<8x64xf32>
    %1033 = arith.addf %1030, %1032 : vector<8x64xf32>
    %1034 = vector.broadcast %53 : f32 to vector<8x64xf32>
    %1035 = arith.mulf %131, %1034 : vector<8x64xf32>
    %1036 = arith.addf %1033, %1035 : vector<8x64xf32>
    %1037 = vector.broadcast %58 : f32 to vector<8x64xf32>
    %1038 = arith.mulf %145, %1037 : vector<8x64xf32>
    %1039 = arith.addf %1036, %1038 : vector<8x64xf32>
    %1040 = vector.broadcast %63 : f32 to vector<8x64xf32>
    %1041 = arith.mulf %159, %1040 : vector<8x64xf32>
    %1042 = arith.addf %1039, %1041 : vector<8x64xf32>
    %1043 = vector.broadcast %68 : f32 to vector<8x64xf32>
    %1044 = arith.mulf %173, %1043 : vector<8x64xf32>
    %1045 = arith.addf %1042, %1044 : vector<8x64xf32>
    %1046 = vector.broadcast %73 : f32 to vector<8x64xf32>
    %1047 = arith.mulf %187, %1046 : vector<8x64xf32>
    %1048 = arith.addf %1045, %1047 : vector<8x64xf32>
    %1049 = vector.broadcast %78 : f32 to vector<8x64xf32>
    %1050 = arith.mulf %201, %1049 : vector<8x64xf32>
    %1051 = arith.addf %1048, %1050 : vector<8x64xf32>
    %c192_227 = arith.constant 192 : index
    %c0_228 = arith.constant 0 : index
    %1052 = vector.load %arg6[%c192_227, %c0_228] : memref<320x128xf32, #tpu.memory_space<vmem>>, vector<64x128xf32>
    %cst_229 = arith.constant dense<0.000000e+00> : vector<8x128xf32>
    %1053 = tpu.matmul %1051, %1052, %cst_229 {dimension_numbers = #tpu.dot_dimension_numbers<[1], [0], [0], [1], [0, 0, 1, 1], [], []>} : vector<8x64xf32>, vector<64x128xf32>, vector<8x128xf32> -> vector<8x128xf32>
    %1054 = arith.addf %1028, %1053 : vector<8x128xf32>
    %1055 = vector.broadcast %44 : f32 to vector<8x64xf32>
    %1056 = arith.mulf %951, %1055 : vector<8x64xf32>
    %1057 = vector.broadcast %49 : f32 to vector<8x64xf32>
    %1058 = arith.mulf %117, %1057 : vector<8x64xf32>
    %1059 = arith.addf %1056, %1058 : vector<8x64xf32>
    %1060 = vector.broadcast %54 : f32 to vector<8x64xf32>
    %1061 = arith.mulf %131, %1060 : vector<8x64xf32>
    %1062 = arith.addf %1059, %1061 : vector<8x64xf32>
    %1063 = vector.broadcast %59 : f32 to vector<8x64xf32>
    %1064 = arith.mulf %145, %1063 : vector<8x64xf32>
    %1065 = arith.addf %1062, %1064 : vector<8x64xf32>
    %1066 = vector.broadcast %64 : f32 to vector<8x64xf32>
    %1067 = arith.mulf %159, %1066 : vector<8x64xf32>
    %1068 = arith.addf %1065, %1067 : vector<8x64xf32>
    %1069 = vector.broadcast %69 : f32 to vector<8x64xf32>
    %1070 = arith.mulf %173, %1069 : vector<8x64xf32>
    %1071 = arith.addf %1068, %1070 : vector<8x64xf32>
    %1072 = vector.broadcast %74 : f32 to vector<8x64xf32>
    %1073 = arith.mulf %187, %1072 : vector<8x64xf32>
    %1074 = arith.addf %1071, %1073 : vector<8x64xf32>
    %1075 = vector.broadcast %79 : f32 to vector<8x64xf32>
    %1076 = arith.mulf %201, %1075 : vector<8x64xf32>
    %1077 = arith.addf %1074, %1076 : vector<8x64xf32>
    %c256_230 = arith.constant 256 : index
    %c0_231 = arith.constant 0 : index
    %1078 = vector.load %arg6[%c256_230, %c0_231] : memref<320x128xf32, #tpu.memory_space<vmem>>, vector<64x128xf32>
    %cst_232 = arith.constant dense<0.000000e+00> : vector<8x128xf32>
    %1079 = tpu.matmul %1077, %1078, %cst_232 {dimension_numbers = #tpu.dot_dimension_numbers<[1], [0], [0], [1], [0, 0, 1, 1], [], []>} : vector<8x64xf32>, vector<64x128xf32>, vector<8x128xf32> -> vector<8x128xf32>
    %1080 = arith.addf %1054, %1079 : vector<8x128xf32>
    %c0_233 = arith.constant 0 : index
    %c0_234 = arith.constant 0 : index
    %1081 = vector.load %arg7[%c0_233, %c0_234] : memref<8x128xf32, #tpu.memory_space<vmem>>, vector<8x128xf32>
    tpu.vector_store %arg7[%c0_233, %c0_234], %1080 {strides = array<i32>} : memref<8x128xf32, #tpu.memory_space<vmem>>, vector<8x128xf32>,
    return
  }
  func.func @transform_0(%arg0: i32) -> (i32, i32) {
    %c0_i32 = arith.constant 0 : i32
    %c0_i32_0 = arith.constant 0 : i32
    return %arg0, %c0_i32 : i32, i32
  }
  func.func @transform_1(%arg0: i32) -> (i32, i32) {
    %c0_i32 = arith.constant 0 : i32
    %c0_i32_0 = arith.constant 0 : i32
    %c0_i32_1 = arith.constant 0 : i32
    return %c0_i32, %c0_i32_0 : i32, i32
  }
  func.func @transform_2(%arg0: i32) -> (i32, i32) {
    %c0_i32 = arith.constant 0 : i32
    %c0_i32_0 = arith.constant 0 : i32
    %c0_i32_1 = arith.constant 0 : i32
    return %c0_i32, %c0_i32_0 : i32, i32
  }
  func.func @transform_3(%arg0: i32) -> (i32, i32) {
    %c0_i32 = arith.constant 0 : i32
    %c0_i32_0 = arith.constant 0 : i32
    %c0_i32_1 = arith.constant 0 : i32
    return %c0_i32, %c0_i32_0 : i32, i32
  }
  func.func @transform_4(%arg0: i32) -> (i32, i32) {
    %c0_i32 = arith.constant 0 : i32
    %c0_i32_0 = arith.constant 0 : i32
    %c0_i32_1 = arith.constant 0 : i32
    return %c0_i32, %c0_i32_0 : i32, i32
  }
  func.func @transform_5(%arg0: i32) -> (i32, i32) {
    %c0_i32 = arith.constant 0 : i32
    %c0_i32_0 = arith.constant 0 : i32
    %c0_i32_1 = arith.constant 0 : i32
    return %c0_i32, %c0_i32_0 : i32, i32
  }
  func.func @transform_6(%arg0: i32) -> (i32, i32) {
    %c0_i32 = arith.constant 0 : i32
    %c0_i32_0 = arith.constant 0 : i32
    return %arg0, %c0_i32 : i32, i32
  }
}

</mosaic_0001>

<bundles_post_ra>
// kernel: transform_network_1d_forward.1
= control target key start
LH: loop header
LB: loop body
LE: loop exit
PB: predicated region body
PF: predicated region fallthrough
CT: control target
= control target key end

     0   :  { %s6454_s0 = inlined_call_operand.hbm [shape: f32[16,128], index: 0, kind: input, shape index: {}]   ;;  %s6455_s1 = inlined_call_operand.hbm [shape: f32[8,5], index: 1, kind: input, shape index: {}]   ;;  %s6456_s2 = inlined_call_operand.hbm [shape: f32[8,5], index: 2, kind: input, shape index: {}]   ;;  %s6457_s3 = inlined_call_operand.hbm [shape: f32[128,66], index: 3, kind: input, shape index: {}]   ;;  %s6458_s4 = inlined_call_operand.hbm [shape: f32[128,66], index: 4, kind: input, shape index: {}]   ;;  %s6459_s5 = inlined_call_operand.hbm [shape: f32[320,128], index: 5, kind: input, shape index: {}]   ;;  %s6460_s6 = inlined_call_operand.hbm [shape: f32[16,128], index: 6, kind: output, shape index: {}]  }
   0x1   :  { %6582 = sst [smem:[#allocation102_spill]] %s6454_s0 }
   0x2   :  { %6583 = sst [smem:[#allocation103_spill]] %s6455_s1 }
   0x3   :  { %6584 = sst [smem:[#allocation104_spill]] %s6456_s2 }
   0x4   :  { %6585 = sst [smem:[#allocation105_spill]] %s6457_s3 }
   0x5   :  { %6586 = sst [smem:[#allocation106_spill]] %s6458_s4 }
   0x6   :  { %6587 = sst [smem:[#allocation107_spill]] %s6459_s5 }
   0x7   :  { %6588 = sst [smem:[#allocation108_spill]] %s6460_s6 }
   0x8   :  { %11 = vsyncpa [#allocation3], 0 }
   0x9   :  { %13 = vsyncpa [#allocation3 + $0x1], 0 }
   0xa   :  { %14 = vsyncpa [#allocation5], 0 }
   0xb   :  { %15 = vsyncpa [#allocation8], 0 }
   0xc   :  { %16 = vsyncpa [#allocation10], 0 }
   0xd   :  { %17 = vsyncpa [#allocation13], 0 }
   0xe   :  { %18 = vsyncpa [#allocation4], 0 }
   0xf   :  { %20 = vsyncpa [#allocation4 + $0x1], 0  ;;  %s4789_s21 = smov 0   ;;  %s4791_s22 = smov 0  }
  0x10   :  { %s4793_s23 = smov 0   ;;  %s4795_s24 = smov 0  }
  0x11 LB: > { %6589 = sst [smem:[#allocation21_spill]] %s4727_s21  ;;  %s4741_s25 = smov [#allocation9]   ;;  %s4739_s24 = sphi %s4795_s24, %s6849_s24   ;;  %s4735_s23 = sphi %s4793_s23, %s6852_s23   ;;  %s4731_s22 = sphi %s4791_s22, %s6851_s22   ;;  %s4727_s21 = sphi %s4789_s21, %s6850_s21  }
  0x12   : > { %6590 = sst [smem:[#allocation22_spill]] %s4731_s22  ;;  %s218_s26 = sshll.u32 %s4741_s25, 4  ;;  %s219_s26 = int_to_ptr.vmem [resolvable:$true] %s218_s26 }
  0x13   : > { %6591 = sst [smem:[#allocation23_spill]] %s4735_s23  ;;  %s4810_s27 = sadd.s32 4294967295, %s4739_s24  }
  0x14   : > { %6592 = sst [smem:[#allocation24_spill]] %s4739_s24  ;;  %p3784_p0 = scmp.ge.s32.totalorder %s4739_s24, 1 }
  0x15   : > { %6593 = sst [smem:[#allocation25_spill]] %s4810_s27  ;;  %p6461_p1 = scmp.eq.s32.totalorder %s4810_s27, 0 }
  0x16   : > { %p188_p2 = scmp.lt.s32.totalorder %s4739_s24, 3  ;;  %s4742_s30 = smov [#allocation11]  }
  0x17   : > { %s231_s7 = sshll.u32 %s4742_s30, 4  ;;  %s4743_s8 = smov [#allocation12]   ;;  %s4828_s7 = int_to_ptr.vmem [resolvable:$true] %s231_s7 }
  0x18   : > { %p4815_p3 = pnand %p3784_p0, %p188_p2  ;;  %s4830_s9 = sshll.u32 %s4743_s8, 4  ;;  %s245_s9 = int_to_ptr.vmem [resolvable:$true] %s4830_s9 }
  0x19   : > { %s4542_s10 = scalar_lea.vmem %s219_s26, 2048  ;;  %p4550_p11 = scmp.lt.s32.totalorder %s219_s26, %s219_s26 }
  0x1a   : > { %s6594_s28 = scalar_select %p4815_p3, 1, 0 }
  0x1b   : > { %p4450_p5 = pneg %p4815_p3  ;;  %p4543_p8 = scmp.ne.s32.totalorder %s219_s26, %s4542_s10 }
  0x1c   : > { %p4551_p12 = scmp.lt.s32.totalorder %s4542_s10, %s4542_s10 }
  0x1d   : > { %p4824_p6 = pnand %p4450_p5, %p6461_p1 }
  0x1e   : > { %p4552_p13 = por %p4551_p12, %p4550_p11 }
  0x1f   : > { %p4533_p7 = pneg %p4824_p6 }
  0x21   : > { %p4545_p9 = pnand %p4543_p8, %p4533_p7 }
  0x23   : > { %p4546_p10 = pneg %p4545_p9 }
  0x25   : > { %p4553_p0 = pnand %p4552_p13, %p4546_p10 }
  0x27   : > { %4556 = shalt.err (!%p4553_p0)
}
  0x28   : > { %s4744_s11 = smov 128   ;;  %s4745_s12 = smov 8  }
  0x29   : > { %s6596_s3 = sld [smem:[#allocation105_spill]]  ;;  %s4746_s15 = smov [#allocation6]  }
  0x2a   : > { %s6597_s1 = sld [smem:[#allocation103_spill]]  ;;  %s4747_s18 = smov [#allocation7]  }
  0x2b   : > { %s6598_s2 = sld [smem:[#allocation104_spill]]  ;;  %s4590_s25 = scalar_lea.vmem %s4828_s7, 2048 }
  0x2c   : > { %p4591_p2 = scmp.ne.s32.totalorder %s4828_s7, %s4590_s25  ;;  %p4598_p9 = scmp.lt.s32.totalorder %s4828_s7, %s4828_s7 }
  0x2d   : > { %p4599_p10 = scmp.lt.s32.totalorder %s4590_s25, %s4590_s25 }
  0x2e   : > { %p4593_p5 = pnand %p4591_p2, %p4533_p7 }
  0x2f   : > { %4459 = dma.hbm_to_vmem [thread:$0]  (!%p4824_p6), %s6596_s3, 2048, %s219_s26, [#allocation10], %s4744_s11, %s4744_s11, %s4745_s12  }
  0x30   : > { %4453 = dma.hbm_to_smem (!%p4824_p6), %s6597_s1, 128, %s4746_s15, [#allocation5]  }
  0x31   : > { %4456 = dma.hbm_to_smem (!%p4824_p6), %s6598_s2, 128, %s4747_s18, [#allocation8]  }
  0x32   : > { %p4594_p8 = pneg %p4593_p5  ;;  %p4600_p11 = por %p4599_p10, %p4598_p9 }
  0x34   : > { %p4601_p12 = pnand %p4600_p11, %p4594_p8 }
  0x36   : > { %4604 = shalt.err (!%p4601_p12)
}
  0x37   : > { %s6599_s4 = sld [smem:[#allocation106_spill]]  ;;  %s4616_s8 = scalar_lea.vmem %s245_s9, 5120 }
  0x38   : > { %p4617_p13 = scmp.ne.s32.totalorder %s245_s9, %s4616_s8  ;;  %p4624_p5 = scmp.lt.s32.totalorder %s245_s9, %s245_s9 }
  0x39   : > { %p4625_p8 = scmp.lt.s32.totalorder %s4616_s8, %s4616_s8 }
  0x3a   : > { %p4619_p0 = pnand %p4617_p13, %p4533_p7 }
  0x3b   : > { %p4626_p9 = por %p4625_p8, %p4624_p5 }
  0x3c   : > { %p4620_p2 = pneg %p4619_p0 }
  0x3d   : > { %4462 = dma.hbm_to_vmem [thread:$0]  (!%p4824_p6), %s6599_s4, 2048, %s4828_s7, [#allocation10], %s4744_s11, %s4744_s11, %s4745_s12  }
  0x3e   : > { %p4627_p10 = pnand %p4626_p9, %p4620_p2 }
  0x40   : > { %4630 = shalt.err (!%p4627_p10)
}
  0x41   : > { %s6600_s5 = sld [smem:[#allocation107_spill]]  ;;  %s3783_s29 = sadd.s32 4294967294, %s4739_s24  }
  0x42   : > { %s4885_s7 = sadd.s32 1, %s4739_s24   ;;  %s33_s14 = sadd.s32 1, %s4735_s23 }
  0x43   : > { %6601 = sst [smem:[#allocation26_spill]] %s4885_s7  ;;  %s30_s15 = ssub.s32 %s4739_s24, %s4885_s7 }
  0x44   : > { %p40_p7 = scmp.ne.s32.totalorder %s4735_s23, %s4731_s22  ;;  %p31_p11 = scmp.eq.s32.totalorder %s30_s15, 0 }
  0x45   : > { %p41_p12 = scmp.eq.s32.totalorder %s4739_s24, 0  ;;  %p46_p13 = scmp.ne.s32.totalorder %s4731_s22, %s4727_s21 }
  0x46   : > { %p175_p0 = scmp.eq.s32.totalorder %s4810_s27, 1  ;;  %p181_p8 = scmp.eq.s32.totalorder %s3783_s29, 1 }
  0x47   : > { %4465 = dma.hbm_to_vmem [thread:$0]  (!%p4824_p6), %s6600_s5, 5120, %s245_s9, [#allocation13], %s4744_s11, %s4744_s11, %s4745_s12  }
  0x48   : > { %s4897_s16 = scalar_select %p31_p11, %s4735_s23, %s33_s14  }
  0x49   : > { %p42_p2 = por %p41_p12, %p40_p7  ;;  %p4901_p5 = por %p6461_p1, %p46_p13 }
  0x4a   : > { %6602 = sst [smem:[#allocation27_spill]] %s4897_s16  ;;  %p4905_p6 = por %p175_p0, %p40_p7 }
  0x4b   : > { %s6603_s17 = scalar_select %p4901_p5, 1, 0 }
  0x4c   : > { %s6604_s9 = scalar_select %p4905_p6, 1, 0 }
  0x4d   : > { %p4479_p9 = scmp.lt.s32.totalorder %s4739_s24, 2  ;;  %s258_s11 = sand.u32 1, %s4735_s23  }
  0x4e   : > { %6605 = sst [smem:[#allocation28_spill]] %s6604_s9  ;;  %p4911_p10 = por %p181_p8, %p46_p13 }
  0x4f   : > { %s3791_s18 = sshll.u32 %s258_s11, 3  ;;  %s3792_s19 = sshll.u32 %s4739_s24, 7 }
  0x50   : > { %s6606_s12 = scalar_select %p4911_p10, 1, 0 }
  0x51   : > { %s6608_s0 = sld [smem:[#allocation102_spill]]  ;;  %s262_s30 = scalar_lea.vmem [#allocation2], %s3791_s18 }
  0x52   : > { %6607 = sst [smem:[#allocation29_spill]] %s6606_s12  ;;  %s269_s8 = sshll.u32 %s262_s30, 4  ;;  %s270_s8 = int_to_ptr.vmem [resolvable:$true] %s269_s8 }
  0x53   : > { %p4921_p7 = pnand %p4479_p9, %p42_p2  ;;  %s259_s13 = scalar_lea.sflag [#allocation3], %s258_s11 }
  0x55   : > { %p4633_p12 = pneg %p4921_p7 }
  0x57   : > { %s4919_s26 = scalar_lea.hbm %s6608_s0, %s3792_s19  ;;  %s4636_s19 = scalar_lea.hbm %s6608_s0, 256 }
  0x58   : > { %s4631_s29 = scalar_lea.hbm %s4919_s26, 128  ;;  %p4637_p2 = scmp.lt.s32.totalorder %s4919_s26, %s6608_s0 }
  0x59   : > { %p4632_p11 = scmp.ne.s32.totalorder %s4919_s26, %s4631_s29  ;;  %p4638_p8 = scmp.lt.s32.totalorder %s4636_s19, %s4631_s29 }
  0x5b   : > { %p4634_p13 = pnand %p4633_p12, %p4632_p11  ;;  %p4639_p9 = por %p4638_p8, %p4637_p2 }
  0x5d   : > { %p4635_p0 = pneg %p4634_p13 }
  0x5f   : > { %p4640_p4 = pnand %p4639_p9, %p4635_p0 }
  0x61   : > { %4643 = shalt.err (!%p4640_p4)
}
  0x62   : > { %s4644_s25 = scalar_lea.vmem %s270_s8, 128  ;;  %s4748_s11 = smov [#allocation2]  }
  0x63   : > { %p4645_p1 = scmp.ne.s32.totalorder %s270_s8, %s4644_s25  ;;  %s4649_s30 = sshll.u32 %s4748_s11, 4  ;;  %s4650_s30 = int_to_ptr.vmem [resolvable:$false] %s4649_s30 }
  0x64   : > { %s4651_s1 = scalar_lea.vmem %s4650_s30, 256  ;;  %p4652_p11 = scmp.lt.s32.totalorder %s270_s8, %s4650_s30 }
  0x65   : > { %p4647_p10 = pnand %p4645_p1, %p4633_p12  ;;  %p4653_p13 = scmp.lt.s32.totalorder %s4651_s1, %s4644_s25 }
  0x67   : > { %p4648_p6 = pneg %p4647_p10  ;;  %p4654_p5 = por %p4653_p13, %p4652_p11 }
  0x69   : > { %p4655_p3 = pnand %p4654_p5, %p4648_p6 }
  0x6b   : > { %4658 = shalt.err (!%p4655_p3)
}
  0x6c   : > { %4469 = dma.hbm_to_vmem [thread:$0]  (!%p4921_p7), %s4919_s26, 128, %s270_s8, %s259_s13  }
  0x6d   : > { %p6610_p0 = scmp.ne.s32.totalorder %s6594_s28, 0 }
  0x6f   : > { %278 = sbr.rel (%p6610_p0) target bundleno = 2396 (0x95c), region = 44 }
  0x74   : > { %s4942_s29 = sand.u32 1, %s4731_s22   ;;  %p6612_p1 = scmp.ne.s32.totalorder %s6603_s17, 0 }
  0x75   : > { %6611 = sst [smem:[#allocation30_spill]] %s4942_s29  ;;  %s6465_s14 = sshll.u32 %s4942_s29, 3 }
  0x76   : > { %s281_s15 = scalar_lea.sflag [#allocation3], %s4942_s29  ;;  %s4948_s1 = scalar_lea.vmem [#allocation2], %s6465_s14 }
  0x77   : > { %4702 = dma.done.wait (%p6612_p1), %s281_s15, 128  }
  0x78   : > { %4704 = vsyncadd (%p6612_p1), %s281_s15, 4294967168  ;;  %p6613_p3 = scmp.eq.s32.totalorder %s4810_s27, 0 }
  0x7a   : > { %4706 = dma.done.wait (%p6613_p3), [#allocation5], 128   ;;  %p6614_p4 = pmov %p6613_p3 }
  0x7b   : > { %p6615_p5 = pmov %p6613_p3 }
  0x7c   : > { %4708 = vsyncadd (%p6614_p4), [#allocation5], 4294967168 }
  0x7d   : > { %4710 = dma.done.wait (%p6615_p5), [#allocation8], 128   ;;  %p6616_p6 = pmov %p6613_p3 }
  0x7e   : > { %p6617_p10 = pmov %p6613_p3 }
  0x7f   : > { %4712 = vsyncadd (%p6616_p6), [#allocation8], 4294967168 }
  0x80   : > { %4714 = dma.done.wait (%p6617_p10), [#allocation10], 4096   ;;  %p6618_p7 = pmov %p6613_p3 }
  0x81   : > { %p6619_p12 = pmov %p6613_p3 }
  0x82   : > { %4716 = vsyncadd (%p6618_p7), [#allocation10], 4294963200 }
  0x83   : > { %4718 = dma.done.wait (%p6619_p12), [#allocation13], 5120   ;;  %p6620_p2 = pmov %p6613_p3 }
  0x85   : > { %4720 = vsyncadd (%p6620_p2), [#allocation13], 4294962176 }
  0x86   : > { %309 = sfence }
  0x87   : > { %v430_v0 = vld [vmem:[#allocation9 + $0x78] sm:$0xff]  ;;  %v6466_v2 = vmov 0.0   ;;  %v429_v3 = vld [vmem:[#allocation9 + $0x70] sm:$0xff]  ;;  %v428_v5 = vld [vmem:[#allocation9 + $0x68] sm:$0xff]  ;;  %vm4750_vm0 = vmmov 0   ;;  %s3804_s28 = sld [smem:[#allocation6 + $0x4]] }
  0x88   : > { %v516_v1 = vld [vmem:[#allocation11 + $0x78] sm:$0xff]  ;;  %4072 = vmatprep.subr.mxu0 %v6466_v2  ;;  %4107 = vmatprep.subr.mxu1 %v6466_v2  ;;  %v515_v4 = vld [vmem:[#allocation11 + $0x70] sm:$0xff]  ;;  %v514_v6 = vld [vmem:[#allocation11 + $0x68] sm:$0xff]  ;;  %s3802_s17 = sld [smem:[#allocation6 + $0x2]]  ;;  %vm803_vm1 = vcmask 523264   ;;  %vm1127_vm2 = vcmask 261120  }
  0x89   : > { %4073 = vmatpush3.msra.mxu0 %v430_v0  ;;  %4108 = vmatpush3.msra.mxu1 %v516_v1  ;;  %v427_v7 = vld [vmem:[#allocation9 + $0x60] sm:$0xff]  ;;  %v426_v9 = vld [vmem:[#allocation9 + $0x58] sm:$0xff]  ;;  %v425_v11 = vld [vmem:[#allocation9 + $0x50] sm:$0xff]  ;;  %s334_s26 = sld [smem:[#allocation6]]  ;;  %vm1445_vm3 = vcmask 130048   ;;  %vm1807_vm4 = vcmask 64512  }
  0x8a   : > { %4074 = vmatprep.subr.mxu0 %v6466_v2  ;;  %4109 = vmatprep.subr.mxu1 %v6466_v2  ;;  %v513_v8 = vld [vmem:[#allocation11 + $0x60] sm:$0xff]  ;;  %v512_v10 = vld [vmem:[#allocation11 + $0x58] sm:$0xff]  ;;  %v511_v12 = vld [vmem:[#allocation11 + $0x50] sm:$0xff]  ;;  %s3801_s8 = sld [smem:[#allocation6 + $0x1]] }
  0x8b   : > { %4075 = vmatpush3.msra.mxu0 %v429_v3  ;;  %4110 = vmatpush3.msra.mxu1 %v515_v4  ;;  %v424_v13 = vld [vmem:[#allocation9 + $0x48] sm:$0xff]  ;;  %v423_v15 = vld [vmem:[#allocation9 + $0x40] sm:$0xff]  ;;  %v422_v17 = vld [vmem:[#allocation9 + $0x38] sm:$0xff]  ;;  %s3803_s10 = sld [smem:[#allocation6 + $0x3]] }
  0x8c   : > { %4076 = vmatprep.subr.mxu0 %v6466_v2  ;;  %4111 = vmatprep.subr.mxu1 %v6466_v2  ;;  %v510_v14 = vld [vmem:[#allocation11 + $0x48] sm:$0xff]  ;;  %v509_v16 = vld [vmem:[#allocation11 + $0x40] sm:$0xff]  ;;  %v508_v18 = vld [vmem:[#allocation11 + $0x38] sm:$0xff]  ;;  %s5061_s13 = sld [smem:[#allocation6 + $0x80]] }
  0x8d   : > { %4077 = vmatpush3.msra.mxu0 %v428_v5  ;;  %4112 = vmatpush3.msra.mxu1 %v514_v6  ;;  %v421_v19 = vld [vmem:[#allocation9 + $0x30] sm:$0xff]  ;;  %v420_v21 = vld [vmem:[#allocation9 + $0x28] sm:$0xff]  ;;  %v419_v23 = vld [vmem:[#allocation9 + $0x20] sm:$0xff]  ;;  %s5063_s19 = sld [smem:[#allocation6 + $0x81]]  ;;  %v5085_v34 = vstv %s3804_s28  ;;  %s6478_s28 = smov 126  }
  0x8e   : > { %4078 = vmatprep.subr.mxu0 %v6466_v2  ;;  %4113 = vmatprep.subr.mxu1 %v6466_v2  ;;  %v507_v20 = vld [vmem:[#allocation11 + $0x30] sm:$0xff]  ;;  %v506_v22 = vld [vmem:[#allocation11 + $0x28] sm:$0xff]  ;;  %v505_v24 = vld [vmem:[#allocation11 + $0x20] sm:$0xff]  ;;  %s5065_s20 = sld [smem:[#allocation6 + $0x100]]  ;;  %v5087_v35 = vstv %s3802_s17  ;;  %s6482_s17 = smov 127  }
  0x8f   : > { %4079 = vmatpush3.msra.mxu0 %v427_v7  ;;  %4114 = vmatpush3.msra.mxu1 %v513_v8  ;;  %v4994_v25 = vld [vmem:[#allocation9 + $0x18] sm:$0xff]  ;;  %v5000_v27 = vld [vmem:[#allocation9 + $0x10] sm:$0xff]  ;;  %v5008_v29 = vld [vmem:[#allocation9 + $0x8] sm:$0xff]  ;;  %s5067_s18 = sld [smem:[#allocation6 + $0x101]]  ;;  %v5089_v36 = vstv %s334_s26 }
  0x90   : > { %4080 = vmatprep.subr.mxu0 %v6466_v2  ;;  %4115 = vmatprep.subr.mxu1 %v6466_v2  ;;  %v4996_v26 = vld [vmem:[#allocation11 + $0x18] sm:$0xff]  ;;  %v5002_v28 = vld [vmem:[#allocation11 + $0x10] sm:$0xff]  ;;  %v5010_v30 = vld [vmem:[#allocation11 + $0x8] sm:$0xff]  ;;  %s5069_s25 = sld [smem:[#allocation6 + $0x200]]  ;;  %v5093_v37 = vstv %s3801_s8 }
  0x91   : > { %4081 = vmatpush3.msra.mxu0 %v426_v9  ;;  %4116 = vmatpush3.msra.mxu1 %v512_v10  ;;  %v5016_v31 = vld [vmem:[#allocation9] sm:$0xff]  ;;  %v414_v33 = vld [vmem:[%s4948_s1] sm:$0xff]  ;;  %s5071_s11 = sld [smem:[#allocation6 + $0x201]]  ;;  %v5101_v40 = vstv %s3803_s10 }
  0x92   : > { %4082 = vmatprep.subr.mxu0 %v6466_v2  ;;  %4117 = vmatprep.subr.mxu1 %v6466_v2  ;;  %v5020_v32 = vld [vmem:[#allocation11] sm:$0xff]  ;;  %s5073_s30 = sld [smem:[#allocation6 + $0x180]]  ;;  %v5116_v49 = vstv %s5061_s13 }
  0x93   : > { %4083 = vmatpush3.msra.mxu0 %v425_v11  ;;  %4118 = vmatpush3.msra.mxu1 %v511_v12  ;;  %s5075_s15 = sld [smem:[#allocation6 + $0x181]]  ;;  %v5119_v50 = vstv %s5063_s19 }
  0x94   : > { %4084 = vmatprep.subr.mxu0 %v6466_v2  ;;  %4119 = vmatprep.subr.mxu1 %v6466_v2  ;;  %s5077_s1 = sld [smem:[#allocation6 + $0x300]]  ;;  %v5122_v51 = vstv %s5065_s20 }
  0x95   : > { %4085 = vmatpush3.msra.mxu0 %v424_v13  ;;  %4120 = vmatpush3.msra.mxu1 %v510_v14  ;;  %s5079_s14 = sld [smem:[#allocation6 + $0x301]]  ;;  %v5125_v52 = vstv %s5067_s18 }
  0x96   : > { %4086 = vmatprep.subr.mxu0 %v6466_v2  ;;  %4121 = vmatprep.subr.mxu1 %v6466_v2  ;;  %s5081_s0 = sld [smem:[#allocation6 + $0x280]]  ;;  %v5128_v53 = vstv %s5069_s25 }
  0x97   : > { %4087 = vmatpush3.msra.mxu0 %v423_v15  ;;  %4122 = vmatpush3.msra.mxu1 %v509_v16  ;;  %s5083_s2 = sld [smem:[#allocation6 + $0x281]]  ;;  %v5131_v54 = vstv %s5071_s11 }
  0x98   : > { %4088 = vmatprep.subr.mxu0 %v6466_v2  ;;  %4123 = vmatprep.subr.mxu1 %v6466_v2  ;;  %s5091_s3 = sld [smem:[#allocation6 + $0x380]]  ;;  %v5134_v55 = vstv %s5073_s30 }
  0x99   : > { %4089 = vmatpush3.msra.mxu0 %v422_v17  ;;  %4124 = vmatpush3.msra.mxu1 %v508_v18  ;;  %s5095_s4 = sld [smem:[#allocation6 + $0x381]]  ;;  %v5137_v56 = vstv %s5075_s15 }
  0x9a   : > { %4090 = vmatprep.subr.mxu0 %v6466_v2  ;;  %4125 = vmatprep.subr.mxu1 %v6466_v2  ;;  %v5140_v57 = vstv %s5077_s1  ;;  %s5370_s26 = sld [smem:[#allocation6 + $0x182]] }
  0x9b   : > { %4091 = vmatpush3.msra.mxu0 %v421_v19  ;;  %4126 = vmatpush3.msra.mxu1 %v507_v20  ;;  %v5143_v58 = vstv %s5079_s14  ;;  %s3822_s14 = sld [smem:[#allocation6 + $0x202]] }
  0x9c   : > { %4092 = vmatprep.subr.mxu0 %v6466_v2  ;;  %4127 = vmatprep.subr.mxu1 %v6466_v2  ;;  %v5146_v59 = vstv %s5081_s0  ;;  %s3807_s0 = sld [smem:[#allocation6 + $0x82]] }
  0x9d   : > { %4093 = vmatpush3.msra.mxu0 %v420_v21  ;;  %4128 = vmatpush3.msra.mxu1 %v506_v22  ;;  %v5150_v60 = vstv %s5083_s2  ;;  %s3812_s2 = sld [smem:[#allocation6 + $0x102]] }
  0x9e   : > { %4094 = vmatprep.subr.mxu0 %v6466_v2  ;;  %4129 = vmatprep.subr.mxu1 %v6466_v2  ;;  %v5153_v61 = vstv %s5091_s3  ;;  %s3814_s3 = sld [smem:[#allocation6 + $0x104]] }
  0x9f   : > { %4095 = vmatpush3.msra.mxu0 %v419_v23  ;;  %4130 = vmatpush3.msra.mxu1 %v505_v24  ;;  %v5156_v62 = vstv %s5095_s4  ;;  %s3809_s4 = sld [smem:[#allocation6 + $0x84]] }
  0xa0   : > { %4096 = vmatprep.subr.mxu0 %v6466_v2  ;;  %4131 = vmatprep.subr.mxu1 %v6466_v2  ;;  %s5392_s8 = sld [smem:[#allocation6 + $0x204]] }
  0xa1   : > { %4097 = vmatpush3.msra.mxu0 %v4994_v25  ;;  %4132 = vmatpush3.msra.mxu1 %v4996_v26  ;;  %s5398_s10 = sld [smem:[#allocation6 + $0x184]] }
  0xa2   : > { %4098 = vmatprep.subr.mxu0 %v6466_v2  ;;  %4133 = vmatprep.subr.mxu1 %v6466_v2  ;;  %s3832_s13 = sld [smem:[#allocation6 + $0x302]] }
  0xa3   : > { %4099 = vmatpush3.msra.mxu0 %v5000_v27  ;;  %4134 = vmatpush3.msra.mxu1 %v5002_v28  ;;  %s3827_s19 = sld [smem:[#allocation6 + $0x282]] }
  0xa4   : > { %4100 = vmatprep.subr.mxu0 %v6466_v2  ;;  %4135 = vmatprep.subr.mxu1 %v6466_v2  ;;  %s3834_s20 = sld [smem:[#allocation6 + $0x304]] }
  0xa5   : > { %4101 = vmatpush3.msra.mxu0 %v5008_v29  ;;  %4136 = vmatpush3.msra.mxu1 %v5010_v30  ;;  %s3829_s18 = sld [smem:[#allocation6 + $0x284]] }
  0xa6   : > { %4102 = vmatprep.subr.mxu0 %v6466_v2  ;;  %4137 = vmatprep.subr.mxu1 %v6466_v2  ;;  %s3837_s25 = sld [smem:[#allocation6 + $0x382]] }
  0xa7   : > { %4103 = vmatpush3.msra.mxu0 %v5016_v31  ;;  %4104 = vmatprep.mubr.msk.f32.mxu0 %vm4750_vm0, %v6466_v2  ;;  %s3808_s11 = sld [smem:[#allocation6 + $0x83]] }
  0xa8   : > { %4138 = vmatpush3.msra.mxu1 %v5020_v32  ;;  %4139 = vmatprep.mubr.msk.f32.mxu1 %vm4750_vm0, %v6466_v2  ;;  %s3813_s30 = sld [smem:[#allocation6 + $0x103]] }
  0xa9   : > { %4105 = vmatmul.mubr.f32.vlgmr.msra.gmra.mxu0 %v414_v33  ;;  %4140 = vmatmul.mubr.f32.vlgmr.msra.gmra.mxu1 %v414_v33  ;;  %s3823_s15 = sld [smem:[#allocation6 + $0x203]] }
  0xaa   : > { %4142 = vmatprep.subr.mxu0 %v6466_v2  ;;  %4161 = vmatprep.subr.mxu1 %v6466_v2  ;;  %s3818_s1 = sld [smem:[#allocation6 + $0x183]] }
  0xab   : > { %4143 = vmatpush3.msra.mxu0 %v422_v17  ;;  %4162 = vmatpush3.msra.mxu1 %v508_v18  ;;  %s5707_s5 = sld [smem:[#allocation7 + $0x202]] }
  0xac   : > { %4144 = vmatprep.subr.mxu0 %v6466_v2  ;;  %4163 = vmatprep.subr.mxu1 %v6466_v2  ;;  %s5709_s16 = sld [smem:[#allocation7 + $0x203]] }
  0xad   : > { %4145 = vmatpush3.msra.mxu0 %v421_v19  ;;  %4164 = vmatpush3.msra.mxu1 %v507_v20  ;;  %s5713_s23 = sld [smem:[#allocation7 + $0x204]] }
  0xae   : > { %4146 = vmatprep.subr.mxu0 %v6466_v2  ;;  %4165 = vmatprep.subr.mxu1 %v6466_v2  ;;  %s5715_s22 = sld [smem:[#allocation7 + $0x180]] }
  0xaf   : > { %4147 = vmatpush3.msra.mxu0 %v420_v21  ;;  %4166 = vmatpush3.msra.mxu1 %v506_v22  ;;  %s5725_s7 = sld [smem:[#allocation7 + $0x181]] }
  0xb0   : > { %4148 = vmatprep.subr.mxu0 %v6466_v2  ;;  %4167 = vmatprep.subr.mxu1 %v6466_v2  ;;  %s5727_s24 = sld [smem:[#allocation7 + $0x182]] }
  0xb1   : > { %4149 = vmatpush3.msra.mxu0 %v419_v23  ;;  %4168 = vmatpush3.msra.mxu1 %v505_v24  ;;  %s5731_s12 = sld [smem:[#allocation7 + $0x183]] }
  0xb2   : > { %4150 = vmatprep.subr.mxu0 %v6466_v2  ;;  %4169 = vmatprep.subr.mxu1 %v6466_v2  ;;  %s5733_s21 = sld [smem:[#allocation7 + $0x184]] }
  0xb3   : > { %4151 = vmatpush3.msra.mxu0 %v4994_v25  ;;  %4170 = vmatpush3.msra.mxu1 %v4996_v26  ;;  %s5743_s6 = sld [smem:[#allocation7 + $0x300]] }
  0xb4   : > { %4152 = vmatprep.subr.mxu0 %v6466_v2  ;;  %4171 = vmatprep.subr.mxu1 %v6466_v2  ;;  %s5745_s9 = sld [smem:[#allocation7 + $0x301]] }
  0xb5   : > { %4153 = vmatpush3.msra.mxu0 %v5000_v27  ;;  %4172 = vmatpush3.msra.mxu1 %v5002_v28  ;;  %s5751_s29 = sld [smem:[#allocation7 + $0x303]] }
  0xb6   : > { %4154 = vmatprep.subr.mxu0 %v6466_v2  ;;  %4173 = vmatprep.subr.mxu1 %v6466_v2  ;;  %s5779_s27 = sld [smem:[#allocation7 + $0x280]] }
  0xb7   : > { %4155 = vmatpush3.msra.mxu0 %v5008_v29  ;;  %4174 = vmatpush3.msra.mxu1 %v5010_v30 }
  0xb8   : > { %4156 = vmatprep.subr.mxu0 %v6466_v2  ;;  %4175 = vmatprep.subr.mxu1 %v6466_v2 }
  0xb9   : > { %4157 = vmatpush3.msra.mxu0 %v5016_v31  ;;  %4158 = vmatprep.mubr.msk.f32.mxu0 %vm4750_vm0, %v6466_v2 }
  0xba   : > { %4176 = vmatpush3.msra.mxu1 %v5020_v32  ;;  %4177 = vmatprep.mubr.msk.f32.mxu1 %vm4750_vm0, %v6466_v2 }
  0xbb   : > { %4180 = vmatprep.subr.mxu0 %v6466_v2  ;;  %4191 = vmatprep.subr.mxu1 %v6466_v2  ;;  %6647 = sst [smem:[#allocation57_spill]] %s5751_s29  ;;  %s6650_s29 = smov 126  }
  0xbc   : > { %6649 = sst [smem:[#allocation59_spill]] %s5779_s27 }
  0xbd   : > { %s5800_s27 = sld [smem:[#allocation7 + $0x282]] }
 0x169   : > { %v5097_v38 = vpop.f32.mrf.mxu0  ;;  %v5099_v39 = vpop.f32.mrf.mxu1 }
 0x16a   : > { %6621 = vst [vmem:[#allocation31_spill] sm:$0xff] %v5097_v38  ;;  %v607_v41 = vmul.f32 %v5085_v34, %v5097_v38  ;;  %v593_v42 = vmul.f32 %v5087_v35, %v5097_v38  ;;  %v588_v43 = vmul.f32 %v5089_v36, %v5097_v38  ;;  %v590_v46 = vmul.f32 %v5093_v37, %v5099_v39 }
 0x16b   : > { %v4106_v44 = vpop.f32.mrf.mxu0  ;;  %v4141_v45 = vpop.f32.mrf.mxu1  ;;  %v600_v47 = vmul.f32 %v5101_v40, %v5099_v39  ;;  %v614_v63 = vmul.f32 %v5116_v49, %v5097_v38  ;;  %v616_v0 = vmul.f32 %v5119_v50, %v5099_v39  ;;  %v640_v1 = vmul.f32 %v5122_v51, %v5097_v38 }
 0x16c   : > { %609 = vrot.lane.b32.xlu1 %v607_v41, %s6478_s28  ;;  %595 = vrot.lane.b32.xlu0 %v593_v42, %s6482_s17  ;;  %v591_v48 = vadd.f32 %v590_v46, %v588_v43  ;;  %v642_v3 = vmul.f32 %v5125_v52, %v5099_v39  ;;  %v666_v4 = vmul.f32 %v5134_v55, %v5097_v38 }
 0x16d   : > { %v668_v5 = vmul.f32 %v5137_v56, %v5099_v39  ;;  %v692_v6 = vmul.f32 %v5128_v53, %v5097_v38  ;;  %v694_v7 = vmul.f32 %v5131_v54, %v5099_v39  ;;  %v5174_v8 = vadd.f32 %v616_v0, %v614_v63 }
 0x16e   : > { %v5176_v9 = vadd.f32 %v642_v3, %v640_v1  ;;  %v718_v10 = vmul.f32 %v5146_v59, %v5097_v38  ;;  %v720_v11 = vmul.f32 %v5150_v60, %v5099_v39  ;;  %v744_v14 = vmul.f32 %v5140_v57, %v5097_v38 }
 0x16f   : > { %6622 = vst [vmem:[#allocation32_spill] sm:$0xff] %v5174_v8  ;;  %v5182_v12 = vadd.f32 %v668_v5, %v666_v4  ;;  %v5184_v13 = vadd.f32 %v694_v7, %v692_v6  ;;  %v746_v15 = vmul.f32 %v5143_v58, %v5099_v39  ;;  %v770_v17 = vmul.f32 %v5153_v61, %v5097_v38 }
 0x170   : > { %602 = vrot.lane.b32.xlu0 %v600_v47, %s6482_s17  ;;  %6623 = vst [vmem:[#allocation33_spill] sm:$0xff] %v5176_v9  ;;  %v5190_v16 = vadd.f32 %v720_v11, %v718_v10  ;;  %v772_v18 = vmul.f32 %v5156_v62, %v5099_v39 }
 0x171   : > { %6624 = vst [vmem:[#allocation34_spill] sm:$0xff] %v5182_v12  ;;  %6625 = vst [vmem:[#allocation35_spill] sm:$0xff] %v5184_v13  ;;  %v5196_v19 = vadd.f32 %v746_v15, %v744_v14 }
 0x172   : > { %6626 = vst [vmem:[#allocation36_spill] sm:$0xff] %v5190_v16  ;;  %v5198_v20 = vadd.f32 %v772_v18, %v770_v17 }
 0x173   : > { %6627 = vst [vmem:[#allocation37_spill] sm:$0xff] %v5196_v19 }
 0x174   : > { %6628 = vst [vmem:[#allocation38_spill] sm:$0xff] %v5198_v20 }
 0x1de   : > { %v596_v21 = vpop.permute.xlu0 %595  ;;  %v610_v33 = vpop.permute.xlu1 %609 }
 0x1df   : > { %v598_v22 = vadd.f32 %v596_v21, %v591_v48 }
 0x1e2   : > { %v603_v23 = vpop.permute.xlu0 %602 }
 0x1e3   : > { %v605_v24 = vadd.f32 %v603_v23, %v598_v22 }
 0x1e5   : > { %v612_v41 = vadd.f32 %v610_v33, %v605_v24 }
 0x1e7   : > { %4159 = vmatmul.mubr.msk.f32.vlgmr.msra.gmra.mxu0 %vm803_vm1, %v612_v41  ;;  %4178 = vmatmul.mubr.msk.f32.vlgmr.msra.gmra.mxu1 %vm803_vm1, %v612_v41 }
 0x1e8   : > { %4192 = vmatpush3.msra.mxu1 %v4996_v26  ;;  %4181 = vmatpush3.msra.mxu0 %v4994_v25 }
 0x1e9   : > { %4182 = vmatprep.subr.mxu0 %v6466_v2  ;;  %4193 = vmatprep.subr.mxu1 %v6466_v2 }
 0x1ea   : > { %4183 = vmatpush3.msra.mxu0 %v5000_v27  ;;  %4194 = vmatpush3.msra.mxu1 %v5002_v28 }
 0x1eb   : > { %4184 = vmatprep.subr.mxu0 %v6466_v2  ;;  %4195 = vmatprep.subr.mxu1 %v6466_v2 }
 0x1ec   : > { %4185 = vmatpush3.msra.mxu0 %v5008_v29  ;;  %4196 = vmatpush3.msra.mxu1 %v5010_v30 }
 0x1ed   : > { %4186 = vmatprep.subr.mxu0 %v6466_v2  ;;  %4197 = vmatprep.subr.mxu1 %v6466_v2 }
 0x1ee   : > { %4187 = vmatpush3.msra.mxu0 %v5016_v31  ;;  %4188 = vmatprep.mubr.msk.f32.mxu0 %vm4750_vm0, %v6466_v2 }
 0x1ef   : > { %4198 = vmatpush3.msra.mxu1 %v5020_v32  ;;  %4199 = vmatprep.mubr.msk.f32.mxu1 %vm4750_vm0, %v6466_v2 }
 0x1f0   : > { %4202 = vmatprep.subr.mxu0 %v6466_v2  ;;  %4221 = vmatprep.subr.mxu1 %v6466_v2 }
 0x2a7   : > { %v5222_v25 = vpop.f32.mrf.mxu0  ;;  %v5224_v26 = vpop.f32.mrf.mxu1 }
 0x2a8   : > { %v964_v27 = vmul.f32 %v5224_v26, %v5101_v40  ;;  %v958_v28 = vmul.f32 %v5222_v25, %v5087_v35  ;;  %v956_v42 = vmul.f32 %v5224_v26, %v5093_v37  ;;  %v955_v45 = vmul.f32 %v5222_v25, %v5089_v36 }
 0x2a9   : > { %v4160_v43 = vpop.f32.mrf.mxu0  ;;  %v4179_v44 = vpop.f32.mrf.mxu1  ;;  %v970_v47 = vmul.f32 %v5222_v25, %v5085_v34  ;;  %v976_v48 = vmul.f32 %v5222_v25, %v5116_v49  ;;  %v977_v63 = vmul.f32 %v5224_v26, %v5119_v50  ;;  %v997_v0 = vmul.f32 %v5222_v25, %v5122_v51 }
 0x2aa   : > { %966 = vrot.lane.b32.xlu0 %v964_v27, %s6482_s17  ;;  %960 = vrot.lane.b32.xlu1 %v958_v28, %s6482_s17  ;;  %v957_v46 = vadd.f32 %v956_v42, %v955_v45  ;;  %v998_v1 = vmul.f32 %v5224_v26, %v5125_v52  ;;  %v1018_v3 = vmul.f32 %v5222_v25, %v5134_v55 }
 0x2ab   : > { %v1019_v4 = vmul.f32 %v5224_v26, %v5137_v56  ;;  %v1039_v5 = vmul.f32 %v5222_v25, %v5128_v53  ;;  %v1040_v6 = vmul.f32 %v5224_v26, %v5131_v54  ;;  %v5255_v7 = vadd.f32 %v977_v63, %v976_v48 }
 0x2ac   : > { %v5257_v10 = vadd.f32 %v998_v1, %v997_v0  ;;  %v1060_v11 = vmul.f32 %v5222_v25, %v5146_v59  ;;  %v1061_v14 = vmul.f32 %v5224_v26, %v5150_v60  ;;  %v1081_v18 = vmul.f32 %v5222_v25, %v5140_v57 }
 0x2ad   : > { %6629 = vst [vmem:[#allocation39_spill] sm:$0xff] %v5255_v7  ;;  %v5263_v15 = vadd.f32 %v1019_v4, %v1018_v3  ;;  %v5265_v17 = vadd.f32 %v1040_v6, %v1039_v5  ;;  %v1082_v21 = vmul.f32 %v5224_v26, %v5143_v58  ;;  %v1102_v23 = vmul.f32 %v5222_v25, %v5153_v61 }
 0x2ae   : > { %972 = vrot.lane.b32.xlu1 %v970_v47, %s6478_s28  ;;  %6630 = vst [vmem:[#allocation40_spill] sm:$0xff] %v5257_v10  ;;  %v5271_v22 = vadd.f32 %v1061_v14, %v1060_v11  ;;  %v1103_v24 = vmul.f32 %v5224_v26, %v5156_v62 }
 0x2af   : > { %6631 = vst [vmem:[#allocation41_spill] sm:$0xff] %v5263_v15  ;;  %6632 = vst [vmem:[#allocation42_spill] sm:$0xff] %v5265_v17  ;;  %v5277_v33 = vadd.f32 %v1082_v21, %v1081_v18 }
 0x2b0   : > { %6633 = vst [vmem:[#allocation43_spill] sm:$0xff] %v5271_v22  ;;  %v5279_v41 = vadd.f32 %v1103_v24, %v1102_v23 }
 0x2b1   : > { %6634 = vst [vmem:[#allocation44_spill] sm:$0xff] %v5277_v33 }
 0x2b2   : > { %6635 = vst [vmem:[#allocation45_spill] sm:$0xff] %v5279_v41 }
 0x31c   : > { %v961_v27 = vpop.permute.xlu1 %960  ;;  %v967_v42 = vpop.permute.xlu0 %966 }
 0x31d   : > { %v963_v28 = vadd.f32 %v961_v27, %v957_v46 }
 0x31f   : > { %v969_v43 = vadd.f32 %v967_v42, %v963_v28 }
 0x320   : > { %v973_v44 = vpop.permute.xlu1 %972 }
 0x321   : > { %v975_v45 = vadd.f32 %v973_v44, %v969_v43 }
 0x323   : > { %4189 = vmatmul.mubr.msk.f32.vlgmr.msra.gmra.mxu0 %vm1127_vm2, %v975_v45  ;;  %4200 = vmatmul.mubr.msk.f32.vlgmr.msra.gmra.mxu1 %vm1127_vm2, %v975_v45 }
 0x324   : > { %4203 = vmatpush3.msra.mxu0 %v5008_v29  ;;  %4206 = vmatprep.mubr.msk.f32.mxu0 %vm4750_vm0, %v6466_v2 }
 0x325   : > { %4204 = vmatprep.subr.mxu0 %v6466_v2  ;;  %4223 = vmatprep.mubr.msk.f32.mxu1 %vm4750_vm0, %v6466_v2 }
 0x326   : > { %4205 = vmatpush3.msra.mxu0 %v5016_v31 }
 0x327   : > { %4209 = vmatprep.subr.mxu0 %v6466_v2 }
 0x3e3   : > { %v5291_v46 = vpop.f32.mrf.mxu0  ;;  %v5293_v47 = vpop.f32.mrf.mxu1 }
 0x3e4   : > { %v1284_v48 = vmul.f32 %v5293_v47, %v5101_v40  ;;  %v1278_v29 = vmul.f32 %v5291_v46, %v5087_v35  ;;  %v1276_v63 = vmul.f32 %v5293_v47, %v5093_v37  ;;  %v1275_v31 = vmul.f32 %v5291_v46, %v5089_v36 }
 0x3e5   : > { %v4190_v0 = vpop.f32.mrf.mxu0  ;;  %v4201_v1 = vpop.f32.mrf.mxu1  ;;  %v1290_v4 = vmul.f32 %v5291_v46, %v5085_v34  ;;  %v1296_v5 = vmul.f32 %v5291_v46, %v5116_v49  ;;  %v1297_v6 = vmul.f32 %v5293_v47, %v5119_v50  ;;  %v1317_v11 = vmul.f32 %v5291_v46, %v5122_v51 }
 0x3e6   : > { %1286 = vrot.lane.b32.xlu1 %v1284_v48, %s6482_s17  ;;  %1280 = vrot.lane.b32.xlu0 %v1278_v29, %s6482_s17  ;;  %v1277_v3 = vadd.f32 %v1276_v63, %v1275_v31  ;;  %v1318_v14 = vmul.f32 %v5293_v47, %v5125_v52  ;;  %v1338_v18 = vmul.f32 %v5291_v46, %v5134_v55 }
 0x3e7   : > { %v1339_v21 = vmul.f32 %v5293_v47, %v5137_v56  ;;  %v1359_v23 = vmul.f32 %v5291_v46, %v5128_v53  ;;  %v1360_v24 = vmul.f32 %v5293_v47, %v5131_v54  ;;  %v5324_v27 = vadd.f32 %v1297_v6, %v1296_v5 }
 0x3e8   : > { %v5326_v28 = vadd.f32 %v1318_v14, %v1317_v11  ;;  %v1380_v42 = vmul.f32 %v5291_v46, %v5146_v59  ;;  %v1381_v43 = vmul.f32 %v5293_v47, %v5150_v60  ;;  %v1401_v48 = vmul.f32 %v5291_v46, %v5140_v57 }
 0x3e9   : > { %6636 = vst [vmem:[#allocation46_spill] sm:$0xff] %v5324_v27  ;;  %v5332_v44 = vadd.f32 %v1339_v21, %v1338_v18  ;;  %v5334_v45 = vadd.f32 %v1360_v24, %v1359_v23  ;;  %v1402_v29 = vmul.f32 %v5293_v47, %v5143_v58  ;;  %v1422_v0 = vmul.f32 %v5291_v46, %v5153_v61 }
 0x3ea   : > { %1292 = vrot.lane.b32.xlu0 %v1290_v4, %s6478_s28  ;;  %6637 = vst [vmem:[#allocation47_spill] sm:$0xff] %v5326_v28  ;;  %v5340_v63 = vadd.f32 %v1381_v43, %v1380_v42  ;;  %v1423_v1 = vmul.f32 %v5293_v47, %v5156_v62  ;;  %v5374_v43 = vstv %s3812_s2  ;;  %s3828_s2 = sld [smem:[#allocation6 + $0x283]]  ;;  %v5893_v28 = vstv %s5713_s23 }
 0x3eb   : > { %6638 = vst [vmem:[#allocation48_spill] sm:$0xff] %v5332_v44  ;;  %6639 = vst [vmem:[#allocation49_spill] sm:$0xff] %v5334_v45  ;;  %v5346_v31 = vadd.f32 %v1402_v29, %v1401_v48  ;;  %v5890_v44 = vstv %s5709_s16  ;;  %v5896_v27 = vstv %s5715_s22  ;;  %s6837_s22 = sld [smem:[#allocation25_spill]] }
 0x3ec   : > { %6640 = vst [vmem:[#allocation50_spill] sm:$0xff] %v5340_v63  ;;  %v5348_v4 = vadd.f32 %v1423_v1, %v1422_v0  ;;  %v5380_v0 = vstv %s3814_s3  ;;  %s3839_s3 = sld [smem:[#allocation6 + $0x384]]  ;;  %6672 = vst [vmem:[#allocation80_spill] sm:$0xff] %v5890_v44 }
 0x3ed   : > { %6641 = vst [vmem:[#allocation51_spill] sm:$0xff] %v5346_v31  ;;  %v659_v9 = vmul.f32 %v5380_v0, %v5097_v38  ;;  %6673 = vst [vmem:[#allocation81_spill] sm:$0xff] %v5893_v28  ;;  %s6839_s23 = sld [smem:[#allocation30_spill]] }
 0x3ee   : > { %6642 = vst [vmem:[#allocation52_spill] sm:$0xff] %v5348_v4  ;;  %6675 = vst [vmem:[#allocation82_spill] sm:$0xff] %v5896_v27 }
 0x458   : > { %v1281_v5 = vpop.permute.xlu0 %1280  ;;  %v1287_v11 = vpop.permute.xlu1 %1286 }
 0x459   : > { %v1283_v6 = vadd.f32 %v1281_v5, %v1277_v3  ;;  %v5362_v3 = vstv %s3807_s0  ;;  %v5384_v5 = vstv %s3809_s4  ;;  %s3833_s0 = sld [smem:[#allocation6 + $0x303]] }
 0x45a   : > { %s3838_s4 = sld [smem:[#allocation6 + $0x383]] }
 0x45b   : > { %v1289_v14 = vadd.f32 %v1287_v11, %v1283_v6  ;;  %v5390_v11 = vstv %s3822_s14  ;;  %s5633_s14 = sld [smem:[#allocation7 + $0x80]] }
 0x45c   : > { %v1293_v18 = vpop.permute.xlu0 %1292 }
 0x45d   : > { %v1295_v21 = vadd.f32 %v1293_v18, %v1289_v14 }
 0x45f   : > { %4207 = vmatmul.mubr.msk.f32.vlgmr.msra.gmra.mxu0 %vm1445_vm3, %v1295_v21 }
 0x460   : > { %4210 = vmatpush3.msra.mxu0 %v5010_v30  ;;  %4213 = vmatprep.mubr.msk.f32.mxu0 %vm4750_vm0, %v6466_v2 }
 0x461   : > { %4211 = vmatprep.subr.mxu0 %v6466_v2 }
 0x462   : > { %4212 = vmatpush3.msra.mxu0 %v5020_v32 }
 0x463   : > { %4214 = vmatmul.mubr.msk.f32.vlgmr.msra.gmra.mxu0 %vm1445_vm3, %v1295_v21  ;;  %4216 = vmatprep.subr.mxu0 %v6466_v2 }
 0x464   : > { %4218 = vmatprep.mubr.msk.f32.mxu0 %vm4750_vm0, %v6466_v2 }
 0x51f   : > { %v5360_v30 = vpop.f32.mrf.mxu0 }
 0x520   : > { %v1615_v23 = vmul.f32 %v5360_v30, %v5362_v3  ;;  %v1594_v32 = vmul.f32 %v5360_v30, %v5087_v35  ;;  %v1606_v48 = vmul.f32 %v5360_v30, %v5085_v34  ;;  %v1636_v29 = vmul.f32 %v5360_v30, %v5374_v43 }
 0x521   : > { %v4208_v24 = vpop.f32.mrf.mxu0  ;;  %v1648_v1 = vmul.f32 %v5360_v30, %v5380_v0  ;;  %v1627_v6 = vmul.f32 %v5360_v30, %v5384_v5  ;;  %v1612_v34 = vmul.f32 %v5360_v30, %v5116_v49  ;;  %v1591_v18 = vmul.f32 %v5360_v30, %v5089_v36 }
 0x522   : > { %1617 = vrot.lane.b32.xlu0 %v1615_v23, %s6482_s17  ;;  %1596 = vrot.lane.b32.xlu1 %v1594_v32, %s6482_s17  ;;  %v1633_v23 = vmul.f32 %v5360_v30, %v5122_v51  ;;  %v1675_v49 = vmul.f32 %v5360_v30, %v5128_v53  ;;  %v1654_v36 = vmul.f32 %v5360_v30, %v5134_v55  ;;  %v5427_v53 = vstv %s5370_s26  ;;  %s5639_s26 = sld [smem:[#allocation7 + $0x81]] }
 0x523   : > { %v5372_v42 = vpop.f32.mrf.mxu0 }
 0x524   : > { %v1613_v14 = vmul.f32 %v5372_v42, %v5119_v50  ;;  %v1592_v21 = vmul.f32 %v5372_v42, %v5093_v37  ;;  %v1634_v32 = vmul.f32 %v5372_v42, %v5125_v52  ;;  %v1676_v50 = vmul.f32 %v5372_v42, %v5131_v54 }
 0x525   : > { %v4215_v35 = vpop.f32.mrf.mxu0  ;;  %v1655_v51 = vmul.f32 %v5372_v42, %v5137_v56  ;;  %v1717_v52 = vmul.f32 %v5360_v30, %v5140_v57  ;;  %v1718_v55 = vmul.f32 %v5372_v42, %v5143_v58  ;;  %v1696_v56 = vmul.f32 %v5360_v30, %v5146_v59 }
 0x526   : > { %1608 = vrot.lane.b32.xlu0 %v1606_v48, %s6478_s28  ;;  %1638 = vrot.lane.b32.xlu1 %v1636_v29, %s6482_s17  ;;  %v5408_v24 = vadd.f32 %v1613_v14, %v1612_v34  ;;  %v5416_v48 = vadd.f32 %v1592_v21, %v1591_v18  ;;  %v5418_v37 = vadd.f32 %v1634_v32, %v1633_v23  ;;  %v5467_v21 = vstv %s3832_s13  ;;  %s5647_s13 = sld [smem:[#allocation7 + $0x84]] }
 0x527   : > { %v5429_v54 = vadd.f32 %v1676_v50, %v1675_v49  ;;  %v5435_v29 = vadd.f32 %v1655_v51, %v1654_v36  ;;  %v1697_v57 = vmul.f32 %v5372_v42, %v5150_v60  ;;  %v1738_v35 = vmul.f32 %v5360_v30, %v5153_v61 }
 0x528   : > { %v1657_v58 = vmul.f32 %v5360_v30, %v5427_v53  ;;  %v5447_v34 = vadd.f32 %v1718_v55, %v1717_v52  ;;  %v5456_v60 = vstv %s5392_s8  ;;  %v5459_v61 = vstv %s5398_s10  ;;  %s5641_s8 = sld [smem:[#allocation7 + $0x82]] }
 0x529   : > { %v5449_v59 = vadd.f32 %v1697_v57, %v1696_v56  ;;  %v1669_v18 = vmul.f32 %v5360_v30, %v5459_v61  ;;  %v5469_v23 = vstv %s3827_s19  ;;  %v1720_v32 = vmul.f32 %v5360_v30, %v5467_v21  ;;  %s5645_s10 = sld [smem:[#allocation7 + $0x83]] }
 0x52a   : > { %1650 = vrot.lane.b32.xlu0 %v1648_v1, %s6478_s28  ;;  %1629 = vrot.lane.b32.xlu1 %v1627_v6, %s6478_s28  ;;  %v1739_v1 = vmul.f32 %v5372_v42, %v5156_v62  ;;  %v1678_v6 = vmul.f32 %v5360_v30, %v5390_v11  ;;  %v1690_v62 = vmul.f32 %v5360_v30, %v5456_v60  ;;  %v5477_v50 = vstv %s3834_s20  ;;  %s5653_s19 = sld [smem:[#allocation7 + $0x100]] }
 0x52b   : > { %v1699_v49 = vmul.f32 %v5360_v30, %v5469_v23  ;;  %v5479_v36 = vstv %s3829_s18  ;;  %v1732_v51 = vmul.f32 %v5360_v30, %v5477_v50  ;;  %v5487_v55 = vstv %s3837_s25  ;;  %s5655_s20 = sld [smem:[#allocation7 + $0x101]] }
 0x52c   : > { %v5451_v14 = vadd.f32 %v1739_v1, %v1738_v35  ;;  %v1711_v52 = vmul.f32 %v5360_v30, %v5479_v36  ;;  %v5489_v56 = vstv %s3808_s11  ;;  %v1741_v57 = vmul.f32 %v5360_v30, %v5487_v55  ;;  %s5659_s18 = sld [smem:[#allocation7 + $0x102]] }
 0x52d   : > { %v1621_v35 = vmul.f32 %v5372_v42, %v5489_v56  ;;  %v5497_v1 = vstv %s3813_s30  ;;  %s5661_s25 = sld [smem:[#allocation7 + $0x103]]  ;;  %v1105_v19 = vmul.f32 %v5222_v25, %v5487_v55  ;;  %v5828_v8 = vstv %s5647_s13 }
 0x52e   : > { %1680 = vrot.lane.b32.xlu0 %v1678_v6, %s6482_s17  ;;  %1659 = vrot.lane.b32.xlu1 %v1657_v58, %s6482_s17  ;;  %v1642_v6 = vmul.f32 %v5372_v42, %v5497_v1  ;;  %v1600_v58 = vmul.f32 %v5372_v42, %v5101_v40  ;;  %v5515_v40 = vstv %s3833_s0  ;;  %s5671_s11 = sld [smem:[#allocation7 + $0x104]]  ;;  %6656 = vst [vmem:[#allocation64_spill] sm:$0xff] %v5828_v8 }
 0x52f   : > { %s5673_s30 = sld [smem:[#allocation7]]  ;;  %v5856_v15 = vmul.f32 %v5487_v55, %v5097_v38  ;;  %v5860_v10 = vmul.f32 %v5515_v40, %v5099_v39 }
 0x530   : > { %s5689_s0 = sld [smem:[#allocation7 + $0x3]] }
 0x531   : > { %6663 = vst [vmem:[#allocation71_spill] sm:$0xff] %v5856_v15  ;;  %6664 = vst [vmem:[#allocation72_spill] sm:$0xff] %v5860_v10  ;;  %v5924_v10 = vstv %s5745_s9 }
 0x532   : > { %1692 = vrot.lane.b32.xlu0 %v1690_v62, %s6478_s28  ;;  %1671 = vrot.lane.b32.xlu1 %v1669_v18, %s6478_s28  ;;  %v5505_v62 = vstv %s3823_s15  ;;  %v5507_v18 = vstv %s3818_s1  ;;  %s5677_s15 = sld [smem:[#allocation7 + $0x1]]  ;;  %6686 = vst [vmem:[#allocation90_spill] sm:$0xff] %v5924_v10 }
 0x533   : > { %s5679_s1 = sld [smem:[#allocation7 + $0x2]]  ;;  %v678_v12 = vmul.f32 %v5507_v18, %v5099_v39  ;;  %v5839_v41 = vstv %s5659_s18  ;;  %v5842_v33 = vstv %s5661_s25  ;;  %s3649_s25 = scalar_lea.sflag [#allocation4], %s6839_s23 }
 0x534   : > { %6659 = vst [vmem:[#allocation67_spill] sm:$0xff] %v5839_v41  ;;  %6660 = vst [vmem:[#allocation68_spill] sm:$0xff] %v5842_v33  ;;  %v5849_v22 = vstv %s5671_s11  ;;  %s6679_s18 = sld [smem:[#allocation59_spill]] }
 0x535   : > { %6661 = vst [vmem:[#allocation69_spill] sm:$0xff] %v5849_v22  ;;  %v5852_v17 = vstv %s5673_s30  ;;  %s4753_s30 = smov [#allocation14]  }
 0x536   : > { %1722 = vrot.lane.b32.xlu0 %v1720_v32, %s6482_s17  ;;  %1701 = vrot.lane.b32.xlu1 %v1699_v49, %s6482_s17  ;;  %v1684_v32 = vmul.f32 %v5372_v42, %v5505_v62  ;;  %v1663_v49 = vmul.f32 %v5372_v42, %v5507_v18  ;;  %6662 = vst [vmem:[#allocation70_spill] sm:$0xff] %v5852_v17  ;;  %v5873_v4 = vstv %s5689_s0 }
 0x537   : > { %6667 = vst [vmem:[#allocation75_spill] sm:$0xff] %v5873_v4 }
 0x539   : > { %v5870_v7 = vstv %s5679_s1 }
 0x53a   : > { %1734 = vrot.lane.b32.xlu0 %v1732_v51, %s6478_s28  ;;  %1713 = vrot.lane.b32.xlu1 %v1711_v52, %s6478_s28  ;;  %v5517_v51 = vstv %s3828_s2  ;;  %v1726_v52 = vmul.f32 %v5372_v42, %v5515_v40  ;;  %s5691_s2 = sld [smem:[#allocation7 + $0x4]]  ;;  %6666 = vst [vmem:[#allocation74_spill] sm:$0xff] %v5870_v7  ;;  %v5941_v10 = vstv %s6679_s18 }
 0x53b   : > { %6690 = vst [vmem:[#allocation94_spill] sm:$0xff] %v5941_v10 }
 0x53e   : > { %1743 = vrot.lane.b32.xlu1 %v1741_v57, %s6482_s17  ;;  %1623 = vrot.lane.b32.xlu0 %v1621_v35, %s6482_s17  ;;  %v1705_v57 = vmul.f32 %v5372_v42, %v5517_v51  ;;  %v5523_v35 = vld [vmem:[#allocation12 + $0x40] sm:$0xff] }
 0x53f   : > { %6643 = vst [vmem:[#allocation53_spill] sm:$0xff] %v5523_v35  ;;  %4217 = vmatpush3.msra.mxu0 %v5523_v35  ;;  %v5904_v35 = vstv %s5727_s24  ;;  %s6840_s24 = sld [smem:[#allocation28_spill]] }
 0x540   : > { %4226 = vmatprep.subr.mxu0 %v6466_v2  ;;  %v5878_v31 = vstv %s5691_s2  ;;  %6680 = vst [vmem:[#allocation84_spill] sm:$0xff] %v5904_v35 }
 0x541   : > { %6668 = vst [vmem:[#allocation76_spill] sm:$0xff] %v5878_v31 }
 0x542   : > { %1644 = vrot.lane.b32.xlu0 %v1642_v6, %s6482_s17  ;;  %1602 = vrot.lane.b32.xlu1 %v1600_v58, %s6482_s17  ;;  %v5525_v6 = vld [vmem:[#allocation12] sm:$0xff]  ;;  %v5531_v58 = vstv %s3839_s3  ;;  %s5695_s3 = sld [smem:[#allocation7 + $0x200]] }
 0x543   : > { %6644 = vst [vmem:[#allocation54_spill] sm:$0xff] %v5525_v6  ;;  %4222 = vmatpush3.msra.mxu1 %v5525_v6  ;;  %6645 = vst [vmem:[#allocation55_spill] sm:$0xff] %v5531_v58  ;;  %v1117_v16 = vmul.f32 %v5222_v25, %v5531_v58  ;;  %v5901_v6 = vstv %s5725_s7  ;;  %s6841_s7 = sshll.u32 %s6839_s23, 3 }
 0x544   : > { %4231 = vmatprep.subr.mxu1 %v6466_v2  ;;  %v1096_v2 = vmul.f32 %v5222_v25, %v5477_v50  ;;  %6678 = vst [vmem:[#allocation83_spill] sm:$0xff] %v5901_v6  ;;  %s333_s16 = scalar_lea.vmem [#allocation14], %s6841_s7 }
 0x545   : > { %s3662_s9 = sshll.u32 %s333_s16, 4  ;;  %p6843_p9 = scmp.ne.s32.totalorder %s6840_s24, 0  ;;  %s3663_s9 = int_to_ptr.vmem [resolvable:$true] %s3662_s9 }
 0x546   : > { %1686 = vrot.lane.b32.xlu0 %v1684_v32, %s6482_s17  ;;  %1665 = vrot.lane.b32.xlu1 %v1663_v49, %s6482_s17  ;;  %v5533_v32 = vstv %s3838_s4  ;;  %v1753_v49 = vmul.f32 %v5360_v30, %v5531_v58  ;;  %v1311_v30 = vmul.f32 %v5291_v46, %v5384_v5  ;;  %s5697_s4 = sld [smem:[#allocation7 + $0x201]]  ;;  %s4659_s11 = scalar_lea.vmem %s3663_s9, 128 }
 0x547   : > { %v1747_v20 = vmul.f32 %v5372_v42, %v5533_v32  ;;  %v1320_v42 = vmul.f32 %v5291_v46, %v5374_v43  ;;  %v1111_v13 = vmul.f32 %v5224_v26, %v5533_v32  ;;  %p4660_p8 = scmp.ne.s32.totalorder %s3663_s9, %s4659_s11 }
 0x548   : > { %v5881_v63 = vstv %s5695_s3 }
 0x549   : > { %6669 = vst [vmem:[#allocation77_spill] sm:$0xff] %v5881_v63  ;;  %p4661_p11 = pnand %p4660_p8, %p6843_p9 }
 0x54a   : > { %1728 = vrot.lane.b32.xlu0 %v1726_v52, %s6482_s17  ;;  %1707 = vrot.lane.b32.xlu1 %v1705_v57, %s6482_s17  ;;  %v1305_v52 = vmul.f32 %v5293_v47, %v5489_v56  ;;  %v1299_v57 = vmul.f32 %v5291_v46, %v5362_v3 }
 0x54b   : > { %p4662_p13 = pneg %p4661_p11 }
 0x54e   : > { %1755 = vrot.lane.b32.xlu0 %v1753_v49, %s6478_s28  ;;  %1749 = vrot.lane.b32.xlu1 %v1747_v20, %s6482_s17  ;;  %v1341_v20 = vmul.f32 %v5291_v46, %v5427_v53  ;;  %v1326_v49 = vmul.f32 %v5293_v47, %v5497_v1 }
 0x552   : > { %1307 = vrot.lane.b32.xlu0 %v1305_v52, %s6482_s17  ;;  %1301 = vrot.lane.b32.xlu1 %v1299_v57, %s6482_s17  ;;  %v1347_v52 = vmul.f32 %v5293_v47, %v5507_v18  ;;  %v1332_v57 = vmul.f32 %v5291_v46, %v5380_v0 }
 0x556   : > { %1313 = vrot.lane.b32.xlu0 %v1311_v30, %s6478_s28  ;;  %1322 = vrot.lane.b32.xlu1 %v1320_v42, %s6482_s17  ;;  %v1353_v30 = vmul.f32 %v5291_v46, %v5459_v61  ;;  %v1362_v42 = vmul.f32 %v5291_v46, %v5390_v11 }
 0x55a   : > { %1343 = vrot.lane.b32.xlu0 %v1341_v20, %s6482_s17  ;;  %1328 = vrot.lane.b32.xlu1 %v1326_v49, %s6482_s17  ;;  %v1383_v20 = vmul.f32 %v5291_v46, %v5469_v23  ;;  %v1368_v49 = vmul.f32 %v5293_v47, %v5505_v62 }
 0x55e   : > { %1349 = vrot.lane.b32.xlu0 %v1347_v52, %s6482_s17  ;;  %1334 = vrot.lane.b32.xlu1 %v1332_v57, %s6478_s28  ;;  %v1389_v52 = vmul.f32 %v5293_v47, %v5517_v51  ;;  %v1374_v57 = vmul.f32 %v5291_v46, %v5456_v60 }
 0x562   : > { %1355 = vrot.lane.b32.xlu0 %v1353_v30, %s6478_s28  ;;  %1364 = vrot.lane.b32.xlu1 %v1362_v42, %s6482_s17  ;;  %v1395_v30 = vmul.f32 %v5291_v46, %v5479_v36  ;;  %v1404_v42 = vmul.f32 %v5291_v46, %v5467_v21 }
 0x566   : > { %1385 = vrot.lane.b32.xlu0 %v1383_v20, %s6482_s17  ;;  %1370 = vrot.lane.b32.xlu1 %v1368_v49, %s6482_s17  ;;  %v1425_v20 = vmul.f32 %v5291_v46, %v5487_v55  ;;  %v1410_v49 = vmul.f32 %v5293_v47, %v5515_v40 }
 0x56a   : > { %1391 = vrot.lane.b32.xlu0 %v1389_v52, %s6482_s17  ;;  %1376 = vrot.lane.b32.xlu1 %v1374_v57, %s6478_s28  ;;  %v1431_v52 = vmul.f32 %v5293_v47, %v5533_v32  ;;  %v1416_v57 = vmul.f32 %v5291_v46, %v5477_v50  ;;  %v1000_v47 = vmul.f32 %v5222_v25, %v5374_v43 }
 0x56e   : > { %1397 = vrot.lane.b32.xlu0 %v1395_v30, %s6478_s28  ;;  %1406 = vrot.lane.b32.xlu1 %v1404_v42, %s6482_s17  ;;  %v979_v30 = vmul.f32 %v5222_v25, %v5362_v3  ;;  %v1437_v42 = vmul.f32 %v5291_v46, %v5531_v58  ;;  %v991_v46 = vmul.f32 %v5222_v25, %v5384_v5  ;;  %v5915_v58 = vstv %s5731_s12 }
 0x56f   : > { %6683 = vst [vmem:[#allocation87_spill] sm:$0xff] %v5915_v58 }
 0x572   : > { %1427 = vrot.lane.b32.xlu0 %v1425_v20, %s6482_s17  ;;  %1412 = vrot.lane.b32.xlu1 %v1410_v49, %s6482_s17  ;;  %v985_v20 = vmul.f32 %v5224_v26, %v5489_v56  ;;  %v1006_v49 = vmul.f32 %v5224_v26, %v5497_v1 }
 0x576   : > { %1433 = vrot.lane.b32.xlu0 %v1431_v52, %s6482_s17  ;;  %1418 = vrot.lane.b32.xlu1 %v1416_v57, %s6478_s28  ;;  %v1012_v52 = vmul.f32 %v5222_v25, %v5380_v0  ;;  %v1021_v57 = vmul.f32 %v5222_v25, %v5427_v53  ;;  %v5785_v0 = vmul.f32 %v5469_v23, %v5097_v38 }
 0x57a   : > { %981 = vrot.lane.b32.xlu0 %v979_v30, %s6482_s17  ;;  %1439 = vrot.lane.b32.xlu1 %v1437_v42, %s6478_s28  ;;  %v1042_v30 = vmul.f32 %v5222_v25, %v5390_v11  ;;  %v1027_v42 = vmul.f32 %v5224_v26, %v5507_v18 }
 0x57e   : > { %1002 = vrot.lane.b32.xlu0 %v1000_v47, %s6482_s17  ;;  %987 = vrot.lane.b32.xlu1 %v985_v20, %s6482_s17  ;;  %v1048_v47 = vmul.f32 %v5224_v26, %v5505_v62  ;;  %v1033_v20 = vmul.f32 %v5222_v25, %v5459_v61 }
 0x582   : > { %1008 = vrot.lane.b32.xlu0 %v1006_v49, %s6482_s17  ;;  %993 = vrot.lane.b32.xlu1 %v991_v46, %s6478_s28  ;;  %v1054_v49 = vmul.f32 %v5222_v25, %v5456_v60  ;;  %v1063_v46 = vmul.f32 %v5222_v25, %v5469_v23  ;;  %v5804_v23 = vmul.f32 %v5456_v60, %v5097_v38  ;;  %v5825_v60 = vstv %s5645_s10  ;;  %s5875_s10 = sld [smem:[#allocation7 + $0x380]] }
 0x583   : > { %6655 = vst [vmem:[#allocation63_spill] sm:$0xff] %v5825_v60 }
 0x586   : > { %1014 = vrot.lane.b32.xlu0 %v1012_v52, %s6478_s28  ;;  %1023 = vrot.lane.b32.xlu1 %v1021_v57, %s6482_s17 }
 0x58a   : > { %1044 = vrot.lane.b32.xlu0 %v1042_v30, %s6482_s17  ;;  %1029 = vrot.lane.b32.xlu1 %v1027_v42, %s6482_s17  ;;  %v1084_v30 = vmul.f32 %v5222_v25, %v5467_v21  ;;  %v1069_v42 = vmul.f32 %v5224_v26, %v5517_v51 }
 0x58e   : > { %1050 = vrot.lane.b32.xlu0 %v1048_v47, %s6482_s17  ;;  %1035 = vrot.lane.b32.xlu1 %v1033_v20, %s6478_s28 }
 0x592   : > { %1056 = vrot.lane.b32.xlu0 %v1054_v49, %s6478_s28  ;;  %1065 = vrot.lane.b32.xlu1 %v1063_v46, %s6482_s17  ;;  %v1090_v49 = vmul.f32 %v5224_v26, %v5515_v40  ;;  %v1075_v46 = vmul.f32 %v5222_v25, %v5479_v36  ;;  %v626_v25 = vmul.f32 %v5489_v56, %v5099_v39 }
 0x593   : > { %v619_v26 = vmul.f32 %v5362_v3, %v5097_v38  ;;  %v633_v56 = vmul.f32 %v5384_v5, %v5097_v38  ;;  %v645_v3 = vmul.f32 %v5374_v43, %v5097_v38  ;;  %v5773_v5 = vmul.f32 %v5459_v61, %v5097_v38 }
 0x594   : > { %v5663_v52 = vpop.permute.xlu0 %1617  ;;  %v5665_v57 = vpop.permute.xlu1 %1596  ;;  %v5777_v43 = vmul.f32 %v5390_v11, %v5097_v38  ;;  %v5795_v11 = vmul.f32 %v5517_v51, %v5099_v39  ;;  %v5798_v61 = vstv %s5633_s14  ;;  %s5830_s14 = sld [smem:[#allocation7 + $0x283]] }
 0x595   : > { %6652 = vst [vmem:[#allocation60_spill] sm:$0xff] %v5798_v61  ;;  %v1599_v28 = vadd.f32 %v5665_v57, %v5416_v48 }
 0x596   : > { %1086 = vrot.lane.b32.xlu0 %v1084_v30, %s6482_s17  ;;  %1071 = vrot.lane.b32.xlu1 %v1069_v42, %s6482_s17 }
 0x598   : > { %v5681_v47 = vpop.permute.xlu0 %1608  ;;  %v5683_v20 = vpop.permute.xlu1 %1638 }
 0x59a   : > { %1092 = vrot.lane.b32.xlu0 %v1090_v49, %s6482_s17  ;;  %1077 = vrot.lane.b32.xlu1 %v1075_v46, %s6478_s28 }
 0x59c   : > { %v5699_v30 = vpop.permute.xlu0 %1650  ;;  %v5701_v42 = vpop.permute.xlu1 %1629 }
 0x59e   : > { %1098 = vrot.lane.b32.xlu0 %v1096_v2, %s6478_s28  ;;  %1107 = vrot.lane.b32.xlu1 %v1105_v19, %s6482_s17 }
 0x5a0   : > { %v5717_v49 = vpop.permute.xlu0 %1680  ;;  %v5719_v46 = vpop.permute.xlu1 %1659 }
 0x5a2   : > { %1119 = vrot.lane.b32.xlu0 %v1117_v16, %s6478_s28  ;;  %1113 = vrot.lane.b32.xlu1 %v1111_v13, %s6482_s17  ;;  %s5749_s28 = sld [smem:[#allocation7 + $0x302]] }
 0x5a4   : > { %v5735_v2 = vpop.permute.xlu0 %1692  ;;  %v5737_v19 = vpop.permute.xlu1 %1671 }
 0x5a6   : > { %628 = vrot.lane.b32.xlu0 %v626_v25, %s6482_s17  ;;  %621 = vrot.lane.b32.xlu1 %v619_v26, %s6482_s17  ;;  %v671_v25 = vmul.f32 %v5427_v53, %v5097_v38  ;;  %v652_v26 = vmul.f32 %v5497_v1, %v5099_v39  ;;  %s5765_s17 = sld [smem:[#allocation7 + $0x304]]  ;;  %v5789_v53 = vmul.f32 %v5505_v62, %v5099_v39 }
 0x5a7   : > { %v5808_v1 = vmul.f32 %v5479_v36, %v5097_v38  ;;  %v5812_v62 = vmul.f32 %v5467_v21, %v5097_v38  ;;  %v5833_v21 = vstv %s5653_s19  ;;  %v5836_v36 = vstv %s5655_s20  ;;  %s6676_s19 = sld [smem:[#allocation57_spill]] }
 0x5a8   : > { %6646 = sst [smem:[#allocation56_spill]] %s5749_s28  ;;  %v5753_v13 = vpop.permute.xlu0 %1722  ;;  %v5755_v16 = vpop.permute.xlu1 %1701  ;;  %6657 = vst [vmem:[#allocation65_spill] sm:$0xff] %v5833_v21  ;;  %6658 = vst [vmem:[#allocation66_spill] sm:$0xff] %v5836_v36 }
 0x5a9   : > { %s5791_s28 = sld [smem:[#allocation7 + $0x281]] }
 0x5aa   : > { %635 = vrot.lane.b32.xlu0 %v633_v56, %s6650_s29  ;;  %v5819_v56 = vstv %s5639_s26  ;;  %s5844_s26 = sld [smem:[#allocation7 + $0x284]] }
 0x5ab   : > { %6653 = vst [vmem:[#allocation61_spill] sm:$0xff] %v5819_v56  ;;  %s6674_s13 = sld [smem:[#allocation56_spill]] }
 0x5ac   : > { %6648 = sst [smem:[#allocation58_spill]] %s5765_s17  ;;  %s6651_s17 = smov 127   ;;  %v5814_v18 = vpop.permute.xlu0 %1734  ;;  %v5816_v51 = vpop.permute.xlu1 %1713 }
 0x5ad   : > { %647 = vrot.lane.b32.xlu1 %v645_v3, %s6651_s17  ;;  %v5822_v3 = vstv %s5641_s8  ;;  %s5862_s8 = sld [smem:[#allocation7 + $0x381]] }
 0x5ae   : > { %6654 = vst [vmem:[#allocation62_spill] sm:$0xff] %v5822_v3  ;;  %673 = vrot.lane.b32.xlu0 %v671_v25, %s6651_s17  ;;  %v1620_v25 = vadd.f32 %v5663_v52, %v5408_v24  ;;  %v5884_v24 = vstv %s5697_s4  ;;  %v5887_v52 = vstv %s5707_s5  ;;  %s6677_s20 = sld [smem:[#allocation58_spill]] }
 0x5af   : > { %6670 = vst [vmem:[#allocation78_spill] sm:$0xff] %v5884_v24  ;;  %6671 = vst [vmem:[#allocation79_spill] sm:$0xff] %v5887_v52  ;;  %v5944_v15 = vstv %s5791_s28  ;;  %s5992_s5 = sld [smem:[#allocation7 + $0x382]] }
 0x5b0   : > { %v1744_v55 = vpop.permute.xlu1 %1743  ;;  %v1624_v40 = vpop.permute.xlu0 %1623  ;;  %6691 = vst [vmem:[#allocation95_spill] sm:$0xff] %v5944_v15  ;;  %s6842_s28 = sld [smem:[#allocation108_spill]] }
 0x5b1   : > { %654 = vrot.lane.b32.xlu1 %v652_v26, %s6651_s17  ;;  %v5867_v26 = vstv %s5677_s15  ;;  %v1626_v45 = vadd.f32 %v1624_v40, %v1620_v25  ;;  %v5908_v25 = vmul.f32 %v5533_v32, %v5099_v39  ;;  %v5912_v40 = vmul.f32 %v5477_v50, %v5097_v38  ;;  %s4663_s15 = sshll.u32 %s4753_s30, 4  ;;  %s4664_s15 = int_to_ptr.vmem [resolvable:$false] %s4663_s15 }
 0x5b2   : > { %6665 = vst [vmem:[#allocation73_spill] sm:$0xff] %v5867_v26  ;;  %680 = vrot.lane.b32.xlu0 %v678_v12, %s6651_s17  ;;  %v5918_v12 = vstv %s5733_s21  ;;  %v1641_v39 = vadd.f32 %v5683_v20, %v5418_v37  ;;  %v5931_v38 = vstv %s6674_s13  ;;  %v5951_v37 = vstv %s5800_s27  ;;  %s6018_s21 = sld [smem:[#allocation7 + $0x384]]  ;;  %s3906_s27 = sshll.u32 %s6837_s22, 7 }
 0x5b3   : > { %6681 = vst [vmem:[#allocation85_spill] sm:$0xff] %v5908_v25  ;;  %6682 = vst [vmem:[#allocation86_spill] sm:$0xff] %v5912_v40  ;;  %v5934_v40 = vstv %s6676_s19  ;;  %v1632_v25 = vadd.f32 %v5701_v42, %v1626_v45  ;;  %v5954_v20 = vstv %s5830_s14  ;;  %v1662_v45 = vadd.f32 %v5719_v46, %v5435_v29  ;;  %s4665_s1 = scalar_lea.vmem %s4664_s15, 256  ;;  %p4666_p0 = scmp.lt.s32.totalorder %s3663_s9, %s4664_s15 }
 0x5b4   : > { %6684 = vst [vmem:[#allocation88_spill] sm:$0xff] %v5918_v12  ;;  %v1645_v32 = vpop.permute.xlu0 %1644  ;;  %v1603_v50 = vpop.permute.xlu1 %1602  ;;  %6687 = vst [vmem:[#allocation91_spill] sm:$0xff] %v5931_v38  ;;  %v5959_v42 = vstv %s5844_s26  ;;  %v1704_v29 = vadd.f32 %v5755_v16, %v5449_v59  ;;  %v1746_v46 = vadd.f32 %v1744_v55, %v5451_v14  ;;  %p4667_p1 = scmp.lt.s32.totalorder %s4665_s1, %s4659_s11 }
 0x5b5   : > { %661 = vrot.lane.b32.xlu1 %v659_v9, %s6650_s29  ;;  %v5921_v9 = vstv %s5743_s6  ;;  %6688 = vst [vmem:[#allocation92_spill] sm:$0xff] %v5934_v40  ;;  %v1647_v48 = vadd.f32 %v1645_v32, %v1641_v39  ;;  %v1605_v57 = vadd.f32 %v1603_v50, %v1599_v28  ;;  %6692 = vst [vmem:[#allocation96_spill] sm:$0xff] %v5954_v20  ;;  %v5965_v40 = vstv %s5875_s10  ;;  %s5995_s6 = sld [smem:[#allocation7 + $0x383]] }
 0x5b6   : > { %6685 = vst [vmem:[#allocation89_spill] sm:$0xff] %v5921_v9  ;;  %v5938_v9 = vstv %s6677_s20  ;;  %687 = vrot.lane.b32.xlu0 %v5773_v5, %s6650_s29  ;;  %6693 = vst [vmem:[#allocation97_spill] sm:$0xff] %v5959_v42  ;;  %v1683_v28 = vadd.f32 %v5717_v49, %v5429_v54  ;;  %v1725_v5 = vadd.f32 %v5753_v13, %v5447_v34  ;;  %p4668_p3 = por %p4667_p1, %p4666_p0 }
 0x5b7   : > { %6689 = vst [vmem:[#allocation93_spill] sm:$0xff] %v5938_v9  ;;  %v5962_v9 = vstv %s5862_s8  ;;  %6695 = vst [vmem:[#allocation99_spill] sm:$0xff] %v5965_v40  ;;  %v1611_v39 = vadd.f32 %v5681_v47, %v1605_v57  ;;  %v1762_v42 = vmul.f32 %v5798_v61, %v1632_v25  ;;  %v1786_v40 = vmul.f32 %v5819_v56, %v1632_v25 }
 0x5b8   : > { %6694 = vst [vmem:[#allocation98_spill] sm:$0xff] %v5962_v9  ;;  %v1687_v32 = vpop.permute.xlu0 %1686  ;;  %v1666_v50 = vpop.permute.xlu1 %1665  ;;  %v1957_v54 = vmul.f32 %v5822_v3, %v1632_v25  ;;  %v2055_v34 = vmul.f32 %v5825_v60, %v1632_v25  ;;  %v2153_v47 = vmul.f32 %v5828_v8, %v1632_v25  ;;  %p4669_p4 = pnand %p4668_p3, %p4662_p13 }
 0x5b9   : > { %699 = vrot.lane.b32.xlu1 %v5777_v43, %s6651_s17  ;;  %v1653_v43 = vadd.f32 %v5699_v30, %v1647_v48  ;;  %v1668_v20 = vadd.f32 %v1666_v50, %v1662_v45  ;;  %v1689_v49 = vadd.f32 %v1687_v32, %v1683_v28  ;;  %v1760_v30 = vmul.f32 %v5852_v17, %v1611_v39 }
 0x5ba   : > { %725 = vrot.lane.b32.xlu0 %v5785_v0, %s6651_s17  ;;  %v1784_v59 = vmul.f32 %v5867_v26, %v1611_v39  ;;  %v1955_v14 = vmul.f32 %v5870_v7, %v1611_v39  ;;  %v2053_v16 = vmul.f32 %v5873_v4, %v1611_v39  ;;  %v2151_v55 = vmul.f32 %v5878_v31, %v1611_v39 }
 0x5bb   : > { %v1765_v13 = vmul.f32 %v5833_v21, %v1653_v43  ;;  %v1674_v48 = vadd.f32 %v5737_v19, %v1668_v20  ;;  %v1789_v25 = vmul.f32 %v5836_v36, %v1653_v43  ;;  %v1763_v45 = vadd.f32 %v1762_v42, %v1760_v30 }
 0x5bc   : > { %v1729_v0 = vpop.permute.xlu0 %1728  ;;  %v1708_v57 = vpop.permute.xlu1 %1707  ;;  %v1787_v28 = vadd.f32 %v1786_v40, %v1784_v59  ;;  %v1958_v32 = vadd.f32 %v1957_v54, %v1955_v14  ;;  %v2056_v50 = vadd.f32 %v2055_v34, %v2053_v16  ;;  %v2154_v7 = vadd.f32 %v2153_v47, %v2151_v55 }
 0x5bd   : > { %706 = vrot.lane.b32.xlu1 %v5789_v53, %s6651_s17  ;;  %v1960_v53 = vmul.f32 %v5839_v41, %v1653_v43  ;;  %v1695_v4 = vadd.f32 %v5735_v2, %v1689_v49  ;;  %v2058_v19 = vmul.f32 %v5842_v33, %v1653_v43  ;;  %v2156_v20 = vmul.f32 %v5849_v22, %v1653_v43 }
 0x5be   : > { %732 = vrot.lane.b32.xlu0 %v5795_v11, %s6651_s17  ;;  %v1766_v39 = vadd.f32 %v1765_v13, %v1763_v45  ;;  %v1731_v31 = vadd.f32 %v1729_v0, %v1725_v5  ;;  %v1768_v40 = vmul.f32 %v5896_v27, %v1674_v48  ;;  %v1790_v42 = vadd.f32 %v1789_v25, %v1787_v28 }
 0x5bf   : > { %v1792_v54 = vmul.f32 %v5901_v6, %v1674_v48  ;;  %v1961_v34 = vadd.f32 %v1960_v53, %v1958_v32  ;;  %v1963_v2 = vmul.f32 %v5904_v35, %v1674_v48  ;;  %v2059_v49 = vadd.f32 %v2058_v19, %v2056_v50  ;;  %v6699_v19 = vld [vmem:[#allocation81_spill] sm:$0xff] }
 0x5c0   : > { %v1750_v47 = vpop.permute.xlu1 %1749  ;;  %v2061_v11 = vmul.f32 %v5915_v58, %v1674_v48  ;;  %v2157_v30 = vadd.f32 %v2156_v20, %v2154_v7  ;;  %v1771_v43 = vmul.f32 %v5881_v63, %v1695_v4  ;;  %v1769_v59 = vadd.f32 %v1768_v40, %v1766_v39  ;;  %v1756_v28 = vpop.permute.xlu0 %1755  ;;  %v6700_v39 = vld [vmem:[#allocation72_spill] sm:$0xff]  ;;  %v6701_v40 = vld [vmem:[#allocation89_spill] sm:$0xff] }
 0x5c1   : > { %713 = vrot.lane.b32.xlu1 %v5804_v23, %s6650_s29  ;;  %v1793_v5 = vadd.f32 %v1792_v54, %v1790_v42  ;;  %v2159_v23 = vmul.f32 %v5918_v12, %v1674_v48  ;;  %v1964_v14 = vadd.f32 %v1963_v2, %v1961_v34  ;;  %v1710_v16 = vadd.f32 %v1708_v57, %v1704_v29  ;;  %v6702_v54 = vld [vmem:[#allocation90_spill] sm:$0xff] }
 0x5c2   : > { %739 = vrot.lane.b32.xlu0 %v5808_v1, %s6650_s29  ;;  %v2062_v13 = vadd.f32 %v2061_v11, %v2059_v49  ;;  %v1752_v55 = vadd.f32 %v1750_v47, %v1746_v46  ;;  %v1795_v7 = vmul.f32 %v5884_v24, %v1695_v4  ;;  %v1966_v0 = vmul.f32 %v5887_v52, %v1695_v4  ;;  %v6703_v11 = vld [vmem:[#allocation99_spill] sm:$0xff] }
 0x5c3   : > { %v2160_v25 = vadd.f32 %v2159_v23, %v2157_v30  ;;  %v1737_v45 = vadd.f32 %v5814_v18, %v1731_v31  ;;  %v1716_v48 = vadd.f32 %v5816_v51, %v1710_v16  ;;  %v6022_v32 = vstv %s5992_s5  ;;  %v6705_v23 = vld [vmem:[#allocation97_spill] sm:$0xff] }
 0x5c4   : > { %v1758_v1 = vadd.f32 %v1756_v28, %v1752_v55  ;;  %6696 = vst [vmem:[#allocation100_spill] sm:$0xff] %v6022_v32  ;;  %v6025_v29 = vstv %s5995_s6  ;;  %v2064_v46 = vmul.f32 %v5890_v44, %v1695_v4  ;;  %v1796_v57 = vadd.f32 %v1795_v7, %v1793_v5  ;;  %v6706_v16 = vld [vmem:[#allocation85_spill] sm:$0xff] }
 0x5c5   : > { %751 = vrot.lane.b32.xlu1 %v5812_v62, %s6651_s17  ;;  %6697 = vst [vmem:[#allocation101_spill] sm:$0xff] %v6025_v29  ;;  %v6698_v62 = vld [vmem:[#allocation71_spill] sm:$0xff]  ;;  %v1772_v53 = vadd.f32 %v1771_v43, %v1769_v59  ;;  %v1967_v50 = vadd.f32 %v1966_v0, %v1964_v14  ;;  %v2162_v31 = vmul.f32 %v6699_v19, %v1695_v4  ;;  %v6704_v59 = vld [vmem:[#allocation96_spill] sm:$0xff] }
 0x5c6   : > { %777 = vrot.lane.b32.xlu0 %v6698_v62, %s6651_s17  ;;  %v1774_v18 = vmul.f32 %v5941_v10, %v1716_v48  ;;  %v1798_v20 = vmul.f32 %v5944_v15, %v1716_v48  ;;  %v1969_v51 = vmul.f32 %v5951_v37, %v1716_v48  ;;  %v1777_v42 = vmul.f32 %v6701_v40, %v1737_v45  ;;  %v6707_v62 = vld [vmem:[#allocation86_spill] sm:$0xff] }
 0x5c7   : > { %v1801_v34 = vmul.f32 %v6702_v54, %v1737_v45  ;;  %v1972_v47 = vmul.f32 %v5931_v38, %v1737_v45  ;;  %v1804_v2 = vmul.f32 %v5962_v9, %v1758_v1  ;;  %v1780_v30 = vmul.f32 %v6703_v11, %v1758_v1 }
 0x5c8   : > { %v1799_v49 = vadd.f32 %v1798_v20, %v1796_v57  ;;  %v1775_v4 = vadd.f32 %v1774_v18, %v1772_v53  ;;  %v1970_v43 = vadd.f32 %v1969_v51, %v1967_v50  ;;  %v2067_v5 = vmul.f32 %v6704_v59, %v1716_v48  ;;  %v6709_v50 = vld [vmem:[#allocation92_spill] sm:$0xff]  ;;  %v6710_v51 = vld [vmem:[#allocation93_spill] sm:$0xff] }
 0x5c9   : > { %758 = vrot.lane.b32.xlu1 %v6700_v39, %s6651_s17  ;;  %v2165_v14 = vmul.f32 %v6705_v23, %v1716_v48  ;;  %v1975_v55 = vmul.f32 %v6022_v32, %v1758_v1  ;;  %v2065_v7 = vadd.f32 %v2064_v46, %v2062_v13  ;;  %v2163_v53 = vadd.f32 %v2162_v31, %v2160_v25  ;;  %v6055_v32 = vld [vmem:[#allocation12 + $0xc0] sm:$0xff]  ;;  %v6713_v31 = vld [vmem:[#allocation31_spill] sm:$0xff] }
 0x5ca   : > { %784 = vrot.lane.b32.xlu0 %v6706_v16, %s6651_s17  ;;  %v1802_v0 = vadd.f32 %v1801_v34, %v1799_v49  ;;  %v1778_v28 = vadd.f32 %v1777_v42, %v1775_v4  ;;  %v1973_v57 = vadd.f32 %v1972_v47, %v1970_v43  ;;  %v6049_v18 = vstv %s6018_s21  ;;  %v6053_v16 = vld [vmem:[#allocation12 + $0x80] sm:$0xff]  ;;  %6712 = vst [vmem:[#allocation89_spill] sm:$0xff] %v6055_v32  ;;  %v6714_v47 = vld [vmem:[#allocation55_spill] sm:$0xff]  ;;  %v6085_v43 = vld [vmem:[#allocation12 + $0x48] sm:$0xff]  ;;  %s6417_s17 = scalar_lea.hbm %s6842_s28, %s3906_s27 }
 0x5cb   : > { %6708 = vst [vmem:[#allocation71_spill] sm:$0xff] %v6049_v18  ;;  %v2070_v20 = vmul.f32 %v6709_v50, %v1737_v45  ;;  %v2168_v48 = vmul.f32 %v6710_v51, %v1737_v45  ;;  %6711 = vst [vmem:[#allocation72_spill] sm:$0xff] %v6053_v16  ;;  %v2068_v46 = vadd.f32 %v2067_v5, %v2065_v7  ;;  %v6715_v4 = vmov 0.0   ;;  %v6087_v5 = vld [vmem:[#allocation12 + $0x8] sm:$0xff]  ;;  %v1302_v7 = vpop.permute.xlu1 %1301 }
 0x5cc   : > { %v1805_v39 = vadd.f32 %v1804_v2, %v1802_v0  ;;  %v1781_v9 = vadd.f32 %v1780_v30, %v1778_v28  ;;  %v1976_v13 = vadd.f32 %v1975_v55, %v1973_v57  ;;  %v2073_v42 = vmul.f32 %v6025_v29, %v1758_v1  ;;  %v6069_v30 = vld [vmem:[#allocation12 + $0x100] sm:$0xff]  ;;  %6717 = vst [vmem:[#allocation96_spill] sm:$0xff] %v6085_v43  ;;  %v6720_v55 = vld [vmem:[#allocation54_spill] sm:$0xff]  ;;  %v1308_v0 = vpop.permute.xlu0 %1307 }
 0x5cd   : > { %765 = vrot.lane.b32.xlu1 %v6707_v62, %s6650_s29  ;;  %v2166_v34 = vadd.f32 %v2165_v14, %v2163_v53  ;;  %v2171_v25 = vmul.f32 %v6049_v18, %v1758_v1  ;;  %v2071_v45 = vadd.f32 %v2070_v20, %v2068_v46  ;;  %v789_v2 = vmul.f32 %v6714_v47, %v6713_v31  ;;  %v6719_v14 = vld [vmem:[#allocation53_spill] sm:$0xff]  ;;  %v6725_v51 = vld [vmem:[#allocation50_spill] sm:$0xff] }
 0x5ce   : > { %4219 = vmatmul.mubr.msk.f32.vlgmr.msra.gmra.mxu0 %vm1807_vm4, %v1805_v39  ;;  %4224 = vmatmul.mubr.msk.f32.vlgmr.msra.gmra.mxu1 %vm1807_vm4, %v1781_v9  ;;  %6716 = vst [vmem:[#allocation90_spill] sm:$0xff] %v6069_v30  ;;  %6718 = vst [vmem:[#allocation97_spill] sm:$0xff] %v6087_v5 }
 0x5cf   : > { %4227 = vmatpush3.msra.mxu0 %v6053_v16  ;;  %4232 = vmatpush3.msra.mxu1 %v6055_v32  ;;  %v2169_v49 = vadd.f32 %v2168_v48, %v2166_v34  ;;  %v2074_v9 = vadd.f32 %v2073_v42, %v2071_v45  ;;  %v1323_v28 = vpop.permute.xlu1 %1322 }
 0x5d0   : > { %4228 = vmatprep.mubr.msk.f32.mxu0 %vm4750_vm0, %v6715_v4  ;;  %4233 = vmatprep.mubr.msk.f32.mxu1 %vm4750_vm0, %v6715_v4  ;;  %v1314_v62 = vpop.permute.xlu0 %1313 }
 0x5d1   : > { %4236 = vmatprep.subr.mxu0 %v6715_v4  ;;  %791 = vrot.lane.b32.xlu1 %v789_v2, %s6650_s29  ;;  %v2172_v1 = vadd.f32 %v2171_v25, %v2169_v49  ;;  %v6721_v25 = vld [vmem:[#allocation46_spill] sm:$0xff]  ;;  %v6722_v49 = vld [vmem:[#allocation47_spill] sm:$0xff] }
 0x5d2   : > { %4229 = vmatmul.mubr.msk.f32.vlgmr.msra.gmra.mxu0 %vm1807_vm4, %v1976_v13  ;;  %4234 = vmatmul.mubr.msk.f32.vlgmr.msra.gmra.mxu1 %vm1807_vm4, %v2074_v9  ;;  %v1304_v45 = vadd.f32 %v1302_v7, %v6721_v25  ;;  %v1325_v9 = vadd.f32 %v1323_v28, %v6722_v49 }
 0x5d3   : > { %4237 = vmatpush3.msra.mxu0 %v6069_v30  ;;  %4238 = vmatprep.mubr.msk.f32.mxu0 %vm4750_vm0, %v6715_v4  ;;  %v1329_v57 = vpop.permute.xlu1 %1328 }
 0x5d4   : > { %4241 = vmatprep.subr.mxu1 %v6715_v4  ;;  %4248 = vmatprep.subr.mxu0 %v6715_v4  ;;  %v1344_v53 = vpop.permute.xlu0 %1343  ;;  %v1310_v2 = vadd.f32 %v1308_v0, %v1304_v45 }
 0x5d5   : > { %4245 = vmatprep.mubr.msk.f32.mxu1 %vm4750_vm0, %v6715_v4  ;;  %4242 = vmatpush3.msra.mxu1 %v6085_v43  ;;  %v1331_v43 = vadd.f32 %v1329_v57, %v1325_v9 }
 0x5d6   : > { %4239 = vmatmul.mubr.msk.f32.vlgmr.msra.gmra.mxu0 %vm1807_vm4, %v2172_v1  ;;  %4243 = vmatprep.subr.mxu1 %v6715_v4  ;;  %v6723_v1 = vld [vmem:[#allocation48_spill] sm:$0xff] }
 0x5d7   : > { %4252 = vmatprep.mubr.msk.f32.mxu0 %vm4750_vm0, %v6715_v4  ;;  %4249 = vmatpush3.msra.mxu0 %v6087_v5  ;;  %v1335_v20 = vpop.permute.xlu1 %1334  ;;  %v1316_v5 = vadd.f32 %v1314_v62, %v1310_v2 }
 0x5d8   : > { %4250 = vmatprep.subr.mxu0 %v6715_v4  ;;  %4244 = vmatpush3.msra.mxu1 %v6719_v14  ;;  %v1350_v48 = vpop.permute.xlu0 %1349  ;;  %v1346_v14 = vadd.f32 %v1344_v53, %v6723_v1  ;;  %v1337_v11 = vadd.f32 %v1335_v20, %v1331_v43 }
 0x5d9   : > { %4251 = vmatpush3.msra.mxu0 %v6720_v55  ;;  %4255 = vmatprep.subr.mxu1 %v6715_v4  ;;  %v2249_v28 = vmul.f32 %v5798_v61, %v1316_v5  ;;  %v2266_v53 = vmul.f32 %v5819_v56, %v1316_v5  ;;  %v2429_v62 = vmul.f32 %v5822_v3, %v1316_v5 }
 0x5da   : > { %4262 = vmatprep.subr.mxu0 %v6715_v4  ;;  %v1352_v16 = vadd.f32 %v1350_v48, %v1346_v14  ;;  %v6724_v4 = vld [vmem:[#allocation49_spill] sm:$0xff]  ;;  %v2520_v48 = vmul.f32 %v5825_v60, %v1316_v5 }
 0x5db   : > { %v1365_v39 = vpop.permute.xlu1 %1364 }
 0x5dc   : > { %v1356_v13 = vpop.permute.xlu0 %1355  ;;  %v1367_v18 = vadd.f32 %v1365_v39, %v6724_v4  ;;  %v2611_v4 = vmul.f32 %v5828_v8, %v1316_v5 }
 0x5dd   : > { %v1358_v38 = vadd.f32 %v1356_v13, %v1352_v16  ;;  %v2251_v16 = vmul.f32 %v5833_v21, %v1337_v11 }
 0x5df   : > { %v1371_v46 = vpop.permute.xlu1 %1370  ;;  %v2270_v49 = vmul.f32 %v5901_v6, %v1358_v38  ;;  %v2433_v9 = vmul.f32 %v5904_v35, %v1358_v38  ;;  %v2524_v1 = vmul.f32 %v5915_v58, %v1358_v38  ;;  %v2615_v14 = vmul.f32 %v5918_v12, %v1358_v38 }
 0x5e0   : > { %v1386_v42 = vpop.permute.xlu0 %1385  ;;  %v1373_v0 = vadd.f32 %v1371_v46, %v1367_v18  ;;  %v2431_v18 = vmul.f32 %v5839_v41, %v1337_v11  ;;  %v2522_v46 = vmul.f32 %v5842_v33, %v1337_v11 }
 0x5e1   : > { %v1388_v50 = vadd.f32 %v1386_v42, %v6725_v51  ;;  %v2253_v42 = vmul.f32 %v5896_v27, %v1358_v38 }
 0x5e3   : > { %v1377_v34 = vpop.permute.xlu1 %1376 }
 0x5e4   : > { %v1392_v31 = vpop.permute.xlu0 %1391  ;;  %v1379_v43 = vadd.f32 %v1377_v34, %v1373_v0 }
 0x5e5   : > { %v1394_v57 = vadd.f32 %v1392_v31, %v1388_v50  ;;  %v2613_v50 = vmul.f32 %v5849_v22, %v1337_v11 }
 0x5e7   : > { %v1407_v47 = vpop.permute.xlu1 %1406 }
 0x5e8   : > { %v1398_v55 = vpop.permute.xlu0 %1397 }
 0x5eb   : > { %v1413_v29 = vpop.permute.xlu1 %1412 }
 0x5ec   : > { %v1428_v20 = vpop.permute.xlu0 %1427 }
 0x5ef   : > { %v1419_v31 = vpop.permute.xlu1 %1418 }
 0x68e   : > { %v1877_v30 = vpop.f32.mrf.mxu0  ;;  %v1950_v32 = vpop.f32.mrf.mxu1 }
 0x68f   : > { %v1951_v45 = vadd.f32 %v1950_v32, %v1877_v30  ;;  %v2268_v32 = vmul.f32 %v5836_v36, %v1337_v11  ;;  %v1400_v30 = vadd.f32 %v1398_v55, %v1394_v57  ;;  %v2255_v55 = vmul.f32 %v5881_v63, %v1379_v43  ;;  %v6727_v63 = vld [vmem:[#allocation74_spill] sm:$0xff] }
 0x690   : > { %v4220_v7 = vpop.f32.mrf.mxu0  ;;  %v4225_v25 = vpop.f32.mrf.mxu1  ;;  %v2435_v11 = vmul.f32 %v5887_v52, %v1379_v43  ;;  %v2617_v57 = vmul.f32 %v6699_v19, %v1379_v43 }
 0x691   : > { %v2272_v25 = vmul.f32 %v5884_v24, %v1379_v43  ;;  %v6728_v24 = vld [vmem:[#allocation75_spill] sm:$0xff] }
 0x692   : > { %v2047_v2 = vpop.f32.mrf.mxu0  ;;  %v2145_v39 = vpop.f32.mrf.mxu1 }
 0x693   : > { %v2051_v51 = vadd.f32 %v2047_v2, %v1951_v45  ;;  %v2526_v45 = vmul.f32 %v5890_v44, %v1379_v43  ;;  %v2257_v2 = vmul.f32 %v5941_v10, %v1400_v30  ;;  %v6730_v43 = vld [vmem:[#allocation76_spill] sm:$0xff]  ;;  %v1440_v10 = vpop.permute.xlu1 %1439 }
 0x694   : > { %v4230_v13 = vpop.f32.mrf.mxu0  ;;  %v4235_v34 = vpop.f32.mrf.mxu1 }
 0x695   : > { %v2149_v5 = vadd.f32 %v2145_v39, %v2051_v51  ;;  %v6726_v51 = vld [vmem:[#allocation51_spill] sm:$0xff]  ;;  %v1434_v34 = vpop.permute.xlu0 %1433 }
 0x696   : > { %v2243_v7 = vpop.f32.mrf.mxu0  ;;  %v1409_v39 = vadd.f32 %v1407_v47, %v6726_v51 }
 0x697   : > { %v2247_v0 = vadd.f32 %v2243_v7, %v2149_v5  ;;  %v2274_v5 = vmul.f32 %v5944_v15, %v1400_v30  ;;  %v6729_v7 = vld [vmem:[#allocation52_spill] sm:$0xff]  ;;  %v2528_v15 = vmul.f32 %v6704_v59, %v1400_v30 }
 0x698   : > { %v4240_v13 = vpop.f32.mrf.mxu0  ;;  %v1430_v44 = vadd.f32 %v1428_v20, %v6729_v7  ;;  %v1415_v52 = vadd.f32 %v1413_v29, %v1409_v39  ;;  %v2619_v29 = vmul.f32 %v6705_v23, %v1400_v30 }
 0x699   : > { %v2248_v38 = vmul.f32 %v2247_v0, %v5852_v17  ;;  %v2265_v12 = vmul.f32 %v2247_v0, %v5867_v26  ;;  %v2428_v58 = vmul.f32 %v2247_v0, %v6727_v63  ;;  %v2519_v35 = vmul.f32 %v2247_v0, %v6728_v24 }
 0x69a   : > { %v2610_v19 = vmul.f32 %v2247_v0, %v6730_v43  ;;  %v2437_v17 = vmul.f32 %v5951_v37, %v1400_v30  ;;  %v1436_v27 = vadd.f32 %v1434_v34, %v1430_v44  ;;  %v1421_v26 = vadd.f32 %v1419_v31, %v1415_v52  ;;  %v6731_v52 = vld [vmem:[#allocation91_spill] sm:$0xff] }
 0x69b   : > { %v2250_v6 = vadd.f32 %v2249_v28, %v2248_v38  ;;  %v2267_v47 = vadd.f32 %v2266_v53, %v2265_v12  ;;  %v2430_v51 = vadd.f32 %v2429_v62, %v2428_v58  ;;  %v2521_v13 = vadd.f32 %v2520_v48, %v2519_v35 }
 0x69c   : > { %v2612_v22 = vadd.f32 %v2611_v4, %v2610_v19  ;;  %v1442_v20 = vadd.f32 %v1440_v10, %v1436_v27  ;;  %v2259_v35 = vmul.f32 %v6701_v40, %v1421_v26  ;;  %v2276_v44 = vmul.f32 %v6702_v54, %v1421_v26 }
 0x69d   : > { %v2252_v63 = vadd.f32 %v2251_v16, %v2250_v6  ;;  %v2269_v33 = vadd.f32 %v2268_v32, %v2267_v47  ;;  %v2432_v24 = vadd.f32 %v2431_v18, %v2430_v51  ;;  %v2523_v41 = vadd.f32 %v2522_v46, %v2521_v13  ;;  %v6732_v16 = vld [vmem:[#allocation92_spill] sm:$0xff]  ;;  %v6733_v18 = vld [vmem:[#allocation93_spill] sm:$0xff]  ;;  %v6735_v46 = vld [vmem:[#allocation98_spill] sm:$0xff] }
 0x69e   : > { %v2614_v0 = vadd.f32 %v2613_v50, %v2612_v22  ;;  %v2439_v19 = vmul.f32 %v6731_v52, %v1421_v26  ;;  %v2530_v32 = vmul.f32 %v6732_v16, %v1421_v26  ;;  %v2621_v10 = vmul.f32 %v6733_v18, %v1421_v26  ;;  %v6734_v22 = vld [vmem:[#allocation99_spill] sm:$0xff]  ;;  %v6742_v51 = vld [vmem:[#allocation72_spill] sm:$0xff]  ;;  %v6157_v13 = vld [vmem:[#allocation12 + $0x108] sm:$0xff] }
 0x69f   : > { %v2254_v39 = vadd.f32 %v2253_v42, %v2252_v63  ;;  %v2271_v28 = vadd.f32 %v2270_v49, %v2269_v33  ;;  %v2434_v12 = vadd.f32 %v2433_v9, %v2432_v24  ;;  %v2525_v58 = vadd.f32 %v2524_v1, %v2523_v41  ;;  %v6736_v42 = vld [vmem:[#allocation100_spill] sm:$0xff]  ;;  %v6737_v49 = vld [vmem:[#allocation101_spill] sm:$0xff]  ;;  %6743 = vst [vmem:[#allocation31_spill] sm:$0xff] %v6157_v13 }
 0x6a0   : > { %v2616_v6 = vadd.f32 %v2615_v14, %v2614_v0  ;;  %v2261_v27 = vmul.f32 %v6734_v22, %v1442_v20  ;;  %v2278_v50 = vmul.f32 %v6735_v46, %v1442_v20  ;;  %v2441_v31 = vmul.f32 %v6736_v42, %v1442_v20  ;;  %v6177_v0 = vld [vmem:[#allocation12 + $0x58] sm:$0xff] }
 0x6a1   : > { %v2273_v53 = vadd.f32 %v2272_v25, %v2271_v28  ;;  %v2256_v62 = vadd.f32 %v2255_v55, %v2254_v39  ;;  %v2436_v48 = vadd.f32 %v2435_v11, %v2434_v12  ;;  %v2527_v4 = vadd.f32 %v2526_v45, %v2525_v58  ;;  %v6738_v45 = vld [vmem:[#allocation71_spill] sm:$0xff]  ;;  %6746 = vst [vmem:[#allocation55_spill] sm:$0xff] %v6177_v0  ;;  %v6179_v39 = vld [vmem:[#allocation12 + $0x18] sm:$0xff] }
 0x6a2   : > { %v2618_v33 = vadd.f32 %v2617_v57, %v2616_v6  ;;  %v2532_v9 = vmul.f32 %v6737_v49, %v1442_v20  ;;  %v2623_v26 = vmul.f32 %v6738_v45, %v1442_v20  ;;  %v6741_v47 = vmov 0.0   ;;  %v6745_v20 = vld [vmem:[#allocation90_spill] sm:$0xff]  ;;  %6747 = vst [vmem:[#allocation53_spill] sm:$0xff] %v6179_v39  ;;  %v6181_v28 = vld [vmem:[#allocation12 + $0x50] sm:$0xff]  ;;  %v6750_v58 = vld [vmem:[#allocation96_spill] sm:$0xff]  ;;  %v982_v6 = vpop.permute.xlu0 %981 }
 0x6a3   : > { %v2275_v63 = vadd.f32 %v2274_v5, %v2273_v53  ;;  %v2258_v41 = vadd.f32 %v2257_v2, %v2256_v62  ;;  %v2438_v24 = vadd.f32 %v2437_v17, %v2436_v48  ;;  %v2529_v30 = vadd.f32 %v2528_v15, %v2527_v4  ;;  %v6144_v5 = vld [vmem:[#allocation12 + $0x88] sm:$0xff]  ;;  %6748 = vst [vmem:[#allocation54_spill] sm:$0xff] %v6181_v28  ;;  %v6185_v12 = vld [vmem:[#allocation12 + $0x10] sm:$0xff]  ;;  %v988_v53 = vpop.permute.xlu1 %987 }
 0x6a4   : > { %v2620_v1 = vadd.f32 %v2619_v29, %v2618_v33  ;;  %6739 = vst [vmem:[#allocation85_spill] sm:$0xff] %v6144_v5  ;;  %v6146_v17 = vld [vmem:[#allocation12 + $0xc8] sm:$0xff]  ;;  %v6744_v29 = vld [vmem:[#allocation89_spill] sm:$0xff]  ;;  %6749 = vst [vmem:[#allocation46_spill] sm:$0xff] %v6185_v12 }
 0x6a5   : > { %v2277_v14 = vadd.f32 %v2276_v44, %v2275_v63  ;;  %v2260_v55 = vadd.f32 %v2259_v35, %v2258_v41  ;;  %v2440_v25 = vadd.f32 %v2439_v19, %v2438_v24  ;;  %v2531_v11 = vadd.f32 %v2530_v32, %v2529_v30  ;;  %6740 = vst [vmem:[#allocation86_spill] sm:$0xff] %v6146_v17  ;;  %v6751_v35 = vld [vmem:[#allocation97_spill] sm:$0xff] }
 0x6a6   : > { %v2622_v34 = vadd.f32 %v2621_v10, %v2620_v1  ;;  %v4529_v44 = vld [vmem:[#allocation12 + $0x40] sm:$0xff]  ;;  %v1003_v62 = vpop.permute.xlu0 %1002  ;;  %v6753_v1 = vld [vmem:[#allocation40_spill] sm:$0xff] }
 0x6a7   : > { %v2279_v38 = vadd.f32 %v2278_v50, %v2277_v14  ;;  %v2262_v57 = vadd.f32 %v2261_v27, %v2260_v55  ;;  %v2442_v15 = vadd.f32 %v2441_v31, %v2440_v25  ;;  %v2533_v2 = vadd.f32 %v2532_v9, %v2531_v11  ;;  %v4530_v19 = vld [vmem:[#allocation12] sm:$0xff]  ;;  %v994_v48 = vpop.permute.xlu1 %993  ;;  %v6752_v31 = vld [vmem:[#allocation39_spill] sm:$0xff] }
 0x6a8   : > { %v2624_v7 = vadd.f32 %v2623_v26, %v2622_v34  ;;  %v984_v9 = vadd.f32 %v982_v6, %v6752_v31  ;;  %v1005_v14 = vadd.f32 %v1003_v62, %v6753_v1  ;;  %v6756_v1 = vld [vmem:[#allocation43_spill] sm:$0xff] }
 0x6a9   : > { %4246 = vmatmul.mubr.msk.f32.vlgmr.msra.gmra.mxu1 %vm1445_vm3, %v2279_v38  ;;  %4253 = vmatmul.mubr.msk.f32.vlgmr.msra.gmra.mxu0 %vm1445_vm3, %v2262_v57  ;;  %v6754_v38 = vld [vmem:[#allocation41_spill] sm:$0xff] }
 0x6aa   : > { %4256 = vmatpush3.msra.mxu1 %v6144_v5  ;;  %4263 = vmatpush3.msra.mxu0 %v6146_v17  ;;  %v1009_v4 = vpop.permute.xlu0 %1008  ;;  %v990_v55 = vadd.f32 %v988_v53, %v984_v9 }
 0x6ab   : > { %4257 = vmatprep.subr.mxu1 %v6741_v47  ;;  %4264 = vmatprep.subr.mxu0 %v6741_v47  ;;  %v1024_v32 = vpop.permute.xlu1 %1023  ;;  %v1011_v26 = vadd.f32 %v1009_v4, %v1005_v14 }
 0x6ac   : > { %4258 = vmatpush3.msra.mxu1 %v6742_v51  ;;  %4259 = vmatprep.mubr.msk.f32.mxu1 %vm4750_vm0, %v6741_v47  ;;  %v996_v34 = vadd.f32 %v994_v48, %v990_v55  ;;  %v1026_v57 = vadd.f32 %v1024_v32, %v6754_v38  ;;  %v6776_v51 = vld [vmem:[#allocation94_spill] sm:$0xff] }
 0x6ad   : > { %4265 = vmatpush3.msra.mxu0 %v6744_v29  ;;  %4266 = vmatprep.mubr.msk.f32.mxu0 %vm4750_vm0, %v6741_v47 }
 0x6ae   : > { %4269 = vmatprep.subr.mxu1 %v6741_v47  ;;  %4260 = vmatmul.mubr.msk.f32.vlgmr.msra.gmra.mxu1 %vm1445_vm3, %v2442_v15  ;;  %v1015_v10 = vpop.permute.xlu0 %1014  ;;  %v2721_v4 = vmul.f32 %v5819_v56, %v996_v34  ;;  %v2886_v48 = vmul.f32 %v5822_v3, %v996_v34  ;;  %v2979_v32 = vmul.f32 %v5825_v60, %v996_v34  ;;  %v6765_v56 = vld [vmem:[#allocation77_spill] sm:$0xff] }
 0x6af   : > { %4267 = vmatmul.mubr.msk.f32.vlgmr.msra.gmra.mxu0 %vm1445_vm3, %v2533_v2  ;;  %4270 = vmatpush3.msra.mxu1 %v6157_v13  ;;  %v1030_v27 = vpop.permute.xlu1 %1029  ;;  %v6775_v13 = vld [vmem:[#allocation75_spill] sm:$0xff] }
 0x6b0   : > { %4271 = vmatprep.subr.mxu1 %v6741_v47  ;;  %4273 = vmatprep.mubr.msk.f32.mxu1 %vm4750_vm0, %v6741_v47 }
 0x6b1   : > { %4272 = vmatpush3.msra.mxu1 %v6745_v20  ;;  %4276 = vmatprep.subr.mxu0 %v6741_v47  ;;  %v6774_v20 = vld [vmem:[#allocation74_spill] sm:$0xff] }
 0x6b2   : > { %4274 = vmatmul.mubr.msk.f32.vlgmr.msra.gmra.mxu1 %vm1445_vm3, %v2624_v7  ;;  %4287 = vmatprep.subr.mxu1 %v6741_v47  ;;  %v1045_v33 = vpop.permute.xlu0 %1044  ;;  %v1017_v7 = vadd.f32 %v1015_v10, %v1011_v26  ;;  %v6758_v26 = vld [vmem:[#allocation68_spill] sm:$0xff] }
 0x6b3   : > { %4284 = vmatprep.mubr.msk.f32.mxu0 %vm4750_vm0, %v6741_v47  ;;  %4295 = vmatprep.mubr.msk.f32.mxu1 %vm4750_vm0, %v6741_v47  ;;  %v1036_v63 = vpop.permute.xlu1 %1035 }
 0x6b4   : > { %4277 = vmatpush3.msra.mxu0 %v6177_v0  ;;  %4288 = vmatpush3.msra.mxu1 %v6179_v39  ;;  %v2981_v38 = vmul.f32 %v6758_v26, %v1017_v7 }
 0x6b5   : > { %4278 = vmatprep.subr.mxu0 %v6741_v47  ;;  %4289 = vmatprep.subr.mxu1 %v6741_v47 }
 0x6b6   : > { %4279 = vmatpush3.msra.mxu0 %v6181_v28  ;;  %4290 = vmatpush3.msra.mxu1 %v6185_v12  ;;  %v1051_v41 = vpop.permute.xlu0 %1050  ;;  %v2702_v28 = vmul.f32 %v5798_v61, %v996_v34 }
 0x6b7   : > { %4280 = vmatprep.subr.mxu0 %v6741_v47  ;;  %4291 = vmatprep.subr.mxu1 %v6741_v47  ;;  %v1066_v24 = vpop.permute.xlu1 %1065 }
 0x6b8   : > { %4281 = vmatpush3.msra.mxu0 %v6750_v58  ;;  %4292 = vmatpush3.msra.mxu1 %v6751_v35  ;;  %v1032_v35 = vadd.f32 %v1030_v27, %v1026_v57  ;;  %v1068_v10 = vadd.f32 %v1066_v24, %v6756_v1  ;;  %v3072_v27 = vmul.f32 %v5828_v8, %v996_v34  ;;  %v6761_v1 = vld [vmem:[#allocation83_spill] sm:$0xff] }
 0x6b9   : > { %4282 = vmatprep.subr.mxu0 %v6741_v47  ;;  %4293 = vmatprep.subr.mxu1 %v6741_v47 }
 0x6ba   : > { %4283 = vmatpush3.msra.mxu0 %v4529_v44  ;;  %4294 = vmatpush3.msra.mxu1 %v4530_v19  ;;  %v1057_v30 = vpop.permute.xlu0 %1056  ;;  %v6755_v44 = vld [vmem:[#allocation42_spill] sm:$0xff]  ;;  %v1038_v31 = vadd.f32 %v1036_v63, %v1032_v35  ;;  %v2723_v35 = vmul.f32 %v5836_v36, %v1017_v7  ;;  %v6757_v63 = vld [vmem:[#allocation67_spill] sm:$0xff] }
 0x6bb   : > { %4298 = vmatprep.subr.mxu0 %v6741_v47  ;;  %4309 = vmatprep.subr.mxu1 %v6741_v47  ;;  %v1072_v50 = vpop.permute.xlu1 %1071  ;;  %v1047_v19 = vadd.f32 %v1045_v33, %v6755_v44  ;;  %v2888_v55 = vmul.f32 %v6757_v63, %v1017_v7 }
 0x6bc   : > { %v1074_v57 = vadd.f32 %v1072_v50, %v1068_v10  ;;  %v2725_v60 = vmul.f32 %v6761_v1, %v1038_v31  ;;  %v6766_v50 = vld [vmem:[#allocation78_spill] sm:$0xff]  ;;  %v6768_v1 = vld [vmem:[#allocation80_spill] sm:$0xff] }
 0x6bd   : > { %v1053_v6 = vadd.f32 %v1051_v41, %v1047_v19  ;;  %v6760_v19 = vld [vmem:[#allocation82_spill] sm:$0xff] }
 0x6be   : > { %v1087_v25 = vpop.permute.xlu0 %1086  ;;  %v2706_v24 = vmul.f32 %v6760_v19, %v1038_v31 }
 0x6bf   : > { %v1078_v11 = vpop.permute.xlu1 %1077 }
 0x6c0   : > { %v1080_v3 = vadd.f32 %v1078_v11, %v1074_v57  ;;  %v6772_v11 = vld [vmem:[#allocation70_spill] sm:$0xff] }
 0x6c2   : > { %v1093_v62 = vpop.permute.xlu0 %1092 }
 0x6c3   : > { %v1108_v53 = vpop.permute.xlu1 %1107 }
 0x6c7   : > { %v1114_v19 = vpop.permute.xlu1 %1113 }
 0x769   : > { %v2351_v15 = vpop.f32.mrf.mxu1  ;;  %v2424_v2 = vpop.f32.mrf.mxu0 }
 0x76a   : > { %v2425_v9 = vadd.f32 %v2424_v2, %v2351_v15  ;;  %v6759_v2 = vld [vmem:[#allocation69_spill] sm:$0xff] }
 0x76b   : > { %v4247_v58 = vpop.f32.mrf.mxu1  ;;  %v4254_v12 = vpop.f32.mrf.mxu0  ;;  %v3074_v44 = vmul.f32 %v6759_v2, %v1017_v7 }
 0x76c   : > { %v2704_v12 = vmul.f32 %v5833_v21, %v1017_v7  ;;  %v1059_v58 = vadd.f32 %v1057_v30, %v1053_v6  ;;  %v6762_v21 = vld [vmem:[#allocation84_spill] sm:$0xff]  ;;  %v6763_v6 = vld [vmem:[#allocation87_spill] sm:$0xff]  ;;  %v1099_v2 = vpop.permute.xlu0 %1098 }
 0x76d   : > { %v2890_v30 = vmul.f32 %v6762_v21, %v1038_v31  ;;  %v6770_v21 = vld [vmem:[#allocation44_spill] sm:$0xff] }
 0x76e   : > { %v2514_v14 = vpop.f32.mrf.mxu1  ;;  %v2708_v26 = vmul.f32 %v6765_v56, %v1059_v58  ;;  %v2727_v10 = vmul.f32 %v6766_v50, %v1059_v58  ;;  %v1089_v39 = vadd.f32 %v1087_v25, %v6770_v21 }
 0x76f   : > { %v2518_v33 = vadd.f32 %v2514_v14, %v2425_v9  ;;  %v2605_v41 = vpop.f32.mrf.mxu0  ;;  %v2983_v9 = vmul.f32 %v6763_v6, %v1038_v31  ;;  %v6764_v14 = vld [vmem:[#allocation88_spill] sm:$0xff]  ;;  %v6771_v6 = vld [vmem:[#allocation45_spill] sm:$0xff] }
 0x770   : > { %v4261_v15 = vpop.f32.mrf.mxu1  ;;  %v3076_v36 = vmul.f32 %v6764_v14, %v1038_v31  ;;  %v1110_v0 = vadd.f32 %v1108_v53, %v6771_v6  ;;  %v6773_v14 = vld [vmem:[#allocation73_spill] sm:$0xff]  ;;  %v1095_v29 = vadd.f32 %v1093_v62, %v1089_v39  ;;  %v6777_v53 = vld [vmem:[#allocation95_spill] sm:$0xff]  ;;  %v1120_v17 = vpop.permute.xlu0 %1119  ;;  %v2987_v62 = vmul.f32 %v6704_v59, %v1080_v3 }
 0x771   : > { %v2609_v34 = vadd.f32 %v2605_v41, %v2518_v33  ;;  %v4268_v8 = vpop.f32.mrf.mxu0  ;;  %v6767_v15 = vld [vmem:[#allocation79_spill] sm:$0xff]  ;;  %v2985_v33 = vmul.f32 %v6768_v1, %v1059_v58  ;;  %v2729_v6 = vmul.f32 %v6777_v53, %v1080_v3 }
 0x772   : > { %v2696_v63 = vpop.f32.mrf.mxu1  ;;  %v2892_v7 = vmul.f32 %v6767_v15, %v1059_v58  ;;  %v6769_v8 = vld [vmem:[#allocation81_spill] sm:$0xff] }
 0x773   : > { %v2700_v61 = vadd.f32 %v2696_v63, %v2609_v34  ;;  %v3078_v41 = vmul.f32 %v6769_v8, %v1059_v58  ;;  %v2710_v63 = vmul.f32 %v6776_v51, %v1080_v3  ;;  %v1116_v34 = vadd.f32 %v1114_v19, %v1110_v0 }
 0x774   : > { %v4275_v31 = vpop.f32.mrf.mxu1  ;;  %v3080_v0 = vmul.f32 %v6705_v23, %v1080_v3 }
 0x775   : > { %v2701_v57 = vmul.f32 %v2700_v61, %v6772_v11  ;;  %v2720_v56 = vmul.f32 %v2700_v61, %v6773_v14  ;;  %v2885_v50 = vmul.f32 %v2700_v61, %v6774_v20  ;;  %v2978_v15 = vmul.f32 %v2700_v61, %v6775_v13 }
 0x776   : > { %v3071_v1 = vmul.f32 %v2700_v61, %v6730_v43  ;;  %v2894_v31 = vmul.f32 %v5951_v37, %v1080_v3  ;;  %v1101_v11 = vadd.f32 %v1099_v2, %v1095_v29  ;;  %v1122_v61 = vadd.f32 %v1120_v17, %v1116_v34 }
 0x777   : > { %v2703_v58 = vadd.f32 %v2702_v28, %v2701_v57  ;;  %v2722_v8 = vadd.f32 %v2721_v4, %v2720_v56  ;;  %v2887_v21 = vadd.f32 %v2886_v48, %v2885_v50  ;;  %v2980_v25 = vadd.f32 %v2979_v32, %v2978_v15 }
 0x778   : > { %v3073_v14 = vadd.f32 %v3072_v27, %v3071_v1  ;;  %v2712_v19 = vmul.f32 %v6701_v40, %v1101_v11  ;;  %v2731_v29 = vmul.f32 %v6702_v54, %v1101_v11  ;;  %v2896_v27 = vmul.f32 %v6731_v52, %v1101_v11 }
 0x779   : > { %v2705_v20 = vadd.f32 %v2704_v12, %v2703_v58  ;;  %v2724_v5 = vadd.f32 %v2723_v35, %v2722_v8  ;;  %v2889_v13 = vadd.f32 %v2888_v55, %v2887_v21  ;;  %v2982_v39 = vadd.f32 %v2981_v38, %v2980_v25  ;;  %v6252_v58 = vld [vmem:[#allocation12 + $0x90] sm:$0xff]  ;;  %v6782_v25 = vld [vmem:[#allocation85_spill] sm:$0xff] }
 0x77a   : > { %v3075_v28 = vadd.f32 %v3074_v44, %v3073_v14  ;;  %v2989_v1 = vmul.f32 %v6732_v16, %v1101_v11  ;;  %v3082_v3 = vmul.f32 %v6733_v18, %v1101_v11  ;;  %v2733_v17 = vmul.f32 %v6735_v46, %v1122_v61  ;;  %v6248_v11 = vld [vmem:[#allocation12 + $0xd8] sm:$0xff]  ;;  %6780 = vst [vmem:[#allocation49_spill] sm:$0xff] %v6252_v58  ;;  %v6254_v21 = vld [vmem:[#allocation12 + $0xd0] sm:$0xff] }
 0x77b   : > { %v2707_v56 = vadd.f32 %v2706_v24, %v2705_v20  ;;  %v2726_v4 = vadd.f32 %v2725_v60, %v2724_v5  ;;  %v2891_v48 = vadd.f32 %v2890_v30, %v2889_v13  ;;  %v2984_v32 = vadd.f32 %v2983_v9, %v2982_v39  ;;  %6779 = vst [vmem:[#allocation48_spill] sm:$0xff] %v6248_v11  ;;  %v6785_v39 = vld [vmem:[#allocation89_spill] sm:$0xff] }
 0x77c   : > { %v3077_v12 = vadd.f32 %v3076_v36, %v3075_v28  ;;  %v2714_v24 = vmul.f32 %v6734_v22, %v1122_v61  ;;  %v2898_v30 = vmul.f32 %v6736_v42, %v1122_v61  ;;  %v2991_v36 = vmul.f32 %v6737_v49, %v1122_v61  ;;  %6781 = vst [vmem:[#allocation50_spill] sm:$0xff] %v6254_v21  ;;  %v6789_v28 = vld [vmem:[#allocation90_spill] sm:$0xff] }
 0x77d   : > { %v2728_v35 = vadd.f32 %v2727_v10, %v2726_v4  ;;  %v2709_v55 = vadd.f32 %v2708_v26, %v2707_v56  ;;  %v2893_v38 = vadd.f32 %v2892_v7, %v2891_v48  ;;  %v2986_v2 = vadd.f32 %v2985_v33, %v2984_v32  ;;  %v3209_v56 = vld [vmem:[#allocation12 + $0x78] sm:$0xff]  ;;  %v3208_v48 = vld [vmem:[#allocation12 + $0x70] sm:$0xff] }
 0x77e   : > { %v3079_v60 = vadd.f32 %v3078_v41, %v3077_v12  ;;  %v3084_v7 = vmul.f32 %v6738_v45, %v1122_v61  ;;  %v6246_v41 = vld [vmem:[#allocation12 + $0x98] sm:$0xff]  ;;  %v6788_v61 = vld [vmem:[#allocation31_spill] sm:$0xff]  ;;  %v3183_v12 = vld [vmem:[#allocation12 + $0x20] sm:$0xff] }
 0x77f   : > { %v2730_v5 = vadd.f32 %v2729_v6, %v2728_v35  ;;  %v2711_v13 = vadd.f32 %v2710_v63, %v2709_v55  ;;  %v2895_v20 = vadd.f32 %v2894_v31, %v2893_v38  ;;  %v2988_v44 = vadd.f32 %v2987_v62, %v2986_v2  ;;  %6778 = vst [vmem:[#allocation47_spill] sm:$0xff] %v6246_v41  ;;  %v6783_v6 = vld [vmem:[#allocation86_spill] sm:$0xff]  ;;  %v6784_v31 = vld [vmem:[#allocation72_spill] sm:$0xff]  ;;  %v3185_v32 = vld [vmem:[#allocation12 + $0x30] sm:$0xff] }
 0x780   : > { %v3081_v26 = vadd.f32 %v3080_v0, %v3079_v60  ;;  %v6274_v62 = vld [vmem:[#allocation12 + $0x118] sm:$0xff]  ;;  %v6279_v0 = vld [vmem:[#allocation12 + $0x110] sm:$0xff]  ;;  %v6791_v55 = vld [vmem:[#allocation53_spill] sm:$0xff] }
 0x781   : > { %v2732_v9 = vadd.f32 %v2731_v29, %v2730_v5  ;;  %v2713_v14 = vadd.f32 %v2712_v19, %v2711_v13  ;;  %v2897_v50 = vadd.f32 %v2896_v27, %v2895_v20  ;;  %v2990_v10 = vadd.f32 %v2989_v1, %v2988_v44  ;;  %6786 = vst [vmem:[#allocation51_spill] sm:$0xff] %v6274_v62  ;;  %v3186_v4 = vld [vmem:[#allocation12 + $0x38] sm:$0xff]  ;;  %v3207_v19 = vld [vmem:[#allocation12 + $0x68] sm:$0xff]  ;;  %v3206_v27 = vld [vmem:[#allocation12 + $0x60] sm:$0xff]  ;;  %v622_v5 = vpop.permute.xlu1 %621  ;;  %v629_v13 = vpop.permute.xlu0 %628 }
 0x782   : > { %v3083_v15 = vadd.f32 %v3082_v3, %v3081_v26  ;;  %6787 = vst [vmem:[#allocation52_spill] sm:$0xff] %v6279_v0  ;;  %v3184_v29 = vld [vmem:[#allocation12 + $0x28] sm:$0xff]  ;;  %v6790_v35 = vld [vmem:[#allocation55_spill] sm:$0xff]  ;;  %v3202_v1 = vld [vmem:[#allocation12 + $0x40] sm:$0xff] }
 0x783   : > { %v2734_v33 = vadd.f32 %v2733_v17, %v2732_v9  ;;  %v2715_v8 = vadd.f32 %v2714_v24, %v2713_v14  ;;  %v2899_v57 = vadd.f32 %v2898_v30, %v2897_v50  ;;  %v2992_v63 = vadd.f32 %v2991_v36, %v2990_v10  ;;  %v6792_v38 = vld [vmem:[#allocation54_spill] sm:$0xff]  ;;  %v3179_v3 = vld [vmem:[#allocation12] sm:$0xff]  ;;  %v6794_v17 = vld [vmem:[#allocation96_spill] sm:$0xff] }
 0x784   : > { %v3085_v34 = vadd.f32 %v3084_v7, %v3083_v15  ;;  %v6793_v2 = vld [vmem:[#allocation46_spill] sm:$0xff]  ;;  %v6795_v60 = vld [vmem:[#allocation97_spill] sm:$0xff] }
 0x785   : > { %4285 = vmatmul.mubr.msk.f32.vlgmr.msra.gmra.mxu0 %vm1127_vm2, %v2734_v33  ;;  %4296 = vmatmul.mubr.msk.f32.vlgmr.msra.gmra.mxu1 %vm1127_vm2, %v2715_v8  ;;  %v648_v20 = vpop.permute.xlu1 %647  ;;  %v636_v44 = vpop.permute.xlu0 %635 }
 0x786   : > { %4299 = vmatpush3.msra.mxu0 %v6246_v41  ;;  %4310 = vmatpush3.msra.mxu1 %v6248_v11 }
 0x787   : > { %4300 = vmatprep.subr.mxu0 %v6741_v47  ;;  %4311 = vmatprep.subr.mxu1 %v6741_v47 }
 0x788   : > { %4301 = vmatpush3.msra.mxu0 %v6252_v58  ;;  %4312 = vmatpush3.msra.mxu1 %v6254_v21 }
 0x789   : > { %4302 = vmatprep.subr.mxu0 %v6741_v47  ;;  %4313 = vmatprep.subr.mxu1 %v6741_v47  ;;  %v655_v24 = vpop.permute.xlu1 %654  ;;  %v674_v30 = vpop.permute.xlu0 %673 }
 0x78a   : > { %4303 = vmatpush3.msra.mxu0 %v6782_v25  ;;  %4314 = vmatpush3.msra.mxu1 %v6783_v6  ;;  %v6822_v6 = vld [vmem:[#allocation70_spill] sm:$0xff] }
 0x78b   : > { %4304 = vmatprep.subr.mxu0 %v6741_v47  ;;  %4315 = vmatprep.subr.mxu1 %v6741_v47 }
 0x78c   : > { %4305 = vmatpush3.msra.mxu0 %v6784_v31  ;;  %4306 = vmatprep.mubr.msk.f32.mxu0 %vm4750_vm0, %v6741_v47 }
 0x78d   : > { %4316 = vmatpush3.msra.mxu1 %v6785_v39  ;;  %4317 = vmatprep.mubr.msk.f32.mxu1 %vm4750_vm0, %v6741_v47  ;;  %v662_v36 = vpop.permute.xlu1 %661  ;;  %v681_v26 = vpop.permute.xlu0 %680 }
 0x78e   : > { %4307 = vmatmul.mubr.msk.f32.vlgmr.msra.gmra.mxu0 %vm1127_vm2, %v2899_v57  ;;  %4318 = vmatmul.mubr.msk.f32.vlgmr.msra.gmra.mxu1 %vm1127_vm2, %v2992_v63  ;;  %v6796_v57 = vld [vmem:[#allocation32_spill] sm:$0xff] }
 0x78f   : > { %4320 = vmatprep.subr.mxu0 %v6741_v47  ;;  %4328 = vmatprep.mubr.msk.f32.mxu0 %vm4750_vm0, %v6741_v47  ;;  %v624_v63 = vadd.f32 %v622_v5, %v6796_v57  ;;  %v6800_v57 = vld [vmem:[#allocation36_spill] sm:$0xff] }
 0x790   : > { %4321 = vmatpush3.msra.mxu0 %v6274_v62  ;;  %4331 = vmatprep.subr.mxu1 %v6741_v47 }
 0x791   : > { %4322 = vmatprep.subr.mxu0 %v6741_v47  ;;  %4347 = vmatprep.mubr.msk.f32.mxu1 %vm4750_vm0, %v6741_v47  ;;  %v700_v9 = vpop.permute.xlu1 %699  ;;  %v688_v14 = vpop.permute.xlu0 %687 }
 0x792   : > { %4323 = vmatpush3.msra.mxu0 %v6279_v0  ;;  %4332 = vmatpush3.msra.mxu1 %v3209_v56  ;;  %v6797_v56 = vld [vmem:[#allocation33_spill] sm:$0xff] }
 0x793   : > { %4324 = vmatprep.subr.mxu0 %v6741_v47  ;;  %4333 = vmatprep.subr.mxu1 %v6741_v47  ;;  %v6820_v0 = vld [vmem:[#allocation81_spill] sm:$0xff] }
 0x794   : > { %4325 = vmatpush3.msra.mxu0 %v6788_v61  ;;  %4334 = vmatpush3.msra.mxu1 %v3208_v48 }
 0x795   : > { %4326 = vmatprep.subr.mxu0 %v6741_v47  ;;  %4335 = vmatprep.subr.mxu1 %v6741_v47  ;;  %v707_v50 = vpop.permute.xlu1 %706  ;;  %v726_v10 = vpop.permute.xlu0 %725 }
 0x796   : > { %4327 = vmatpush3.msra.mxu0 %v6789_v28  ;;  %4336 = vmatpush3.msra.mxu1 %v3207_v19  ;;  %v631_v28 = vadd.f32 %v629_v13, %v624_v63 }
 0x797   : > { %4329 = vmatmul.mubr.msk.f32.vlgmr.msra.gmra.mxu0 %vm1127_vm2, %v3085_v34  ;;  %4350 = vmatprep.subr.mxu0 %v6741_v47 }
 0x798   : > { %4366 = vmatprep.mubr.msk.f32.mxu0 %vm4750_vm0, %v6741_v47  ;;  %4351 = vmatpush3.msra.mxu0 %v3186_v4  ;;  %v650_v4 = vadd.f32 %v648_v20, %v6797_v56 }
 0x799   : > { %4352 = vmatprep.subr.mxu0 %v6741_v47  ;;  %4337 = vmatprep.subr.mxu1 %v6741_v47  ;;  %v714_v15 = vpop.permute.xlu1 %713  ;;  %v733_v8 = vpop.permute.xlu0 %732 }
 0x79a   : > { %4353 = vmatpush3.msra.mxu0 %v3185_v32  ;;  %4338 = vmatpush3.msra.mxu1 %v3206_v27  ;;  %v6798_v32 = vld [vmem:[#allocation34_spill] sm:$0xff] }
 0x79b   : > { %4354 = vmatprep.subr.mxu0 %v6741_v47  ;;  %4339 = vmatprep.subr.mxu1 %v6741_v47  ;;  %v676_v19 = vadd.f32 %v674_v30, %v6798_v32  ;;  %v6802_v30 = vld [vmem:[#allocation61_spill] sm:$0xff] }
 0x79c   : > { %4355 = vmatpush3.msra.mxu0 %v3184_v29  ;;  %4340 = vmatpush3.msra.mxu1 %v6790_v35  ;;  %v657_v35 = vadd.f32 %v655_v24, %v650_v4  ;;  %v6805_v4 = vld [vmem:[#allocation64_spill] sm:$0xff] }
 0x79d   : > { %4356 = vmatprep.subr.mxu0 %v6741_v47  ;;  %4341 = vmatprep.subr.mxu1 %v6741_v47  ;;  %v752_v39 = vpop.permute.xlu1 %751  ;;  %v740_v48 = vpop.permute.xlu0 %739 }
 0x79e   : > { %4357 = vmatpush3.msra.mxu0 %v3183_v12  ;;  %4342 = vmatpush3.msra.mxu1 %v6792_v38  ;;  %v638_v12 = vadd.f32 %v636_v44, %v631_v28  ;;  %v683_v38 = vadd.f32 %v681_v26, %v676_v19  ;;  %v664_v5 = vadd.f32 %v662_v36, %v657_v35  ;;  %v6803_v44 = vld [vmem:[#allocation62_spill] sm:$0xff]  ;;  %v6804_v28 = vld [vmem:[#allocation63_spill] sm:$0xff]  ;;  %v6806_v19 = vld [vmem:[#allocation65_spill] sm:$0xff] }
 0x79f   : > { %4358 = vmatprep.subr.mxu0 %v6741_v47  ;;  %4343 = vmatprep.subr.mxu1 %v6741_v47  ;;  %v6807_v35 = vld [vmem:[#allocation66_spill] sm:$0xff] }
 0x7a0   : > { %4359 = vmatpush3.msra.mxu0 %v6791_v55  ;;  %4344 = vmatpush3.msra.mxu1 %v6794_v17  ;;  %v690_v13 = vadd.f32 %v688_v14, %v683_v38  ;;  %v3188_v32 = vmul.f32 %v6802_v30, %v638_v12  ;;  %v3357_v24 = vmul.f32 %v6803_v44, %v638_v12  ;;  %v6808_v14 = vld [vmem:[#allocation67_spill] sm:$0xff]  ;;  %v6809_v38 = vld [vmem:[#allocation68_spill] sm:$0xff] }
 0x7a1   : > { %4360 = vmatprep.subr.mxu0 %v6741_v47  ;;  %4345 = vmatprep.subr.mxu1 %v6741_v47  ;;  %v759_v55 = vpop.permute.xlu1 %758  ;;  %v3454_v26 = vmul.f32 %v6804_v28, %v638_v12  ;;  %v3167_v36 = vmul.f32 %v6806_v19, %v664_v5  ;;  %v6815_v44 = vld [vmem:[#allocation88_spill] sm:$0xff]  ;;  %v6816_v19 = vld [vmem:[#allocation77_spill] sm:$0xff] }
 0x7a2   : > { %4361 = vmatpush3.msra.mxu0 %v6793_v2  ;;  %4346 = vmatpush3.msra.mxu1 %v3202_v1  ;;  %v6799_v2 = vld [vmem:[#allocation35_spill] sm:$0xff]  ;;  %v3555_v28 = vmul.f32 %v6815_v44, %v690_v13  ;;  %v6823_v44 = vld [vmem:[#allocation73_spill] sm:$0xff] }
 0x7a3   : > { %4362 = vmatprep.subr.mxu0 %v6741_v47  ;;  %4369 = vmatprep.subr.mxu1 %v6741_v47  ;;  %v702_v1 = vadd.f32 %v700_v9, %v6799_v2  ;;  %v3551_v9 = vmul.f32 %v6805_v4, %v638_v12  ;;  %v3456_v2 = vmul.f32 %v6809_v38, %v664_v5 }
 0x7a4   : > { %4363 = vmatpush3.msra.mxu0 %v6795_v60 }
 0x7a5   : > { %4364 = vmatprep.subr.mxu0 %v6741_v47  ;;  %v709_v63 = vadd.f32 %v707_v50, %v702_v1  ;;  %v3359_v50 = vmul.f32 %v6808_v14, %v664_v5  ;;  %v6810_v1 = vld [vmem:[#allocation69_spill] sm:$0xff]  ;;  %v6818_v14 = vld [vmem:[#allocation79_spill] sm:$0xff] }
 0x7a6   : > { %4365 = vmatpush3.msra.mxu0 %v3179_v3 }
 0x7a7   : > { %4388 = vmatprep.subr.mxu0 %v6741_v47 }
 0x845   : > { %v2808_v7 = vpop.f32.mrf.mxu0  ;;  %v2881_v33 = vpop.f32.mrf.mxu1 }
 0x846   : > { %v2882_v3 = vadd.f32 %v2881_v33, %v2808_v7  ;;  %v716_v7 = vadd.f32 %v714_v15, %v709_v63  ;;  %v778_v33 = vpop.permute.xlu0 %777  ;;  %v6814_v63 = vld [vmem:[#allocation87_spill] sm:$0xff] }
 0x847   : > { %v4286_v34 = vpop.f32.mrf.mxu0  ;;  %v4297_v31 = vpop.f32.mrf.mxu1  ;;  %v3458_v30 = vmul.f32 %v6814_v63, %v690_v13 }
 0x848   : > { %v728_v34 = vadd.f32 %v726_v10, %v6800_v57  ;;  %v6801_v31 = vld [vmem:[#allocation60_spill] sm:$0xff]  ;;  %v3190_v10 = vmul.f32 %v6807_v35, %v664_v5  ;;  %v3171_v35 = vmul.f32 %v6816_v19, %v716_v7  ;;  %v3363_v38 = vmul.f32 %v6818_v14, %v716_v7  ;;  %v6824_v19 = vld [vmem:[#allocation74_spill] sm:$0xff] }
 0x849   : > { %v3165_v56 = vmul.f32 %v6801_v31, %v638_v12  ;;  %v6813_v12 = vld [vmem:[#allocation84_spill] sm:$0xff] }
 0x84a   : > { %v735_v61 = vadd.f32 %v733_v8, %v728_v34  ;;  %v6811_v8 = vld [vmem:[#allocation82_spill] sm:$0xff]  ;;  %v6812_v34 = vld [vmem:[#allocation83_spill] sm:$0xff]  ;;  %v3361_v15 = vmul.f32 %v6813_v12, %v690_v13  ;;  %v785_v63 = vpop.permute.xlu0 %784 }
 0x84b   : > { %v3192_v31 = vmul.f32 %v6812_v34, %v690_v13  ;;  %v6821_v34 = vld [vmem:[#allocation37_spill] sm:$0xff] }
 0x84c   : > { %v754_v12 = vadd.f32 %v752_v39, %v6821_v34 }
 0x84e   : > { %v2973_v29 = vpop.f32.mrf.mxu0  ;;  %v3066_v27 = vpop.f32.mrf.mxu1 }
 0x84f   : > { %v2977_v20 = vadd.f32 %v2973_v29, %v2882_v3  ;;  %v742_v29 = vadd.f32 %v740_v48, %v735_v61  ;;  %v3553_v3 = vmul.f32 %v6810_v1, %v664_v5  ;;  %v6817_v61 = vld [vmem:[#allocation78_spill] sm:$0xff]  ;;  %v6819_v1 = vld [vmem:[#allocation80_spill] sm:$0xff] }
 0x850   : > { %v4308_v17 = vpop.f32.mrf.mxu0  ;;  %v4319_v60 = vpop.f32.mrf.mxu1  ;;  %v3194_v48 = vmul.f32 %v6817_v61, %v716_v7  ;;  %v6825_v61 = vld [vmem:[#allocation75_spill] sm:$0xff] }
 0x851   : > { %v3169_v17 = vmul.f32 %v6811_v8, %v690_v13  ;;  %v766_v60 = vpop.permute.xlu1 %765  ;;  %v3070_v57 = vadd.f32 %v3066_v27, %v2977_v20  ;;  %v3460_v8 = vmul.f32 %v6819_v1, %v716_v7  ;;  %v3557_v27 = vmul.f32 %v6820_v0, %v716_v7 }
 0x852   : > { %v3173_v20 = vmul.f32 %v6776_v51, %v742_v29  ;;  %v761_v1 = vadd.f32 %v759_v55, %v754_v12  ;;  %v3559_v55 = vmul.f32 %v6705_v23, %v742_v29  ;;  %v3375_v12 = vld [vmem:[#allocation12 + $0xa0] sm:$0xff] }
 0x855   : > { %v792_v51 = vpop.permute.xlu1 %791 }
 0x857   : > { %v3159_v4 = vpop.f32.mrf.mxu0 }
 0x858   : > { %v3163_v5 = vadd.f32 %v3159_v4, %v3070_v57  ;;  %v3196_v57 = vmul.f32 %v6777_v53, %v742_v29  ;;  %v6826_v4 = vld [vmem:[#allocation38_spill] sm:$0xff]  ;;  %v3462_v53 = vmul.f32 %v6704_v59, %v742_v29 }
 0x859   : > { %v4330_v62 = vpop.f32.mrf.mxu0  ;;  %v780_v14 = vadd.f32 %v778_v33, %v6826_v4  ;;  %v6831_v4 = vld [vmem:[#allocation49_spill] sm:$0xff] }
 0x85a   : > { %v3164_v13 = vmul.f32 %v3163_v5, %v6822_v6  ;;  %v3187_v25 = vmul.f32 %v3163_v5, %v6823_v44  ;;  %v3356_v21 = vmul.f32 %v3163_v5, %v6824_v19  ;;  %v3453_v58 = vmul.f32 %v3163_v5, %v6825_v61 }
 0x85b   : > { %v3550_v0 = vmul.f32 %v3163_v5, %v6730_v43  ;;  %v3365_v6 = vmul.f32 %v5951_v37, %v742_v29  ;;  %v787_v11 = vadd.f32 %v785_v63, %v780_v14  ;;  %v768_v44 = vadd.f32 %v766_v60, %v761_v1  ;;  %v3472_v63 = vld [vmem:[#allocation12 + $0xe0] sm:$0xff]  ;;  %v6832_v14 = vld [vmem:[#allocation50_spill] sm:$0xff] }
 0x85c   : > { %v3166_v7 = vadd.f32 %v3165_v56, %v3164_v13  ;;  %v3189_v39 = vadd.f32 %v3188_v32, %v3187_v25  ;;  %v3358_v62 = vadd.f32 %v3357_v24, %v3356_v21  ;;  %v3455_v34 = vadd.f32 %v3454_v26, %v3453_v58  ;;  %v6829_v13 = vld [vmem:[#allocation47_spill] sm:$0xff]  ;;  %v3371_v1 = vld [vmem:[#allocation12 + $0x80] sm:$0xff] }
 0x85d   : > { %v3552_v41 = vadd.f32 %v3551_v9, %v3550_v0  ;;  %v794_v33 = vadd.f32 %v792_v51, %v787_v11  ;;  %v3175_v58 = vmul.f32 %v6701_v40, %v768_v44  ;;  %v3198_v37 = vmul.f32 %v6702_v54, %v768_v44  ;;  %v6833_v0 = vld [vmem:[#allocation85_spill] sm:$0xff]  ;;  %v6834_v51 = vld [vmem:[#allocation86_spill] sm:$0xff] }
 0x85e   : > { %v3168_v19 = vadd.f32 %v3167_v36, %v3166_v7  ;;  %v3191_v47 = vadd.f32 %v3190_v10, %v3189_v39  ;;  %v3360_v61 = vadd.f32 %v3359_v50, %v3358_v62  ;;  %v3457_v45 = vadd.f32 %v3456_v2, %v3455_v34  ;;  %v3468_v7 = vld [vmem:[#allocation12 + $0xc0] sm:$0xff]  ;;  %v3572_v39 = vld [vmem:[#allocation12 + $0x138] sm:$0xff]  ;;  %v3571_v62 = vld [vmem:[#allocation12 + $0x130] sm:$0xff] }
 0x85f   : > { %v3554_v43 = vadd.f32 %v3553_v3, %v3552_v41  ;;  %v3367_v32 = vmul.f32 %v6731_v52, %v768_v44  ;;  %v3464_v59 = vmul.f32 %v6732_v16, %v768_v44  ;;  %v3561_v23 = vmul.f32 %v6733_v18, %v768_v44  ;;  %v3570_v34 = vld [vmem:[#allocation12 + $0x128] sm:$0xff]  ;;  %v6835_v44 = vld [vmem:[#allocation51_spill] sm:$0xff] }
 0x860   : > { %v3170_v5 = vadd.f32 %v3169_v17, %v3168_v19  ;;  %v3193_v56 = vadd.f32 %v3192_v31, %v3191_v47  ;;  %v3362_v25 = vadd.f32 %v3361_v15, %v3360_v61  ;;  %v3459_v21 = vadd.f32 %v3458_v30, %v3457_v45  ;;  %v6827_v31 = vld [vmem:[#allocation71_spill] sm:$0xff]  ;;  %v6836_v19 = vld [vmem:[#allocation52_spill] sm:$0xff]  ;;  %v3565_v61 = vld [vmem:[#allocation12 + $0x100] sm:$0xff] }
 0x861   : > { %v3556_v24 = vadd.f32 %v3555_v28, %v3554_v43  ;;  %v3177_v41 = vmul.f32 %v6734_v22, %v794_v33  ;;  %v3200_v54 = vmul.f32 %v6735_v46, %v794_v33  ;;  %v3369_v52 = vmul.f32 %v6736_v42, %v794_v33  ;;  %v3378_v28 = vld [vmem:[#allocation12 + $0xb8] sm:$0xff]  ;;  %v3377_v46 = vld [vmem:[#allocation12 + $0xb0] sm:$0xff] }
 0x862   : > { %v3195_v26 = vadd.f32 %v3194_v48, %v3193_v56  ;;  %v3172_v9 = vadd.f32 %v3171_v35, %v3170_v5  ;;  %v3364_v36 = vadd.f32 %v3363_v38, %v3362_v25  ;;  %v3461_v10 = vadd.f32 %v3460_v8, %v3459_v21  ;;  %v3475_v35 = vld [vmem:[#allocation12 + $0xf8] sm:$0xff]  ;;  %v3474_v42 = vld [vmem:[#allocation12 + $0xf0] sm:$0xff] }
 0x863   : > { %v3558_v47 = vadd.f32 %v3557_v27, %v3556_v24  ;;  %v3466_v29 = vmul.f32 %v6737_v49, %v794_v33  ;;  %v3563_v18 = vmul.f32 %v6827_v31, %v794_v33  ;;  %v6828_v49 = vmov 0.0   ;;  %v3376_v27 = vld [vmem:[#allocation12 + $0xa8] sm:$0xff] }
 0x864   : > { %v3197_v11 = vadd.f32 %v3196_v57, %v3195_v26  ;;  %v3174_v45 = vadd.f32 %v3173_v20, %v3172_v9  ;;  %v3366_v50 = vadd.f32 %v3365_v6, %v3364_v36  ;;  %v3463_v40 = vadd.f32 %v3462_v53, %v3461_v10  ;;  %v3473_v20 = vld [vmem:[#allocation12 + $0xe8] sm:$0xff]  ;;  %v6830_v57 = vld [vmem:[#allocation48_spill] sm:$0xff]  ;;  %v3569_v6 = vld [vmem:[#allocation12 + $0x120] sm:$0xff] }
 0x865   : > { %v3560_v2 = vadd.f32 %v3559_v55, %v3558_v47  ;;  %v6838_v53 = vld [vmem:[#allocation31_spill] sm:$0xff] }
 0x866   : > { %v3199_v3 = vadd.f32 %v3198_v37, %v3197_v11  ;;  %v3176_v17 = vadd.f32 %v3175_v58, %v3174_v45  ;;  %v3368_v60 = vadd.f32 %v3367_v32, %v3366_v50  ;;  %v3465_v16 = vadd.f32 %v3464_v59, %v3463_v40 }
 0x867   : > { %v3562_v15 = vadd.f32 %v3561_v23, %v3560_v2 }
 0x868   : > { %v3201_v22 = vadd.f32 %v3200_v54, %v3199_v3  ;;  %v3178_v30 = vadd.f32 %v3177_v41, %v3176_v17  ;;  %v3370_v48 = vadd.f32 %v3369_v52, %v3368_v60  ;;  %v3467_v38 = vadd.f32 %v3466_v29, %v3465_v16 }
 0x869   : > { %v6366_v8 = vadd.f32 %v3563_v18, %v3562_v15 }
 0x86a   : > { %4348 = vmatmul.mubr.msk.f32.vlgmr.msra.gmra.mxu1 %vm803_vm1, %v3201_v22  ;;  %4367 = vmatmul.mubr.msk.f32.vlgmr.msra.gmra.mxu0 %vm803_vm1, %v3178_v30 }
 0x86b   : > { %4370 = vmatpush3.msra.mxu1 %v3378_v28  ;;  %4389 = vmatpush3.msra.mxu0 %v3475_v35 }
 0x86c   : > { %4371 = vmatprep.subr.mxu1 %v6828_v49  ;;  %4390 = vmatprep.subr.mxu0 %v6828_v49 }
 0x86d   : > { %4372 = vmatpush3.msra.mxu1 %v3377_v46  ;;  %4391 = vmatpush3.msra.mxu0 %v3474_v42 }
 0x86e   : > { %4373 = vmatprep.subr.mxu1 %v6828_v49  ;;  %4392 = vmatprep.subr.mxu0 %v6828_v49 }
 0x86f   : > { %4374 = vmatpush3.msra.mxu1 %v3376_v27  ;;  %4393 = vmatpush3.msra.mxu0 %v3473_v20 }
 0x870   : > { %4375 = vmatprep.subr.mxu1 %v6828_v49  ;;  %4394 = vmatprep.subr.mxu0 %v6828_v49 }
 0x871   : > { %4376 = vmatpush3.msra.mxu1 %v3375_v12  ;;  %4395 = vmatpush3.msra.mxu0 %v3472_v63 }
 0x872   : > { %4377 = vmatprep.subr.mxu1 %v6828_v49  ;;  %4396 = vmatprep.subr.mxu0 %v6828_v49 }
 0x873   : > { %4378 = vmatpush3.msra.mxu1 %v6829_v13  ;;  %4397 = vmatpush3.msra.mxu0 %v6830_v57 }
 0x874   : > { %4379 = vmatprep.subr.mxu1 %v6828_v49  ;;  %4398 = vmatprep.subr.mxu0 %v6828_v49 }
 0x875   : > { %4380 = vmatpush3.msra.mxu1 %v6831_v4  ;;  %4399 = vmatpush3.msra.mxu0 %v6832_v14 }
 0x876   : > { %4381 = vmatprep.subr.mxu1 %v6828_v49  ;;  %4400 = vmatprep.subr.mxu0 %v6828_v49 }
 0x877   : > { %4382 = vmatpush3.msra.mxu1 %v6833_v0  ;;  %4401 = vmatpush3.msra.mxu0 %v6834_v51 }
 0x878   : > { %4383 = vmatprep.subr.mxu1 %v6828_v49  ;;  %4402 = vmatprep.subr.mxu0 %v6828_v49 }
 0x879   : > { %4384 = vmatpush3.msra.mxu1 %v3371_v1  ;;  %4385 = vmatprep.mubr.msk.f32.mxu1 %vm4750_vm0, %v6828_v49 }
 0x87a   : > { %4403 = vmatpush3.msra.mxu0 %v3468_v7  ;;  %4404 = vmatprep.mubr.msk.f32.mxu0 %vm4750_vm0, %v6828_v49 }
 0x87b   : > { %4386 = vmatmul.mubr.msk.f32.vlgmr.msra.gmra.mxu1 %vm803_vm1, %v3370_v48  ;;  %4405 = vmatmul.mubr.msk.f32.vlgmr.msra.gmra.mxu0 %vm803_vm1, %v3467_v38 }
 0x87c   : > { %4407 = vmatprep.subr.mxu1 %v6828_v49  ;;  %4423 = vmatprep.mubr.msk.f32.mxu1 %vm4750_vm0, %v6828_v49 }
 0x87d   : > { %4408 = vmatpush3.msra.mxu1 %v3572_v39 }
 0x87e   : > { %4409 = vmatprep.subr.mxu1 %v6828_v49 }
 0x87f   : > { %4410 = vmatpush3.msra.mxu1 %v3571_v62 }
 0x880   : > { %4411 = vmatprep.subr.mxu1 %v6828_v49 }
 0x881   : > { %4412 = vmatpush3.msra.mxu1 %v3570_v34 }
 0x882   : > { %4413 = vmatprep.subr.mxu1 %v6828_v49 }
 0x883   : > { %4414 = vmatpush3.msra.mxu1 %v3569_v6 }
 0x884   : > { %4415 = vmatprep.subr.mxu1 %v6828_v49 }
 0x885   : > { %4416 = vmatpush3.msra.mxu1 %v6835_v44 }
 0x886   : > { %4417 = vmatprep.subr.mxu1 %v6828_v49 }
 0x887   : > { %4418 = vmatpush3.msra.mxu1 %v6836_v19 }
 0x888   : > { %4419 = vmatprep.subr.mxu1 %v6828_v49 }
 0x889   : > { %4420 = vmatpush3.msra.mxu1 %v6838_v53 }
 0x88a   : > { %4421 = vmatprep.subr.mxu1 %v6828_v49 }
 0x88b   : > { %4422 = vmatpush3.msra.mxu1 %v3565_v61 }
 0x88c   : > { %4424 = vmatmul.mubr.msk.f32.vlgmr.msra.gmra.mxu1 %vm803_vm1, %v6366_v8 }
 0x92a   : > { %v3279_v55 = vpop.f32.mrf.mxu1  ;;  %v3352_v33 = vpop.f32.mrf.mxu0 }
 0x92b   : > { %v3353_v37 = vadd.f32 %v3352_v33, %v3279_v55 }
 0x92c   : > { %v4349_v43 = vpop.f32.mrf.mxu1  ;;  %v4368_v5 = vpop.f32.mrf.mxu0 }
 0x93b   : > { %v3448_v56 = vpop.f32.mrf.mxu1  ;;  %v3545_v25 = vpop.f32.mrf.mxu0 }
 0x93c   : > { %v3452_v32 = vadd.f32 %v3448_v56, %v3353_v37 }
 0x93d   : > { %v4387_v21 = vpop.f32.mrf.mxu1  ;;  %v4406_v58 = vpop.f32.mrf.mxu0 }
 0x93e   : > { %v3549_v24 = vadd.f32 %v3545_v25, %v3452_v32 }
 0x94c   : > { %v3642_v26 = vpop.f32.mrf.mxu1 }
 0x94d   : > { %v3646_v9 = vadd.f32 %v3642_v26, %v3549_v24 }
 0x94e   : > { %v4425_v36 = vpop.f32.mrf.mxu1 }
 0x94f   : > { %3647 = vst [vmem:[%s333_s16] sm:$0xff] %v3646_v9 }
 0x950   : > { %4672 = shalt.err (!%p4669_p4)
}
 0x951   : > { %s4673_s0 = scalar_lea.hbm %s6417_s17, 128  ;;  %s4677_s4 = scalar_lea.hbm %s6842_s28, 256 }
 0x952   : > { %p4674_p5 = scmp.ne.s32.totalorder %s6417_s17, %s4673_s0  ;;  %p4678_p7 = scmp.lt.s32.totalorder %s6417_s17, %s6842_s28 }
 0x953   : > { %p4679_p12 = scmp.lt.s32.totalorder %s4677_s4, %s4673_s0 }
 0x954   : > { %p4675_p6 = pnand %p4674_p5, %p6843_p9 }
 0x955   : > { %p4680_p2 = por %p4679_p12, %p4678_p7 }
 0x956   : > { %p4676_p10 = pneg %p4675_p6 }
 0x958   : > { %p4681_p8 = pnand %p4680_p2, %p4676_p10 }
 0x95a   : > { %4684 = shalt.err (!%p4681_p8)
}
 0x95b   : > { %4448 = dma.vmem_to_hbm [thread:$0]  (%p6843_p9), %s3663_s9, 128, %s6417_s17, %s3649_s25  }
 0x95c PF: > { %s6844_s8 = sld [smem:[#allocation21_spill]] }
 0x95d   : > { %s6845_s10 = sld [smem:[#allocation29_spill]] }
 0x95e   : > { %s6846_s13 = sld [smem:[#allocation24_spill]] }
 0x962   : > { %s3674_s19 = sand.u32 1, %s6844_s8  }
 0x963   : > { %p6847_p11 = scmp.ne.s32.totalorder %s6845_s10, 0  ;;  %s3675_s20 = scalar_lea.sflag [#allocation4], %s3674_s19 }
 0x964   : > { %p6848_p13 = scmp.ge.s32.totalorder %s6846_s13, 2 }
 0x966   : > { %p4471_p0 = pnand %p6848_p13, %p6847_p11 }
 0x968   : > { %p4472_p1 = pneg %p4471_p0 }
 0x96a   : > { %4722 = dma.done.wait (%p4472_p1), %s3675_s20, 128  }
 0x96b   : > { %4724 = vsyncadd (%p4472_p1), %s3675_s20, 4294967168  ;;  %s6849_s24 = sld [smem:[#allocation26_spill]] }
 0x96c   : > { %s6850_s21 = sld [smem:[#allocation22_spill]] }
 0x96d   : > { %s6851_s22 = sld [smem:[#allocation23_spill]] }
 0x96e   : > { %s6852_s23 = sld [smem:[#allocation27_spill]] }
 0x971   : > { %p23_p3 = scmp.ge.s32.totalorder %s6849_s24, 4  }
 0x973   :  { %25 = sbr.rel (!%p23_p3) target bundleno = 17 (0x11), region = 110 }
 0x978   :  { %3680 = vsyncpa [#allocation3], 1 }
 0x979   :  { %3682 = vsyncpa [#allocation3 + $0x1], 1 }
 0x97a   :  { %3683 = vsyncpa [#allocation10], 1 }
 0x97b   :  { %3684 = vsyncpa [#allocation13], 1 }
 0x97c   :  { %3685 = vsyncpa [#allocation4], 1 }
 0x97d   :  { %3687 = vsyncpa [#allocation4 + $0x1], 1 }
 0x97e   :  { %3688 = vsyncpa [#allocation5], 1 }
 0x97f   :  { %3690 = vsyncpa [#allocation5 + $0x1], 1 }
 0x980   :  { %3691 = vsyncpa [#allocation8], 1 }

</bundles_post_ra>
